<compile_context>
chip_gen: v6e
topology: v6e:2x2x1
jax: 0.10.0
libtpu: 0.0.40
codegen_flags: <defaults>
</compile_context>

<pallas_src>
import functools

import jax
import jax.numpy as jnp
from jax.experimental import pallas as pl
from jax.experimental.pallas import tpu as pltpu

_H = 64          # spatial size fixed by Linear(64 * 64, 64)
_W = 64
_CIN = 128       # conv in_channels
_KH = 3
_KW = 3
_HID = 64        # fc1 width
_NOUT = 3        # fc2 width (padded to 128 lanes in the kernel output)

_HP = _H + 2             # 66: padded height
_WP = _W + 2             # 66: padded width == row pitch of the flattened spatial dim
_PP = _HP * _WP          # 4356: padded, flattened spatial positions
_NTAP = _KH * _KW        # 9
_TPAD = 16               # taps padded to 16 rows (2 sublane tiles)


def _shift_lanes(m, off):
    """out[:, p] = m[:, p + off]  (zero-filled where p + off is out of range)."""
    if off == 0:
        return m
    rows, cols = m.shape
    zeros = jnp.zeros((rows, abs(off)), m.dtype)
    if off > 0:
        return jnp.concatenate([m[:, off:], zeros], axis=1)
    return jnp.concatenate([zeros, m[:, :cols + off]], axis=1)


# ----------------------------- Pallas kernel --------------------------------
def _head_kernel(xp_ref, wc_ref, w1_ref, b1_ref, w2_ref, b2_ref, o_ref):
    """One batch block per grid step; all activations resident in VMEM.

    xp_ref : (B, 128, 4356) bf16  zero-padded NCHW input, spatial flattened
                                  with a 66-wide row pitch (channels=sublanes,
                                  spatial=lanes)
    wc_ref : (16, 128)      bf16  conv taps, row t = ki*3 + kj (rows 9..15 = 0)
    w1_ref : (4356, 64)     bf16  fc1 weight scattered to the padded pitch;
                                  zero rows at halo positions
    b1_ref : (1, 64)        f32   fc1 bias with conv bias folded in
    w2_ref : (64, 128)      bf16  fc2 weight padded to 128 lanes
    b2_ref : (1, 128)       f32   fc2 bias padded to 128 lanes
    o_ref  : (1, B, 128)    f32   lane-dense output (cols 0:3 valid)
    """
    bsz = xp_ref.shape[0]
    wc = wc_ref[...]                                           # (16, 128) bf16

    # ---- conv channel contraction on the MXU: (16,128)@(128,P) per element --
    taps = [jnp.dot(wc, xp_ref[b], preferred_element_type=jnp.float32)
            for b in range(bsz)]                               # bsz x (16, P) f32

    # ---- 3x3 spatial taps: 9 lane-shifted adds on the small intermediate ----
    # conv_pad[b, p] = sum_t taps[b][t, p + off_t]; only interior positions
    # matter (halo rows of w1_ref are zero), so zero-fill at the edges is fine.
    conv = None
    for ki in range(_KH):
        for kj in range(_KW):
            t = ki * _KW + kj
            off = (ki - 1) * _WP + (kj - 1)
            rows = jnp.concatenate([tb[t:t + 1, :] for tb in taps], axis=0)
            term = _shift_lanes(rows, off)                     # (bsz, P) f32
            conv = term if conv is None else conv + term

    # ---- fc1 (conv bias folded into b1) + ReLU: bf16 MXU, f32 accumulate ----
    y1 = jnp.dot(conv.astype(jnp.bfloat16), w1_ref[...],
                 preferred_element_type=jnp.float32)           # (bsz, 64)
    y1 = jnp.maximum(y1 + b1_ref[...], 0.0)

    # ---- fc2: (bsz, 64) @ (64, 128-padded) + bias ---------------------------
    y2 = jnp.dot(y1.astype(jnp.bfloat16), w2_ref[...],
                 preferred_element_type=jnp.float32)
    o_ref[0] = y2 + b2_ref[...]                                # (bsz, 128)


# ----------------------------- wrapper ---------------------------------------
def _pick_block_batch(n):
    # Amortize per-step overhead / fill MXU sublanes, but keep >= 2 grid steps
    # so dimension_semantics=("parallel",) can feed both v7x TensorCores.
    for b in (8, 4, 2):
        if n >= 2 * b:
            return b
    return 1


@functools.partial(jax.jit, static_argnames=())
def center_speed_head_forward(x_nchw, params):
    n = x_nchw.shape[0]
    bsz = _pick_block_batch(n)
    g = pl.cdiv(n, bsz)
    n_pad = g * bsz

    # Zero-pad batch to a block multiple and the conv halo; flatten spatial with
    # a 66-wide row pitch; cast to bf16.  NCHW is kept, so no transpose pass.
    xp = jnp.pad(x_nchw, ((0, n_pad - n), (0, 0), (1, 1), (1, 1)))
    xp = xp.astype(jnp.bfloat16).reshape(n_pad, _CIN, _PP)     # (n_pad, 128, 4356)

    out = pl.pallas_call(
        _head_kernel,
        out_shape=jax.ShapeDtypeStruct((g, bsz, 128), jnp.float32),
        grid=(g,),
        in_specs=[
            pl.BlockSpec((bsz, _CIN, _PP), lambda i: (i, 0, 0)),
            pl.BlockSpec((_TPAD, _CIN), lambda i: (0, 0)),
            pl.BlockSpec((_PP, _HID), lambda i: (0, 0)),
            pl.BlockSpec((1, _HID), lambda i: (0, 0)),
            pl.BlockSpec((_HID, 128), lambda i: (0, 0)),
            pl.BlockSpec((1, 128), lambda i: (0, 0)),
        ],
        out_specs=pl.BlockSpec((1, bsz, 128), lambda i: (i, 0, 0)),
        compiler_params=pltpu.CompilerParams(
            dimension_semantics=("parallel",),
            vmem_limit_bytes=48 * 1024 * 1024),
    )(xp, params["wc_taps"], params["w1_pad"], params["b1_eff"],
      params["w2_t"], params["b2_p"])

    return out.reshape(n_pad, 128)[:n, :_NOUT]                 # (N, 3)


# ----------------------------- parameters ------------------------------------
def init_raw_params(key):
    """PyTorch-default-style uniform init for the raw module parameters."""
    ks = jax.random.split(key, 6)

    def u(k, shape, fan_in):
        bound = 1.0 / (fan_in ** 0.5)
        return jax.random.uniform(k, shape, jnp.float32, -bound, bound)

    return dict(
        conv_w=u(ks[0], (1, _CIN, _KH, _KW), _CIN * _KH * _KW),   # (O, I, kh, kw)
        conv_b=u(ks[1], (1,), _CIN * _KH * _KW),
        fc1_w=u(ks[2], (_HID, _H * _W), _H * _W),                 # (out, in)
        fc1_b=u(ks[3], (_HID,), _H * _W),
        fc2_w=u(ks[4], (_NOUT, _HID), _HID),
        fc2_b=u(ks[5], (_NOUT,), _HID),
    )


def prepare_params(raw):
    """One-time weight prep: transpose/scatter/pad/bias-fold outside the hot path."""
    # Conv taps (1,128,3,3) -> (9,128) with row t = ki*3 + kj, padded to 16 rows.
    wc = jnp.transpose(raw["conv_w"][0], (1, 2, 0)).reshape(_NTAP, _CIN)
    wc = jnp.pad(wc, ((0, _TPAD - _NTAP), (0, 0)))

    # fc1 (64, 4096) -> (4096, 64); fold conv bias; scatter rows into the padded
    # 66x66 pitch (zero rows at halo positions implement "take the interior"
    # for free inside the fc1 matmul).
    w1_t = jnp.transpose(raw["fc1_w"])                            # (4096, 64)
    b1_eff = raw["fc1_b"] + raw["conv_b"][0] * jnp.sum(w1_t, axis=0)
    w1_img = w1_t.reshape(_H, _W, _HID)
    w1_pad = jnp.zeros((_HP, _WP, _HID), jnp.float32)
    w1_pad = w1_pad.at[1:_H + 1, 1:_W + 1, :].set(w1_img).reshape(_PP, _HID)

    # fc2 (3, 64) -> (64, 3) padded to lane-dense (64, 128); bias too.
    w2_t = jnp.pad(jnp.transpose(raw["fc2_w"]), ((0, 0), (0, 128 - _NOUT)))
    b2_p = jnp.pad(raw["fc2_b"], (0, 128 - _NOUT)).reshape(1, 128)

    return dict(
        wc_taps=wc.astype(jnp.bfloat16),
        w1_pad=w1_pad.astype(jnp.bfloat16),
        b1_eff=b1_eff.reshape(1, _HID).astype(jnp.float32),
        w2_t=w2_t.astype(jnp.bfloat16),
        b2_p=b2_p.astype(jnp.float32),
    )


# ----------------------------- pure-JAX reference ----------------------------
def reference_forward(x_nchw, raw):
    y = jax.lax.conv_general_dilated(
        x_nchw, raw["conv_w"], window_strides=(1, 1),
        padding=((1, 1), (1, 1)),
        dimension_numbers=("NCHW", "OIHW", "NCHW"))
    y = y + raw["conv_b"].reshape(1, 1, 1, 1)
    y = y.reshape(x_nchw.shape[0], -1)                        # Flatten (C=1,H,W)
    y = y @ raw["fc1_w"].T + raw["fc1_b"]
    y = jnp.maximum(y, 0.0)
    y = y @ raw["fc2_w"].T + raw["fc2_b"]
    return y


# ----------------------------- main -------------------------------------------
if __name__ == "__main__":
    key = jax.random.PRNGKey(0)
    k_params, k_x = jax.random.split(key)

    raw = init_raw_params(k_params)
    params = prepare_params(raw)

    # Input shape is fixed by the module: Linear(64*64) after a 1-channel conv
    # forces 64x64 spatial; conv in_channels = 128.  Batch = 2.
    x = jax.random.normal(k_x, (2, _CIN, _H, _W), jnp.float32)    # NCHW

    y = center_speed_head_forward(x, params)
    jax.block_until_ready(y)

    assert y.shape == (2, _NOUT), y.shape
    assert bool(jnp.all(jnp.isfinite(y)))

    # TODO(synk): self.dropout (Dropout2d) / self.sigmoid exist on the module
    # but are never applied in forward(); they are intentionally not modeled.
    y_ref = reference_forward(x, raw)
    assert bool(jnp.allclose(y, y_ref, rtol=2e-2, atol=2e-2)), (y, y_ref)

    print("KERNEL_OK")
</pallas_src>

<mosaic_0001>
module attributes {stable_mosaic.version = 11 : i64} {
  func.func @_head_kernel(%arg0: i32, %arg1: memref<1x128x4356xbf16, #tpu.memory_space<vmem>>, %arg2: memref<16x128xbf16, #tpu.memory_space<vmem>>, %arg3: memref<4356x64xbf16, #tpu.memory_space<vmem>>, %arg4: memref<1x64xf32, #tpu.memory_space<vmem>>, %arg5: memref<64x128xbf16, #tpu.memory_space<vmem>>, %arg6: memref<1x128xf32, #tpu.memory_space<vmem>>, %arg7: memref<1x1x128xf32, #tpu.memory_space<vmem>>) attributes {dimension_semantics = [#tpu.dimension_semantics<parallel>], iteration_bounds = array<i64: 2>, scalar_prefetch = 0 : i64, scratch_operands = 0 : i64, tpu.core_type = #tpu.core_type<tc>, window_params = [{transform_indices = @transform_0, window_bounds = array<i64: 1, 128, 4356>}, {pipeline_mode = #tpu.pipeline_mode<synchronous>, transform_indices = @transform_1, window_bounds = array<i64: 16, 128>}, {pipeline_mode = #tpu.pipeline_mode<synchronous>, transform_indices = @transform_2, window_bounds = array<i64: 4356, 64>}, {pipeline_mode = #tpu.pipeline_mode<synchronous>, transform_indices = @transform_3, window_bounds = array<i64: 1, 64>}, {pipeline_mode = #tpu.pipeline_mode<synchronous>, transform_indices = @transform_4, window_bounds = array<i64: 64, 128>}, {pipeline_mode = #tpu.pipeline_mode<synchronous>, transform_indices = @transform_5, window_bounds = array<i64: 1, 128>}, {transform_indices = @transform_6, window_bounds = array<i64: 1, 1, 128>}]} {
    %c0 = arith.constant 0 : index
    %c0_0 = arith.constant 0 : index
    %0 = vector.load %arg2[%c0, %c0_0] : memref<16x128xbf16, #tpu.memory_space<vmem>>, vector<16x128xbf16>
    %c0_1 = arith.constant 0 : index
    %c0_2 = arith.constant 0 : index
    %c0_3 = arith.constant 0 : index
    %1 = vector.load %arg1[%c0_1, %c0_2, %c0_3] : memref<1x128x4356xbf16, #tpu.memory_space<vmem>>, vector<1x128x4356xbf16>
    %2 = vector.shape_cast %1 : vector<1x128x4356xbf16> to vector<128x4356xbf16>
    %cst = arith.constant dense<0.000000e+00> : vector<16x4356xf32>
    %3 = tpu.matmul %0, %2, %cst {dimension_numbers = #tpu.dot_dimension_numbers<[1], [0], [0], [1], [0, 0, 1, 1], [], []>} : vector<16x128xbf16>, vector<128x4356xbf16>, vector<16x4356xf32> -> vector<16x4356xf32>
    %4 = vector.extract_strided_slice %3 {offsets = [0, 0], sizes = [1, 4356], strides = [1, 1]} : vector<16x4356xf32> to vector<1x4356xf32>
    %cst_4 = arith.constant 0.000000e+00 : f32
    %5 = vector.broadcast %cst_4 : f32 to vector<1x67xf32>
    %6 = vector.extract_strided_slice %4 {offsets = [0, 0], sizes = [1, 4289], strides = [1, 1]} : vector<1x4356xf32> to vector<1x4289xf32>
    %7 = tpu.concatenate %5, %6 in 1 : vector<1x67xf32>, vector<1x4289xf32> -> vector<1x4356xf32>
    %8 = vector.extract_strided_slice %3 {offsets = [1, 0], sizes = [1, 4356], strides = [1, 1]} : vector<16x4356xf32> to vector<1x4356xf32>
    %cst_5 = arith.constant 0.000000e+00 : f32
    %9 = vector.broadcast %cst_5 : f32 to vector<1x66xf32>
    %10 = vector.extract_strided_slice %8 {offsets = [0, 0], sizes = [1, 4290], strides = [1, 1]} : vector<1x4356xf32> to vector<1x4290xf32>
    %11 = tpu.concatenate %9, %10 in 1 : vector<1x66xf32>, vector<1x4290xf32> -> vector<1x4356xf32>
    %12 = arith.addf %7, %11 : vector<1x4356xf32>
    %13 = vector.extract_strided_slice %3 {offsets = [2, 0], sizes = [1, 4356], strides = [1, 1]} : vector<16x4356xf32> to vector<1x4356xf32>
    %cst_6 = arith.constant 0.000000e+00 : f32
    %14 = vector.broadcast %cst_6 : f32 to vector<1x65xf32>
    %15 = vector.extract_strided_slice %13 {offsets = [0, 0], sizes = [1, 4291], strides = [1, 1]} : vector<1x4356xf32> to vector<1x4291xf32>
    %16 = tpu.concatenate %14, %15 in 1 : vector<1x65xf32>, vector<1x4291xf32> -> vector<1x4356xf32>
    %17 = arith.addf %12, %16 : vector<1x4356xf32>
    %18 = vector.extract_strided_slice %3 {offsets = [3, 0], sizes = [1, 4356], strides = [1, 1]} : vector<16x4356xf32> to vector<1x4356xf32>
    %cst_7 = arith.constant 0.000000e+00 : f32
    %19 = vector.broadcast %cst_7 : f32 to vector<1x1xf32>
    %20 = vector.extract_strided_slice %18 {offsets = [0, 0], sizes = [1, 4355], strides = [1, 1]} : vector<1x4356xf32> to vector<1x4355xf32>
    %21 = tpu.concatenate %19, %20 in 1 : vector<1x1xf32>, vector<1x4355xf32> -> vector<1x4356xf32>
    %22 = arith.addf %17, %21 : vector<1x4356xf32>
    %23 = vector.extract_strided_slice %3 {offsets = [4, 0], sizes = [1, 4356], strides = [1, 1]} : vector<16x4356xf32> to vector<1x4356xf32>
    %24 = arith.addf %22, %23 : vector<1x4356xf32>
    %25 = vector.extract_strided_slice %3 {offsets = [5, 0], sizes = [1, 4356], strides = [1, 1]} : vector<16x4356xf32> to vector<1x4356xf32>
    %cst_8 = arith.constant 0.000000e+00 : f32
    %26 = vector.broadcast %cst_8 : f32 to vector<1x1xf32>
    %27 = vector.extract_strided_slice %25 {offsets = [0, 1], sizes = [1, 4355], strides = [1, 1]} : vector<1x4356xf32> to vector<1x4355xf32>
    %28 = tpu.concatenate %27, %26 in 1 : vector<1x4355xf32>, vector<1x1xf32> -> vector<1x4356xf32>
    %29 = arith.addf %24, %28 : vector<1x4356xf32>
    %30 = vector.extract_strided_slice %3 {offsets = [6, 0], sizes = [1, 4356], strides = [1, 1]} : vector<16x4356xf32> to vector<1x4356xf32>
    %cst_9 = arith.constant 0.000000e+00 : f32
    %31 = vector.broadcast %cst_9 : f32 to vector<1x65xf32>
    %32 = vector.extract_strided_slice %30 {offsets = [0, 65], sizes = [1, 4291], strides = [1, 1]} : vector<1x4356xf32> to vector<1x4291xf32>
    %33 = tpu.concatenate %32, %31 in 1 : vector<1x4291xf32>, vector<1x65xf32> -> vector<1x4356xf32>
    %34 = arith.addf %29, %33 : vector<1x4356xf32>
    %35 = vector.extract_strided_slice %3 {offsets = [7, 0], sizes = [1, 4356], strides = [1, 1]} : vector<16x4356xf32> to vector<1x4356xf32>
    %cst_10 = arith.constant 0.000000e+00 : f32
    %36 = vector.broadcast %cst_10 : f32 to vector<1x66xf32>
    %37 = vector.extract_strided_slice %35 {offsets = [0, 66], sizes = [1, 4290], strides = [1, 1]} : vector<1x4356xf32> to vector<1x4290xf32>
    %38 = tpu.concatenate %37, %36 in 1 : vector<1x4290xf32>, vector<1x66xf32> -> vector<1x4356xf32>
    %39 = arith.addf %34, %38 : vector<1x4356xf32>
    %40 = vector.extract_strided_slice %3 {offsets = [8, 0], sizes = [1, 4356], strides = [1, 1]} : vector<16x4356xf32> to vector<1x4356xf32>
    %cst_11 = arith.constant 0.000000e+00 : f32
    %41 = vector.broadcast %cst_11 : f32 to vector<1x67xf32>
    %42 = vector.extract_strided_slice %40 {offsets = [0, 67], sizes = [1, 4289], strides = [1, 1]} : vector<1x4356xf32> to vector<1x4289xf32>
    %43 = tpu.concatenate %42, %41 in 1 : vector<1x4289xf32>, vector<1x67xf32> -> vector<1x4356xf32>
    %44 = arith.addf %39, %43 : vector<1x4356xf32>
    %45 = arith.truncf %44 : vector<1x4356xf32> to vector<1x4356xbf16>
    %c0_12 = arith.constant 0 : index
    %c0_13 = arith.constant 0 : index
    %46 = vector.load %arg3[%c0_12, %c0_13] : memref<4356x64xbf16, #tpu.memory_space<vmem>>, vector<4356x64xbf16>
    %cst_14 = arith.constant dense<0.000000e+00> : vector<1x64xf32>
    %47 = tpu.matmul %45, %46, %cst_14 {dimension_numbers = #tpu.dot_dimension_numbers<[1], [0], [0], [1], [0, 0, 1, 1], [], []>} : vector<1x4356xbf16>, vector<4356x64xbf16>, vector<1x64xf32> -> vector<1x64xf32>
    %c0_15 = arith.constant 0 : index
    %c0_16 = arith.constant 0 : index
    %48 = vector.load %arg4[%c0_15, %c0_16] : memref<1x64xf32, #tpu.memory_space<vmem>>, vector<1x64xf32>
    %49 = arith.addf %47, %48 : vector<1x64xf32>
    %cst_17 = arith.constant 0.000000e+00 : f32
    %50 = vector.broadcast %cst_17 : f32 to vector<1x64xf32>
    %51 = arith.maximumf %49, %50 : vector<1x64xf32>
    %52 = arith.truncf %51 : vector<1x64xf32> to vector<1x64xbf16>
    %c0_18 = arith.constant 0 : index
    %c0_19 = arith.constant 0 : index
    %53 = vector.load %arg5[%c0_18, %c0_19] : memref<64x128xbf16, #tpu.memory_space<vmem>>, vector<64x128xbf16>
    %cst_20 = arith.constant dense<0.000000e+00> : vector<1x128xf32>
    %54 = tpu.matmul %52, %53, %cst_20 {dimension_numbers = #tpu.dot_dimension_numbers<[1], [0], [0], [1], [0, 0, 1, 1], [], []>} : vector<1x64xbf16>, vector<64x128xbf16>, vector<1x128xf32> -> vector<1x128xf32>
    %c0_21 = arith.constant 0 : index
    %c0_22 = arith.constant 0 : index
    %55 = vector.load %arg6[%c0_21, %c0_22] : memref<1x128xf32, #tpu.memory_space<vmem>>, vector<1x128xf32>
    %56 = arith.addf %54, %55 : vector<1x128xf32>
    %c0_23 = arith.constant 0 : index
    %c0_24 = arith.constant 0 : index
    %c0_25 = arith.constant 0 : index
    %57 = vector.load %arg7[%c0_23, %c0_24, %c0_25] : memref<1x1x128xf32, #tpu.memory_space<vmem>>, vector<1x1x128xf32>
    %58 = vector.shape_cast %57 : vector<1x1x128xf32> to vector<1x128xf32>
    %59 = vector.shape_cast %56 : vector<1x128xf32> to vector<1x1x128xf32>
    tpu.vector_store %arg7[%c0_23, %c0_24, %c0_25], %59 {strides = array<i32>} : memref<1x1x128xf32, #tpu.memory_space<vmem>>, vector<1x1x128xf32>,
    return
  }
  func.func @transform_0(%arg0: i32) -> (i32, i32, i32) {
    %c0_i32 = arith.constant 0 : i32
    %c0_i32_0 = arith.constant 0 : i32
    %c0_i32_1 = arith.constant 0 : i32
    return %arg0, %c0_i32, %c0_i32_0 : i32, i32, i32
  }
  func.func @transform_1(%arg0: i32) -> (i32, i32) {
    %c0_i32 = arith.constant 0 : i32
    %c0_i32_0 = arith.constant 0 : i32
    %c0_i32_1 = arith.constant 0 : i32
    return %c0_i32, %c0_i32_0 : i32, i32
  }
  func.func @transform_2(%arg0: i32) -> (i32, i32) {
    %c0_i32 = arith.constant 0 : i32
    %c0_i32_0 = arith.constant 0 : i32
    %c0_i32_1 = arith.constant 0 : i32
    return %c0_i32, %c0_i32_0 : i32, i32
  }
  func.func @transform_3(%arg0: i32) -> (i32, i32) {
    %c0_i32 = arith.constant 0 : i32
    %c0_i32_0 = arith.constant 0 : i32
    %c0_i32_1 = arith.constant 0 : i32
    return %c0_i32, %c0_i32_0 : i32, i32
  }
  func.func @transform_4(%arg0: i32) -> (i32, i32) {
    %c0_i32 = arith.constant 0 : i32
    %c0_i32_0 = arith.constant 0 : i32
    %c0_i32_1 = arith.constant 0 : i32
    return %c0_i32, %c0_i32_0 : i32, i32
  }
  func.func @transform_5(%arg0: i32) -> (i32, i32) {
    %c0_i32 = arith.constant 0 : i32
    %c0_i32_0 = arith.constant 0 : i32
    %c0_i32_1 = arith.constant 0 : i32
    return %c0_i32, %c0_i32_0 : i32, i32
  }
  func.func @transform_6(%arg0: i32) -> (i32, i32, i32) {
    %c0_i32 = arith.constant 0 : i32
    %c0_i32_0 = arith.constant 0 : i32
    %c0_i32_1 = arith.constant 0 : i32
    return %arg0, %c0_i32, %c0_i32_0 : i32, i32, i32
  }
}

</mosaic_0001>

<bundles_post_ra>
// kernel: center_speed_head_forward.1
= control target key start
LH: loop header
LB: loop body
LE: loop exit
PB: predicated region body
PF: predicated region fallthrough
CT: control target
= control target key end

     0   :  { %11 = vsyncpa [#allocation3], 0  ;;  %s12598_s0 = inlined_call_operand.vmem [shape: bf16[2,128,4356], index: 0, kind: input, shape index: {}]   ;;  %s12599_s1 = inlined_call_operand.vmem [shape: bf16[16,128], index: 1, kind: input, shape index: {}]   ;;  %s12600_s2 = inlined_call_operand.vmem [shape: bf16[4356,64], index: 2, kind: input, shape index: {}]   ;;  %s12601_s3 = inlined_call_operand.vmem [shape: f32[1,64], index: 3, kind: input, shape index: {}]   ;;  %s12602_s4 = inlined_call_operand.vmem [shape: bf16[64,128], index: 4, kind: input, shape index: {}]   ;;  %s12603_s5 = inlined_call_operand.vmem [shape: f32[1,128], index: 5, kind: input, shape index: {}]   ;;  %s12604_s6 = inlined_call_operand.hbm [shape: f32[2,1,128], index: 6, kind: output, shape index: {}]  }
   0x1   :  { %13 = vsyncpa [#allocation3 + $0x1], 0  ;;  %s9424_s21 = smov 0   ;;  %s9426_s22 = smov 0  }
   0x2   :  { %s9428_s23 = smov 0   ;;  %s9430_s24 = smov 0  }
   0x3 LB: > { %s9445_s25 = sadd.s32 4294967295, %s9375_s24   ;;  %s7572_s26 = sadd.s32 4294967294, %s9375_s24   ;;  %s9375_s24 = sphi %s9430_s24, %s12660_s24   ;;  %s9371_s23 = sphi %s9428_s23, %s12659_s23   ;;  %s9367_s22 = sphi %s9426_s22, %s12658_s22   ;;  %s9363_s21 = sphi %s9424_s21, %s12657_s21  }
   0x4   : > { %s9449_s27 = sadd.s32 1, %s9375_s24   ;;  %s157_s28 = sadd.s32 1, %s9371_s23 }
   0x5   : > { %s154_s29 = ssub.s32 %s9375_s24, %s9449_s27  ;;  %p167_p0 = scmp.ne.s32.totalorder %s9371_s23, %s9367_s22 }
   0x6   : > { %p155_p1 = scmp.eq.s32.totalorder %s154_s29, 0  ;;  %p168_p2 = scmp.eq.s32.totalorder %s9445_s25, 1 }
   0x7   : > { %p173_p3 = scmp.ne.s32.totalorder %s9367_s22, %s9363_s21  ;;  %p174_p4 = scmp.eq.s32.totalorder %s7572_s26, 1 }
   0x8   : > { %s9460_s30 = scalar_select %p155_p1, %s9371_s23, %s157_s28  }
   0x9   : > { %p9462_p5 = por %p168_p2, %p167_p0  ;;  %p9466_p6 = por %p174_p4, %p173_p3 }
   0xa   : > { %p7575_p7 = scmp.ge.s32.totalorder %s9375_s24, 1  ;;  %p215_p8 = scmp.lt.s32.totalorder %s9375_s24, 3 }
   0xc   : > { %p216_p9 = pnand %p7575_p7, %p215_p8 }
   0xe   : > { %219 = sbr.rel (%p216_p9) target bundleno = 1340 (0x53c), region = 44 }
  0x13   : > { %p244_p10 = scmp.lt.s32.totalorder %s9445_s25, 1  ;;  %v9377_v0 = vmov 0   ;;  %v9518_v35 = vld [vmem:[%s12599_s1] sm:$0xff]   ;;  %s12605_s18 = smov 127   ;;  %vm9387_vm0 = vmmov 0   ;;  %vm2828_vm1 = vcmask 547840  }
  0x14   : > { %1986 = vmatprep.mubr.bf16.mxu0 %v9377_v0  ;;  %2029 = vmatprep.mubr.bf16.mxu1 %v9377_v0  ;;  %s12618_s19 = smov 67   ;;  %s9380_s20 = smov 63   ;;  %vm3000_vm2 = vcmask 539648   ;;  %vm3207_vm3 = vcmask 531456   ;;  %vm3418_vm4 = vcmask 7168   ;;  %vm3699_vm5 = vcmask 1039360  }
  0x15   : > { %s245_s9 = scalar_select %p244_p10, %s9445_s25, 1  ;;  %vm3913_vm6 = vcmask 515072   ;;  %vm4127_vm7 = vcmask 506880   ;;  %vm4375_vm8 = vcmask 498688   ;;  %vm3735_vm9 = vcmask 23552  }
  0x16   : > { %s9381_s26 = smov 62   ;;  %s12613_s28 = smov 66   ;;  %vm6700_vm10 = vcmask 1041408   ;;  %vm6696_vm11 = vcmask 31744   ;;  %vm7459_vm12 = vcmask 523264  }
  0x17   : > { %s8568_s10 = smul.u32 2240, %s245_s9  ;;  %s12609_s29 = smov 65  }
  0x18   : > { %s12607_s9 = smov 1   ;;  %s12626_s11 = smov 1  }
  0x19   : > { %s9479_s13 = scalar_lea.vmem %s12598_s0, %s8568_s10  ;;  %s12622_s10 = smov 61  }
  0x1a   : > { %v8619_v1 = vld [vmem:[%s9479_s13 + $0x7ac] ss:$140 sps:$4 sm:$0xff]   ;;  %v8621_v2 = vld [vmem:[%s9479_s13 + $0x7b4] ss:$140 sps:$4 sm:$0xff]   ;;  %v8624_v4 = vld [vmem:[%s9479_s13 + $0x7b0] ss:$140 sps:$4 sm:$0xff]  }
  0x1b   : > { %1954 = vmatprep.subr.bf16.mxu0 %v8619_v1  ;;  %v8623_v3 = vld [vmem:[%s9479_s13 + $0x7a8] ss:$140 sps:$4 sm:$0xff]   ;;  %1997 = vmatprep.subr.bf16.mxu1 %v8621_v2  ;;  %v8629_v7 = vld [vmem:[%s9479_s13 + $0x690] ss:$140 sps:$4 sm:$0xff]   ;;  %v8630_v8 = vld [vmem:[%s9479_s13 + $0x698] ss:$140 sps:$4 sm:$0xff]  }
  0x1c   : > { %v8625_v5 = vld [vmem:[%s9479_s13 + $0x694] ss:$140 sps:$4 sm:$0xff]   ;;  %1955 = vmatpush1.bf16.msra.mxu0 %v8623_v3  ;;  %1998 = vmatpush1.bf16.msra.mxu1 %v8624_v4  ;;  %v8627_v6 = vld [vmem:[%s9479_s13 + $0x69c] ss:$140 sps:$4 sm:$0xff]   ;;  %v8633_v10 = vld [vmem:[%s9479_s13 + $0x584] ss:$140 sps:$4 sm:$0xff]  }
  0x1d   : > { %1956 = vmatprep.subr.bf16.mxu0 %v8625_v5  ;;  %1999 = vmatprep.subr.bf16.mxu1 %v8627_v6  ;;  %v8631_v9 = vld [vmem:[%s9479_s13 + $0x57c] ss:$140 sps:$4 sm:$0xff]   ;;  %v8635_v11 = vld [vmem:[%s9479_s13 + $0x578] ss:$140 sps:$4 sm:$0xff]   ;;  %v8636_v12 = vld [vmem:[%s9479_s13 + $0x580] ss:$140 sps:$4 sm:$0xff]  }
  0x1e   : > { %v8637_v13 = vld [vmem:[%s9479_s13 + $0x464] ss:$140 sps:$4 sm:$0xff]   ;;  %v8639_v14 = vld [vmem:[%s9479_s13 + $0x46c] ss:$140 sps:$4 sm:$0xff]   ;;  %v8642_v16 = vld [vmem:[%s9479_s13 + $0x468] ss:$140 sps:$4 sm:$0xff]  }
  0x1f   : > { %v8641_v15 = vld [vmem:[%s9479_s13 + $0x460] ss:$140 sps:$4 sm:$0xff]   ;;  %v8647_v19 = vld [vmem:[%s9479_s13 + $0x348] ss:$140 sps:$4 sm:$0xff]   ;;  %v8648_v20 = vld [vmem:[%s9479_s13 + $0x350] ss:$140 sps:$4 sm:$0xff]  }
  0x20   : > { %1957 = vmatpush1.bf16.msra.mxu0 %v8629_v7  ;;  %2000 = vmatpush1.bf16.msra.mxu1 %v8630_v8  ;;  %v8643_v17 = vld [vmem:[%s9479_s13 + $0x34c] ss:$140 sps:$4 sm:$0xff]   ;;  %v8645_v18 = vld [vmem:[%s9479_s13 + $0x354] ss:$140 sps:$4 sm:$0xff]   ;;  %v8651_v22 = vld [vmem:[%s9479_s13 + $0x23c] ss:$140 sps:$4 sm:$0xff]  }
  0x21   : > { %1958 = vmatprep.subr.bf16.mxu0 %v8631_v9  ;;  %2001 = vmatprep.subr.bf16.mxu1 %v8633_v10  ;;  %v8649_v21 = vld [vmem:[%s9479_s13 + $0x234] ss:$140 sps:$4 sm:$0xff]   ;;  %v8653_v23 = vld [vmem:[%s9479_s13 + $0x230] ss:$140 sps:$4 sm:$0xff]   ;;  %v8654_v24 = vld [vmem:[%s9479_s13 + $0x238] ss:$140 sps:$4 sm:$0xff]  }
  0x22   : > { %v8655_v25 = vld [vmem:[%s9479_s13 + $0x11c] ss:$140 sps:$4 sm:$0xff]   ;;  %v8657_v26 = vld [vmem:[%s9479_s13 + $0x124] ss:$140 sps:$4 sm:$0xff]   ;;  %v8660_v28 = vld [vmem:[%s9479_s13 + $0x120] ss:$140 sps:$4 sm:$0xff]  }
  0x23   : > { %v8659_v27 = vld [vmem:[%s9479_s13 + $0x118] ss:$140 sps:$4 sm:$0xff]   ;;  %v8665_v31 = vld [vmem:[%s9479_s13] ss:$140 sps:$4 sm:$0xff]   ;;  %v8666_v32 = vld [vmem:[%s9479_s13 + $0x8] ss:$140 sps:$4 sm:$0xff]  }
  0x24   : > { %1959 = vmatpush1.bf16.msra.mxu0 %v8635_v11  ;;  %2002 = vmatpush1.bf16.msra.mxu1 %v8636_v12  ;;  %v8661_v29 = vld [vmem:[%s9479_s13 + $0x4] ss:$140 sps:$4 sm:$0xff]   ;;  %v8663_v30 = vld [vmem:[%s9479_s13 + $0xc] ss:$140 sps:$4 sm:$0xff]   ;;  %v8670_v33 = vld [vmem:[%s9479_s13 + $0x7bc] ss:$140 sps:$4 sm:$0xff]  }
  0x25   : > { %1960 = vmatprep.subr.bf16.mxu0 %v8637_v13  ;;  %2003 = vmatprep.subr.bf16.mxu1 %v8639_v14  ;;  %v8676_v34 = vld [vmem:[%s9479_s13 + $0x7c4] ss:$140 sps:$4 sm:$0xff]   ;;  %v8674_v38 = vld [vmem:[%s9479_s13 + $0x7c0] ss:$140 sps:$4 sm:$0xff]   ;;  %v8680_v42 = vld [vmem:[%s9479_s13 + $0x6a8] ss:$140 sps:$4 sm:$0xff]  }
  0x26   : > { %v8668_v36 = vld [vmem:[%s9479_s13 + $0x7b8] ss:$140 sps:$4 sm:$0xff]   ;;  %v8671_v40 = vld [vmem:[%s9479_s13 + $0x6a0] ss:$140 sps:$4 sm:$0xff]   ;;  %v8677_v44 = vld [vmem:[%s9479_s13 + $0x588] ss:$140 sps:$4 sm:$0xff]  }
  0x27   : > { %v8673_v37 = vld [vmem:[%s9479_s13 + $0x6a4] ss:$140 sps:$4 sm:$0xff]   ;;  %v8682_v39 = vld [vmem:[%s9479_s13 + $0x6ac] ss:$140 sps:$4 sm:$0xff]   ;;  %v8688_v43 = vld [vmem:[%s9479_s13 + $0x594] ss:$140 sps:$4 sm:$0xff]  }
  0x28   : > { %1961 = vmatpush1.bf16.msra.mxu0 %v8641_v15  ;;  %2004 = vmatpush1.bf16.msra.mxu1 %v8642_v16  ;;  %v8679_v41 = vld [vmem:[%s9479_s13 + $0x58c] ss:$140 sps:$4 sm:$0xff]   ;;  %v8685_v45 = vld [vmem:[%s9479_s13 + $0x474] ss:$140 sps:$4 sm:$0xff]   ;;  %v8686_v46 = vld [vmem:[%s9479_s13 + $0x590] ss:$140 sps:$4 sm:$0xff]  }
  0x29   : > { %1962 = vmatprep.subr.bf16.mxu0 %v8643_v17  ;;  %2005 = vmatprep.subr.bf16.mxu1 %v8645_v18  ;;  %v8694_v47 = vld [vmem:[%s9479_s13 + $0x47c] ss:$140 sps:$4 sm:$0xff]   ;;  %v8692_v50 = vld [vmem:[%s9479_s13 + $0x478] ss:$140 sps:$4 sm:$0xff]   ;;  %v8698_v54 = vld [vmem:[%s9479_s13 + $0x360] ss:$140 sps:$4 sm:$0xff]  }
  0x2a   : > { %v8683_v48 = vld [vmem:[%s9479_s13 + $0x470] ss:$140 sps:$4 sm:$0xff]   ;;  %v8689_v52 = vld [vmem:[%s9479_s13 + $0x358] ss:$140 sps:$4 sm:$0xff]   ;;  %v8695_v56 = vld [vmem:[%s9479_s13 + $0x240] ss:$140 sps:$4 sm:$0xff]  }
  0x2b   : > { %v8691_v49 = vld [vmem:[%s9479_s13 + $0x35c] ss:$140 sps:$4 sm:$0xff]   ;;  %v8700_v51 = vld [vmem:[%s9479_s13 + $0x364] ss:$140 sps:$4 sm:$0xff]   ;;  %v8706_v55 = vld [vmem:[%s9479_s13 + $0x24c] ss:$140 sps:$4 sm:$0xff]  }
  0x2c   : > { %1963 = vmatpush1.bf16.msra.mxu0 %v8647_v19  ;;  %2006 = vmatpush1.bf16.msra.mxu1 %v8648_v20  ;;  %v8697_v53 = vld [vmem:[%s9479_s13 + $0x244] ss:$140 sps:$4 sm:$0xff]   ;;  %v8703_v57 = vld [vmem:[%s9479_s13 + $0x12c] ss:$140 sps:$4 sm:$0xff]   ;;  %v8704_v58 = vld [vmem:[%s9479_s13 + $0x248] ss:$140 sps:$4 sm:$0xff]  }
  0x2d   : > { %1964 = vmatprep.subr.bf16.mxu0 %v8649_v21  ;;  %2007 = vmatprep.subr.bf16.mxu1 %v8651_v22  ;;  %v8712_v59 = vld [vmem:[%s9479_s13 + $0x134] ss:$140 sps:$4 sm:$0xff]   ;;  %v8710_v62 = vld [vmem:[%s9479_s13 + $0x130] ss:$140 sps:$4 sm:$0xff]   ;;  %v8713_v2 = vld [vmem:[%s9479_s13 + $0x18] ss:$140 sps:$4 sm:$0xff]  }
  0x2e   : > { %v8701_v60 = vld [vmem:[%s9479_s13 + $0x128] ss:$140 sps:$4 sm:$0xff]   ;;  %v8707_v1 = vld [vmem:[%s9479_s13 + $0x10] ss:$140 sps:$4 sm:$0xff]   ;;  %v8718_v3 = vld [vmem:[%s9479_s13 + $0x7cc] ss:$140 sps:$4 sm:$0xff]  }
  0x2f   : > { %v8709_v61 = vld [vmem:[%s9479_s13 + $0x14] ss:$140 sps:$4 sm:$0xff]   ;;  %v8715_v63 = vld [vmem:[%s9479_s13 + $0x1c] ss:$140 sps:$4 sm:$0xff]   ;;  %v8728_v11 = vld [vmem:[%s9479_s13 + $0x6b8] ss:$140 sps:$4 sm:$0xff]  }
  0x30   : > { %1965 = vmatpush1.bf16.msra.mxu0 %v8653_v23  ;;  %2008 = vmatpush1.bf16.msra.mxu1 %v8654_v24  ;;  %v8724_v4 = vld [vmem:[%s9479_s13 + $0x7d4] ss:$140 sps:$4 sm:$0xff]   ;;  %v8722_v7 = vld [vmem:[%s9479_s13 + $0x7d0] ss:$140 sps:$4 sm:$0xff]   ;;  %v8725_v13 = vld [vmem:[%s9479_s13 + $0x598] ss:$140 sps:$4 sm:$0xff]  }
  0x31   : > { %1966 = vmatprep.subr.bf16.mxu0 %v8655_v25  ;;  %2009 = vmatprep.subr.bf16.mxu1 %v8657_v26  ;;  %v8716_v5 = vld [vmem:[%s9479_s13 + $0x7c8] ss:$140 sps:$4 sm:$0xff]   ;;  %v8719_v9 = vld [vmem:[%s9479_s13 + $0x6b0] ss:$140 sps:$4 sm:$0xff]   ;;  %v8734_v15 = vld [vmem:[%s9479_s13 + $0x5a0] ss:$140 sps:$4 sm:$0xff]  }
  0x32   : > { %v8721_v6 = vld [vmem:[%s9479_s13 + $0x6b4] ss:$140 sps:$4 sm:$0xff]   ;;  %v8730_v8 = vld [vmem:[%s9479_s13 + $0x6bc] ss:$140 sps:$4 sm:$0xff]   ;;  %v8736_v12 = vld [vmem:[%s9479_s13 + $0x5a4] ss:$140 sps:$4 sm:$0xff]  }
  0x33   : > { %v8727_v10 = vld [vmem:[%s9479_s13 + $0x59c] ss:$140 sps:$4 sm:$0xff]   ;;  %v8733_v14 = vld [vmem:[%s9479_s13 + $0x484] ss:$140 sps:$4 sm:$0xff]   ;;  %v8742_v16 = vld [vmem:[%s9479_s13 + $0x48c] ss:$140 sps:$4 sm:$0xff]  }
  0x34   : > { %1967 = vmatpush1.bf16.msra.mxu0 %v8659_v27  ;;  %2010 = vmatpush1.bf16.msra.mxu1 %v8660_v28  ;;  %v8731_v17 = vld [vmem:[%s9479_s13 + $0x480] ss:$140 sps:$4 sm:$0xff]   ;;  %v8740_v19 = vld [vmem:[%s9479_s13 + $0x488] ss:$140 sps:$4 sm:$0xff]   ;;  %v8746_v23 = vld [vmem:[%s9479_s13 + $0x370] ss:$140 sps:$4 sm:$0xff]  }
  0x35   : > { %1968 = vmatprep.subr.bf16.mxu0 %v8661_v29  ;;  %2011 = vmatprep.subr.bf16.mxu1 %v8663_v30  ;;  %v8739_v18 = vld [vmem:[%s9479_s13 + $0x36c] ss:$140 sps:$4 sm:$0xff]   ;;  %v8748_v20 = vld [vmem:[%s9479_s13 + $0x374] ss:$140 sps:$4 sm:$0xff]   ;;  %v8754_v24 = vld [vmem:[%s9479_s13 + $0x25c] ss:$140 sps:$4 sm:$0xff]  }
  0x36   : > { %v8737_v21 = vld [vmem:[%s9479_s13 + $0x368] ss:$140 sps:$4 sm:$0xff]   ;;  %v8743_v25 = vld [vmem:[%s9479_s13 + $0x250] ss:$140 sps:$4 sm:$0xff]   ;;  %v8752_v27 = vld [vmem:[%s9479_s13 + $0x258] ss:$140 sps:$4 sm:$0xff]  }
  0x37   : > { %v8745_v22 = vld [vmem:[%s9479_s13 + $0x254] ss:$140 sps:$4 sm:$0xff]   ;;  %v8751_v26 = vld [vmem:[%s9479_s13 + $0x13c] ss:$140 sps:$4 sm:$0xff]   ;;  %v8760_v28 = vld [vmem:[%s9479_s13 + $0x144] ss:$140 sps:$4 sm:$0xff]  }
  0x38   : > { %1969 = vmatpush1.bf16.msra.mxu0 %v8665_v31  ;;  %2012 = vmatpush1.bf16.msra.mxu1 %v8666_v32  ;;  %v8749_v29 = vld [vmem:[%s9479_s13 + $0x138] ss:$140 sps:$4 sm:$0xff]   ;;  %v8758_v31 = vld [vmem:[%s9479_s13 + $0x140] ss:$140 sps:$4 sm:$0xff]   ;;  %s12634_s15 = smov 65   ;;  %s12639_s16 = smov 66  }
  0x39   : > { %2040 = vmatprep.subr.bf16.mxu0 %v8670_v33  ;;  %2083 = vmatprep.subr.bf16.mxu1 %v8676_v34  ;;  %v8757_v30 = vld [vmem:[%s9479_s13 + $0x24] ss:$140 sps:$4 sm:$0xff]   ;;  %v8763_v32 = vld [vmem:[%s9479_s13 + $0x2c] ss:$140 sps:$4 sm:$0xff]   ;;  %v8761_v34 = vld [vmem:[%s9479_s13 + $0x28] ss:$140 sps:$4 sm:$0xff]  }
  0x3a   : > { %v8755_v33 = vld [vmem:[%s9479_s13 + $0x20] ss:$140 sps:$4 sm:$0xff]  }
  0x3b   : > { %1987 = vmatmul.mubr.bf16.vlgmr.msra.gmra.mxu0 %v9518_v35  ;;  %2030 = vmatmul.mubr.bf16.vlgmr.msra.gmra.mxu1 %v9518_v35 }
  0x3c   : > { %2041 = vmatpush1.bf16.msra.mxu0 %v8668_v36  ;;  %2084 = vmatpush1.bf16.msra.mxu1 %v8674_v38  ;;  %v8766_v36 = vld [vmem:[%s9479_s13 + $0x7dc] ss:$140 sps:$4 sm:$0xff]   ;;  %v8764_v38 = vld [vmem:[%s9479_s13 + $0x7d8] ss:$140 sps:$4 sm:$0xff]  }
  0x3d   : > { %2042 = vmatprep.subr.bf16.mxu0 %v8673_v37  ;;  %2085 = vmatprep.subr.bf16.mxu1 %v8682_v39  ;;  %v8772_v37 = vld [vmem:[%s9479_s13 + $0x7e4] ss:$140 sps:$4 sm:$0xff]   ;;  %v8770_v39 = vld [vmem:[%s9479_s13 + $0x7e0] ss:$140 sps:$4 sm:$0xff]  }
  0x3e   : > { %2072 = vmatprep.mubr.bf16.mxu0 %v9377_v0  ;;  %2115 = vmatprep.mubr.bf16.mxu1 %v9377_v0 }
  0x40   : > { %2043 = vmatpush1.bf16.msra.mxu0 %v8671_v40  ;;  %2086 = vmatpush1.bf16.msra.mxu1 %v8680_v42  ;;  %v8769_v40 = vld [vmem:[%s9479_s13 + $0x6c4] ss:$140 sps:$4 sm:$0xff]   ;;  %v8767_v42 = vld [vmem:[%s9479_s13 + $0x6c0] ss:$140 sps:$4 sm:$0xff]  }
  0x41   : > { %2044 = vmatprep.subr.bf16.mxu0 %v8679_v41  ;;  %2087 = vmatprep.subr.bf16.mxu1 %v8688_v43  ;;  %v8778_v41 = vld [vmem:[%s9479_s13 + $0x6cc] ss:$140 sps:$4 sm:$0xff]  }
  0x42   : > { %v8775_v43 = vld [vmem:[%s9479_s13 + $0x5ac] ss:$140 sps:$4 sm:$0xff]  }
  0x44   : > { %2045 = vmatpush1.bf16.msra.mxu0 %v8677_v44  ;;  %2088 = vmatpush1.bf16.msra.mxu1 %v8686_v46  ;;  %v8776_v44 = vld [vmem:[%s9479_s13 + $0x6c8] ss:$140 sps:$4 sm:$0xff]  }
  0x45   : > { %2046 = vmatprep.subr.bf16.mxu0 %v8685_v45  ;;  %2089 = vmatprep.subr.bf16.mxu1 %v8694_v47  ;;  %v8784_v45 = vld [vmem:[%s9479_s13 + $0x5b4] ss:$140 sps:$4 sm:$0xff]  }
  0x46   : > { %v8773_v46 = vld [vmem:[%s9479_s13 + $0x5a8] ss:$140 sps:$4 sm:$0xff]  }
  0x47   : > { %v8781_v47 = vld [vmem:[%s9479_s13 + $0x494] ss:$140 sps:$4 sm:$0xff]  }
  0x48   : > { %2047 = vmatpush1.bf16.msra.mxu0 %v8683_v48  ;;  %2090 = vmatpush1.bf16.msra.mxu1 %v8692_v50  ;;  %v8782_v48 = vld [vmem:[%s9479_s13 + $0x5b0] ss:$140 sps:$4 sm:$0xff]  }
  0x49   : > { %2048 = vmatprep.subr.bf16.mxu0 %v8691_v49  ;;  %2091 = vmatprep.subr.bf16.mxu1 %v8700_v51  ;;  %v8790_v49 = vld [vmem:[%s9479_s13 + $0x49c] ss:$140 sps:$4 sm:$0xff]  }
  0x4a   : > { %v8779_v50 = vld [vmem:[%s9479_s13 + $0x490] ss:$140 sps:$4 sm:$0xff]  }
  0x4b   : > { %v8787_v51 = vld [vmem:[%s9479_s13 + $0x37c] ss:$140 sps:$4 sm:$0xff]  }
  0x4c   : > { %2049 = vmatpush1.bf16.msra.mxu0 %v8689_v52  ;;  %2092 = vmatpush1.bf16.msra.mxu1 %v8698_v54  ;;  %v8788_v52 = vld [vmem:[%s9479_s13 + $0x498] ss:$140 sps:$4 sm:$0xff]  }
  0x4d   : > { %2050 = vmatprep.subr.bf16.mxu0 %v8697_v53  ;;  %2093 = vmatprep.subr.bf16.mxu1 %v8706_v55  ;;  %v8796_v53 = vld [vmem:[%s9479_s13 + $0x384] ss:$140 sps:$4 sm:$0xff]  }
  0x4e   : > { %v8785_v54 = vld [vmem:[%s9479_s13 + $0x378] ss:$140 sps:$4 sm:$0xff]  }
  0x4f   : > { %v8793_v55 = vld [vmem:[%s9479_s13 + $0x264] ss:$140 sps:$4 sm:$0xff]  }
  0x50   : > { %2051 = vmatpush1.bf16.msra.mxu0 %v8695_v56  ;;  %2094 = vmatpush1.bf16.msra.mxu1 %v8704_v58  ;;  %v8794_v56 = vld [vmem:[%s9479_s13 + $0x380] ss:$140 sps:$4 sm:$0xff]  }
  0x51   : > { %2052 = vmatprep.subr.bf16.mxu0 %v8703_v57  ;;  %2095 = vmatprep.subr.bf16.mxu1 %v8712_v59  ;;  %v8802_v57 = vld [vmem:[%s9479_s13 + $0x26c] ss:$140 sps:$4 sm:$0xff]  }
  0x52   : > { %v8791_v58 = vld [vmem:[%s9479_s13 + $0x260] ss:$140 sps:$4 sm:$0xff]  }
  0x53   : > { %v8799_v59 = vld [vmem:[%s9479_s13 + $0x14c] ss:$140 sps:$4 sm:$0xff]  }
  0x54   : > { %2053 = vmatpush1.bf16.msra.mxu0 %v8701_v60  ;;  %2096 = vmatpush1.bf16.msra.mxu1 %v8710_v62  ;;  %v8800_v60 = vld [vmem:[%s9479_s13 + $0x268] ss:$140 sps:$4 sm:$0xff]  }
  0x55   : > { %2054 = vmatprep.subr.bf16.mxu0 %v8709_v61  ;;  %2097 = vmatprep.subr.bf16.mxu1 %v8715_v63  ;;  %v8808_v61 = vld [vmem:[%s9479_s13 + $0x154] ss:$140 sps:$4 sm:$0xff]  }
  0x56   : > { %v8797_v62 = vld [vmem:[%s9479_s13 + $0x148] ss:$140 sps:$4 sm:$0xff]  }
  0x57   : > { %v8805_v63 = vld [vmem:[%s9479_s13 + $0x34] ss:$140 sps:$4 sm:$0xff]  }
  0x58   : > { %2055 = vmatpush1.bf16.msra.mxu0 %v8707_v1  ;;  %2098 = vmatpush1.bf16.msra.mxu1 %v8713_v2  ;;  %v8806_v1 = vld [vmem:[%s9479_s13 + $0x150] ss:$140 sps:$4 sm:$0xff]  }
  0x59   : > { %2126 = vmatprep.subr.bf16.mxu0 %v8718_v3  ;;  %2169 = vmatprep.subr.bf16.mxu1 %v8724_v4  ;;  %v8811_v2 = vld [vmem:[%s9479_s13 + $0x3c] ss:$140 sps:$4 sm:$0xff]   ;;  %v8809_v4 = vld [vmem:[%s9479_s13 + $0x38] ss:$140 sps:$4 sm:$0xff]  }
  0x5a   : > { %v8803_v3 = vld [vmem:[%s9479_s13 + $0x30] ss:$140 sps:$4 sm:$0xff]  }
  0x5b   : > { %2073 = vmatmul.mubr.bf16.vlgmr.msra.gmra.mxu0 %v9518_v35  ;;  %2116 = vmatmul.mubr.bf16.vlgmr.msra.gmra.mxu1 %v9518_v35 }
  0x5c   : > { %2127 = vmatpush1.bf16.msra.mxu0 %v8716_v5  ;;  %2170 = vmatpush1.bf16.msra.mxu1 %v8722_v7  ;;  %v8814_v5 = vld [vmem:[%s9479_s13 + $0x7ec] ss:$140 sps:$4 sm:$0xff]   ;;  %v8812_v7 = vld [vmem:[%s9479_s13 + $0x7e8] ss:$140 sps:$4 sm:$0xff]  }
  0x5d   : > { %2128 = vmatprep.subr.bf16.mxu0 %v8721_v6  ;;  %2171 = vmatprep.subr.bf16.mxu1 %v8730_v8  ;;  %v8838_v6 = vld [vmem:[%s9479_s13 + $0x7f4] ss:$140 sps:$4 sm:$0xff]  }
  0x5e   : > { %2158 = vmatprep.mubr.bf16.mxu0 %v9377_v0  ;;  %2201 = vmatprep.mubr.bf16.mxu1 %v9377_v0  ;;  %v8817_v8 = vld [vmem:[%s9479_s13 + $0x6d4] ss:$140 sps:$4 sm:$0xff]  }
  0x60   : > { %2129 = vmatpush1.bf16.msra.mxu0 %v8719_v9  ;;  %2172 = vmatpush1.bf16.msra.mxu1 %v8728_v11  ;;  %v8836_v9 = vld [vmem:[%s9479_s13 + $0x7f0] ss:$140 sps:$4 sm:$0xff]  }
  0x61   : > { %2130 = vmatprep.subr.bf16.mxu0 %v8727_v10  ;;  %2173 = vmatprep.subr.bf16.mxu1 %v8736_v12  ;;  %v8844_v10 = vld [vmem:[%s9479_s13 + $0x6dc] ss:$140 sps:$4 sm:$0xff]  }
  0x62   : > { %v8815_v11 = vld [vmem:[%s9479_s13 + $0x6d0] ss:$140 sps:$4 sm:$0xff]  }
  0x63   : > { %v8820_v12 = vld [vmem:[%s9479_s13 + $0x5bc] ss:$140 sps:$4 sm:$0xff]  }
  0x64   : > { %2131 = vmatpush1.bf16.msra.mxu0 %v8725_v13  ;;  %2174 = vmatpush1.bf16.msra.mxu1 %v8734_v15  ;;  %v8842_v13 = vld [vmem:[%s9479_s13 + $0x6d8] ss:$140 sps:$4 sm:$0xff]  }
  0x65   : > { %2132 = vmatprep.subr.bf16.mxu0 %v8733_v14  ;;  %2175 = vmatprep.subr.bf16.mxu1 %v8742_v16  ;;  %v8850_v14 = vld [vmem:[%s9479_s13 + $0x5c4] ss:$140 sps:$4 sm:$0xff]  }
  0x66   : > { %v8818_v15 = vld [vmem:[%s9479_s13 + $0x5b8] ss:$140 sps:$4 sm:$0xff]  }
  0x67   : > { %v8823_v16 = vld [vmem:[%s9479_s13 + $0x4a4] ss:$140 sps:$4 sm:$0xff]  }
  0x68   : > { %2133 = vmatpush1.bf16.msra.mxu0 %v8731_v17  ;;  %2176 = vmatpush1.bf16.msra.mxu1 %v8740_v19  ;;  %v8856_v17 = vld [vmem:[%s9479_s13 + $0x4ac] ss:$140 sps:$4 sm:$0xff]  }
  0x69   : > { %2134 = vmatprep.subr.bf16.mxu0 %v8739_v18  ;;  %2177 = vmatprep.subr.bf16.mxu1 %v8748_v20  ;;  %v8821_v18 = vld [vmem:[%s9479_s13 + $0x4a0] ss:$140 sps:$4 sm:$0xff]   ;;  %v8854_v20 = vld [vmem:[%s9479_s13 + $0x4a8] ss:$140 sps:$4 sm:$0xff]  }
  0x6a   : > { %v8826_v19 = vld [vmem:[%s9479_s13 + $0x38c] ss:$140 sps:$4 sm:$0xff]  }
  0x6c   : > { %2135 = vmatpush1.bf16.msra.mxu0 %v8737_v21  ;;  %2178 = vmatpush1.bf16.msra.mxu1 %v8746_v23  ;;  %v8862_v21 = vld [vmem:[%s9479_s13 + $0x394] ss:$140 sps:$4 sm:$0xff]  }
  0x6d   : > { %2136 = vmatprep.subr.bf16.mxu0 %v8745_v22  ;;  %2179 = vmatprep.subr.bf16.mxu1 %v8754_v24  ;;  %v8824_v22 = vld [vmem:[%s9479_s13 + $0x388] ss:$140 sps:$4 sm:$0xff]   ;;  %v8860_v24 = vld [vmem:[%s9479_s13 + $0x390] ss:$140 sps:$4 sm:$0xff]  }
  0x6e   : > { %v8829_v23 = vld [vmem:[%s9479_s13 + $0x274] ss:$140 sps:$4 sm:$0xff]  }
  0x70   : > { %2137 = vmatpush1.bf16.msra.mxu0 %v8743_v25  ;;  %2180 = vmatpush1.bf16.msra.mxu1 %v8752_v27  ;;  %v8868_v25 = vld [vmem:[%s9479_s13 + $0x27c] ss:$140 sps:$4 sm:$0xff]  }
  0x71   : > { %2138 = vmatprep.subr.bf16.mxu0 %v8751_v26  ;;  %2181 = vmatprep.subr.bf16.mxu1 %v8760_v28  ;;  %v8827_v26 = vld [vmem:[%s9479_s13 + $0x270] ss:$140 sps:$4 sm:$0xff]   ;;  %v8866_v28 = vld [vmem:[%s9479_s13 + $0x278] ss:$140 sps:$4 sm:$0xff]  }
  0x72   : > { %v8832_v27 = vld [vmem:[%s9479_s13 + $0x15c] ss:$140 sps:$4 sm:$0xff]  }
  0x74   : > { %2139 = vmatpush1.bf16.msra.mxu0 %v8749_v29  ;;  %2182 = vmatpush1.bf16.msra.mxu1 %v8758_v31  ;;  %v8874_v29 = vld [vmem:[%s9479_s13 + $0x164] ss:$140 sps:$4 sm:$0xff]  }
  0x75   : > { %2140 = vmatprep.subr.bf16.mxu0 %v8757_v30  ;;  %2183 = vmatprep.subr.bf16.mxu1 %v8763_v32  ;;  %v8830_v30 = vld [vmem:[%s9479_s13 + $0x158] ss:$140 sps:$4 sm:$0xff]   ;;  %v8872_v32 = vld [vmem:[%s9479_s13 + $0x160] ss:$140 sps:$4 sm:$0xff]  }
  0x76   : > { %v8835_v31 = vld [vmem:[%s9479_s13 + $0x44] ss:$140 sps:$4 sm:$0xff]  }
  0x78   : > { %2141 = vmatpush1.bf16.msra.mxu0 %v8755_v33  ;;  %2184 = vmatpush1.bf16.msra.mxu1 %v8761_v34  ;;  %v8880_v33 = vld [vmem:[%s9479_s13 + $0x4c] ss:$140 sps:$4 sm:$0xff]  }
  0x79   : > { %2212 = vmatprep.subr.bf16.mxu0 %v8766_v36  ;;  %2255 = vmatprep.subr.bf16.mxu1 %v8772_v37  ;;  %v8833_v34 = vld [vmem:[%s9479_s13 + $0x40] ss:$140 sps:$4 sm:$0xff]   ;;  %v8841_v36 = vld [vmem:[%s9479_s13 + $0x7fc] ss:$140 sps:$4 sm:$0xff]  }
  0x7a   : > { %v8878_v37 = vld [vmem:[%s9479_s13 + $0x48] ss:$140 sps:$4 sm:$0xff]  }
  0x7b   : > { %2159 = vmatmul.mubr.bf16.vlgmr.msra.gmra.mxu0 %v9518_v35  ;;  %2202 = vmatmul.mubr.bf16.vlgmr.msra.gmra.mxu1 %v9518_v35 }
  0x7c   : > { %2213 = vmatpush1.bf16.msra.mxu0 %v8764_v38  ;;  %2256 = vmatpush1.bf16.msra.mxu1 %v8770_v39  ;;  %v8839_v38 = vld [vmem:[%s9479_s13 + $0x7f8] ss:$140 sps:$4 sm:$0xff]  }
  0x7d   : > { %2214 = vmatprep.subr.bf16.mxu0 %v8769_v40  ;;  %2257 = vmatprep.subr.bf16.mxu1 %v8778_v41  ;;  %v8889_v39 = vld [vmem:[%s9479_s13 + $0x804] ss:$140 sps:$4 sm:$0xff]   ;;  %v8887_v41 = vld [vmem:[%s9479_s13 + $0x800] ss:$140 sps:$4 sm:$0xff]  }
  0x7e   : > { %2244 = vmatprep.mubr.bf16.mxu0 %v9377_v0  ;;  %2287 = vmatprep.mubr.bf16.mxu1 %v9377_v0  ;;  %v8847_v40 = vld [vmem:[%s9479_s13 + $0x6e4] ss:$140 sps:$4 sm:$0xff]  }
  0x80   : > { %2215 = vmatpush1.bf16.msra.mxu0 %v8767_v42  ;;  %2258 = vmatpush1.bf16.msra.mxu1 %v8776_v44  ;;  %v9670_v42 = vld [vmem:[%s12599_s1] sm:$0xff]   ;;  %v8895_v44 = vld [vmem:[%s9479_s13 + $0x6ec] ss:$140 sps:$4 sm:$0xff]  }
  0x81   : > { %2216 = vmatprep.subr.bf16.mxu0 %v8775_v43  ;;  %2259 = vmatprep.subr.bf16.mxu1 %v8784_v45  ;;  %v8845_v43 = vld [vmem:[%s9479_s13 + $0x6e0] ss:$140 sps:$4 sm:$0xff]  }
  0x82   : > { %v8853_v45 = vld [vmem:[%s9479_s13 + $0x5cc] ss:$140 sps:$4 sm:$0xff]  }
  0x84   : > { %2217 = vmatpush1.bf16.msra.mxu0 %v8773_v46  ;;  %2260 = vmatpush1.bf16.msra.mxu1 %v8782_v48  ;;  %v8893_v46 = vld [vmem:[%s9479_s13 + $0x6e8] ss:$140 sps:$4 sm:$0xff]  }
  0x85   : > { %2218 = vmatprep.subr.bf16.mxu0 %v8781_v47  ;;  %2261 = vmatprep.subr.bf16.mxu1 %v8790_v49  ;;  %v8851_v47 = vld [vmem:[%s9479_s13 + $0x5c8] ss:$140 sps:$4 sm:$0xff]  }
  0x86   : > { %v8901_v48 = vld [vmem:[%s9479_s13 + $0x5d4] ss:$140 sps:$4 sm:$0xff]  }
  0x87   : > { %v8859_v49 = vld [vmem:[%s9479_s13 + $0x4b4] ss:$140 sps:$4 sm:$0xff]  }
  0x88   : > { %2219 = vmatpush1.bf16.msra.mxu0 %v8779_v50  ;;  %2262 = vmatpush1.bf16.msra.mxu1 %v8788_v52  ;;  %v8899_v50 = vld [vmem:[%s9479_s13 + $0x5d0] ss:$140 sps:$4 sm:$0xff]  }
  0x89   : > { %2220 = vmatprep.subr.bf16.mxu0 %v8787_v51  ;;  %2263 = vmatprep.subr.bf16.mxu1 %v8796_v53  ;;  %v8857_v51 = vld [vmem:[%s9479_s13 + $0x4b0] ss:$140 sps:$4 sm:$0xff]  }
  0x8a   : > { %v8907_v52 = vld [vmem:[%s9479_s13 + $0x4bc] ss:$140 sps:$4 sm:$0xff]  }
  0x8b   : > { %v8865_v53 = vld [vmem:[%s9479_s13 + $0x39c] ss:$140 sps:$4 sm:$0xff]  }
  0x8c   : > { %2221 = vmatpush1.bf16.msra.mxu0 %v8785_v54  ;;  %2264 = vmatpush1.bf16.msra.mxu1 %v8794_v56  ;;  %v8905_v54 = vld [vmem:[%s9479_s13 + $0x4b8] ss:$140 sps:$4 sm:$0xff]  }
  0x8d   : > { %2222 = vmatprep.subr.bf16.mxu0 %v8793_v55  ;;  %2265 = vmatprep.subr.bf16.mxu1 %v8802_v57  ;;  %v8863_v55 = vld [vmem:[%s9479_s13 + $0x398] ss:$140 sps:$4 sm:$0xff]  }
  0x8e   : > { %v8913_v56 = vld [vmem:[%s9479_s13 + $0x3a4] ss:$140 sps:$4 sm:$0xff]  }
  0x8f   : > { %v8871_v57 = vld [vmem:[%s9479_s13 + $0x284] ss:$140 sps:$4 sm:$0xff]  }
  0x90   : > { %2223 = vmatpush1.bf16.msra.mxu0 %v8791_v58  ;;  %2266 = vmatpush1.bf16.msra.mxu1 %v8800_v60  ;;  %v8911_v58 = vld [vmem:[%s9479_s13 + $0x3a0] ss:$140 sps:$4 sm:$0xff]  }
  0x91   : > { %2224 = vmatprep.subr.bf16.mxu0 %v8799_v59  ;;  %2267 = vmatprep.subr.bf16.mxu1 %v8808_v61  ;;  %v8869_v59 = vld [vmem:[%s9479_s13 + $0x280] ss:$140 sps:$4 sm:$0xff]  }
  0x92   : > { %v8919_v60 = vld [vmem:[%s9479_s13 + $0x28c] ss:$140 sps:$4 sm:$0xff]  }
  0x93   : > { %v8877_v61 = vld [vmem:[%s9479_s13 + $0x16c] ss:$140 sps:$4 sm:$0xff]  }
  0x94   : > { %2225 = vmatpush1.bf16.msra.mxu0 %v8797_v62  ;;  %2268 = vmatpush1.bf16.msra.mxu1 %v8806_v1  ;;  %v8917_v62 = vld [vmem:[%s9479_s13 + $0x288] ss:$140 sps:$4 sm:$0xff]  }
  0x95   : > { %2226 = vmatprep.subr.bf16.mxu0 %v8805_v63  ;;  %2269 = vmatprep.subr.bf16.mxu1 %v8811_v2  ;;  %v8875_v63 = vld [vmem:[%s9479_s13 + $0x168] ss:$140 sps:$4 sm:$0xff]  }
  0x96   : > { %v8925_v1 = vld [vmem:[%s9479_s13 + $0x174] ss:$140 sps:$4 sm:$0xff]  }
  0x97   : > { %v8883_v2 = vld [vmem:[%s9479_s13 + $0x54] ss:$140 sps:$4 sm:$0xff]  }
  0x98   : > { %2227 = vmatpush1.bf16.msra.mxu0 %v8803_v3  ;;  %2270 = vmatpush1.bf16.msra.mxu1 %v8809_v4  ;;  %v8923_v3 = vld [vmem:[%s9479_s13 + $0x170] ss:$140 sps:$4 sm:$0xff]  }
  0x99   : > { %2298 = vmatprep.subr.bf16.mxu0 %v8814_v5  ;;  %2341 = vmatprep.subr.bf16.mxu1 %v8838_v6  ;;  %v8881_v4 = vld [vmem:[%s9479_s13 + $0x50] ss:$140 sps:$4 sm:$0xff]   ;;  %v8886_v6 = vld [vmem:[%s9479_s13 + $0x80c] ss:$140 sps:$4 sm:$0xff]  }
  0x9a   : > { %v8931_v5 = vld [vmem:[%s9479_s13 + $0x5c] ss:$140 sps:$4 sm:$0xff]  }
  0x9b   : > { %2245 = vmatmul.mubr.bf16.vlgmr.msra.gmra.mxu0 %v9518_v35  ;;  %2288 = vmatmul.mubr.bf16.vlgmr.msra.gmra.mxu1 %v9518_v35  ;;  %v8848_v35 = vld [vmem:[%s9479_s13 + $0x5c0] ss:$140 sps:$4 sm:$0xff]  }
  0x9c   : > { %2299 = vmatpush1.bf16.msra.mxu0 %v8812_v7  ;;  %2330 = vmatprep.mubr.bf16.mxu0 %v9377_v0  ;;  %v8929_v7 = vld [vmem:[%s9479_s13 + $0x58] ss:$140 sps:$4 sm:$0xff]  }
  0x9d   : > { %2300 = vmatprep.subr.bf16.mxu0 %v8817_v8  ;;  %2342 = vmatpush1.bf16.msra.mxu1 %v8836_v9  ;;  %v8884_v8 = vld [vmem:[%s9479_s13 + $0x808] ss:$140 sps:$4 sm:$0xff]  }
  0x9e   : > { %2343 = vmatprep.subr.bf16.mxu1 %v8844_v10  ;;  %2373 = vmatprep.mubr.bf16.mxu1 %v9377_v0  ;;  %v8937_v9 = vld [vmem:[%s9479_s13 + $0x814] ss:$140 sps:$4 sm:$0xff]  }
  0x9f   : > { %v8892_v10 = vld [vmem:[%s9479_s13 + $0x6f4] ss:$140 sps:$4 sm:$0xff]  }
  0xa0   : > { %2301 = vmatpush1.bf16.msra.mxu0 %v8815_v11  ;;  %v8935_v11 = vld [vmem:[%s9479_s13 + $0x810] ss:$140 sps:$4 sm:$0xff]  }
  0xa1   : > { %2302 = vmatprep.subr.bf16.mxu0 %v8820_v12  ;;  %2344 = vmatpush1.bf16.msra.mxu1 %v8842_v13  ;;  %v8890_v12 = vld [vmem:[%s9479_s13 + $0x6f0] ss:$140 sps:$4 sm:$0xff]  }
  0xa2   : > { %2345 = vmatprep.subr.bf16.mxu1 %v8850_v14  ;;  %v8943_v13 = vld [vmem:[%s9479_s13 + $0x6fc] ss:$140 sps:$4 sm:$0xff]  }
  0xa3   : > { %v8898_v14 = vld [vmem:[%s9479_s13 + $0x5dc] ss:$140 sps:$4 sm:$0xff]  }
  0xa4   : > { %2303 = vmatpush1.bf16.msra.mxu0 %v8818_v15  ;;  %v8941_v15 = vld [vmem:[%s9479_s13 + $0x6f8] ss:$140 sps:$4 sm:$0xff]  }
  0xa5   : > { %2304 = vmatprep.subr.bf16.mxu0 %v8823_v16  ;;  %2346 = vmatpush1.bf16.msra.mxu1 %v8848_v35  ;;  %v8896_v16 = vld [vmem:[%s9479_s13 + $0x5d8] ss:$140 sps:$4 sm:$0xff]  }
  0xa6   : > { %2347 = vmatprep.subr.bf16.mxu1 %v8856_v17  ;;  %v8949_v35 = vld [vmem:[%s9479_s13 + $0x5e4] ss:$140 sps:$4 sm:$0xff]  }
  0xa7   : > { %v8904_v17 = vld [vmem:[%s9479_s13 + $0x4c4] ss:$140 sps:$4 sm:$0xff]  }
  0xa8   : > { %2305 = vmatpush1.bf16.msra.mxu0 %v8821_v18  ;;  %v8947_v18 = vld [vmem:[%s9479_s13 + $0x5e0] ss:$140 sps:$4 sm:$0xff]  }
  0xa9   : > { %2306 = vmatprep.subr.bf16.mxu0 %v8826_v19  ;;  %2348 = vmatpush1.bf16.msra.mxu1 %v8854_v20  ;;  %v8902_v19 = vld [vmem:[%s9479_s13 + $0x4c0] ss:$140 sps:$4 sm:$0xff]  }
  0xaa   : > { %2349 = vmatprep.subr.bf16.mxu1 %v8862_v21  ;;  %v8955_v20 = vld [vmem:[%s9479_s13 + $0x4cc] ss:$140 sps:$4 sm:$0xff]  }
  0xab   : > { %v8910_v21 = vld [vmem:[%s9479_s13 + $0x3ac] ss:$140 sps:$4 sm:$0xff]  }
  0xac   : > { %2307 = vmatpush1.bf16.msra.mxu0 %v8824_v22  ;;  %v8953_v22 = vld [vmem:[%s9479_s13 + $0x4c8] ss:$140 sps:$4 sm:$0xff]  }
  0xad   : > { %2308 = vmatprep.subr.bf16.mxu0 %v8829_v23  ;;  %2350 = vmatpush1.bf16.msra.mxu1 %v8860_v24  ;;  %v8908_v23 = vld [vmem:[%s9479_s13 + $0x3a8] ss:$140 sps:$4 sm:$0xff]  }
  0xae   : > { %2351 = vmatprep.subr.bf16.mxu1 %v8868_v25  ;;  %v8961_v24 = vld [vmem:[%s9479_s13 + $0x3b4] ss:$140 sps:$4 sm:$0xff]  }
  0xaf   : > { %v8916_v25 = vld [vmem:[%s9479_s13 + $0x294] ss:$140 sps:$4 sm:$0xff]  }
  0xb0   : > { %2309 = vmatpush1.bf16.msra.mxu0 %v8827_v26  ;;  %v8959_v26 = vld [vmem:[%s9479_s13 + $0x3b0] ss:$140 sps:$4 sm:$0xff]  }
  0xb1   : > { %2310 = vmatprep.subr.bf16.mxu0 %v8832_v27  ;;  %2352 = vmatpush1.bf16.msra.mxu1 %v8866_v28  ;;  %v8967_v27 = vld [vmem:[%s9479_s13 + $0x29c] ss:$140 sps:$4 sm:$0xff]  }
  0xb2   : > { %2353 = vmatprep.subr.bf16.mxu1 %v8874_v29  ;;  %v8914_v28 = vld [vmem:[%s9479_s13 + $0x290] ss:$140 sps:$4 sm:$0xff]  }
  0xb3   : > { %v8922_v29 = vld [vmem:[%s9479_s13 + $0x17c] ss:$140 sps:$4 sm:$0xff]  }
  0xb4   : > { %2311 = vmatpush1.bf16.msra.mxu0 %v8830_v30  ;;  %v8965_v30 = vld [vmem:[%s9479_s13 + $0x298] ss:$140 sps:$4 sm:$0xff]  }
  0xb5   : > { %2312 = vmatprep.subr.bf16.mxu0 %v8835_v31  ;;  %2354 = vmatpush1.bf16.msra.mxu1 %v8872_v32  ;;  %v8920_v31 = vld [vmem:[%s9479_s13 + $0x178] ss:$140 sps:$4 sm:$0xff]  }
  0xb6   : > { %2355 = vmatprep.subr.bf16.mxu1 %v8880_v33  ;;  %v8973_v32 = vld [vmem:[%s9479_s13 + $0x184] ss:$140 sps:$4 sm:$0xff]  }
  0xb7   : > { %v8928_v33 = vld [vmem:[%s9479_s13 + $0x64] ss:$140 sps:$4 sm:$0xff]  }
  0xb8   : > { %2313 = vmatpush1.bf16.msra.mxu0 %v8833_v34  ;;  %v8971_v34 = vld [vmem:[%s9479_s13 + $0x180] ss:$140 sps:$4 sm:$0xff]  }
  0xb9   : > { %2384 = vmatprep.subr.bf16.mxu0 %v8841_v36  ;;  %2356 = vmatpush1.bf16.msra.mxu1 %v8878_v37  ;;  %v8926_v36 = vld [vmem:[%s9479_s13 + $0x60] ss:$140 sps:$4 sm:$0xff]  }
  0xba   : > { %2427 = vmatprep.subr.bf16.mxu1 %v8889_v39  ;;  %v8979_v37 = vld [vmem:[%s9479_s13 + $0x6c] ss:$140 sps:$4 sm:$0xff]   ;;  %v8977_v39 = vld [vmem:[%s9479_s13 + $0x68] ss:$140 sps:$4 sm:$0xff]  }
  0xbb   : > { %2331 = vmatmul.mubr.bf16.vlgmr.msra.gmra.mxu0 %v9670_v42 }
  0xbc   : > { %2385 = vmatpush1.bf16.msra.mxu0 %v8839_v38  ;;  %2374 = vmatmul.mubr.bf16.vlgmr.msra.gmra.mxu1 %v9670_v42  ;;  %v8934_v38 = vld [vmem:[%s9479_s13 + $0x81c] ss:$140 sps:$4 sm:$0xff]  }
  0xbd   : > { %2386 = vmatprep.subr.bf16.mxu0 %v8847_v40  ;;  %2416 = vmatprep.mubr.bf16.mxu0 %v9377_v0  ;;  %v8985_v40 = vld [vmem:[%s9479_s13 + $0x824] ss:$140 sps:$4 sm:$0xff]  }
  0xbe   : > { %2428 = vmatpush1.bf16.msra.mxu1 %v8887_v41  ;;  %2459 = vmatprep.mubr.bf16.mxu1 %v9377_v0  ;;  %v8932_v41 = vld [vmem:[%s9479_s13 + $0x818] ss:$140 sps:$4 sm:$0xff]  }
  0xbf   : > { %2429 = vmatprep.subr.bf16.mxu1 %v8895_v44 }
  0xc0   : > { %2387 = vmatpush1.bf16.msra.mxu0 %v8845_v43  ;;  %v8940_v43 = vld [vmem:[%s9479_s13 + $0x704] ss:$140 sps:$4 sm:$0xff]  }
  0xc1   : > { %2388 = vmatprep.subr.bf16.mxu0 %v8853_v45 }
  0xc2   : > { %2430 = vmatpush1.bf16.msra.mxu1 %v8893_v46  ;;  %v8983_v46 = vld [vmem:[%s9479_s13 + $0x820] ss:$140 sps:$4 sm:$0xff]  }
  0xc3   : > { %2431 = vmatprep.subr.bf16.mxu1 %v8901_v48  ;;  %v8991_v48 = vld [vmem:[%s9479_s13 + $0x70c] ss:$140 sps:$4 sm:$0xff]  }
  0xc4   : > { %2389 = vmatpush1.bf16.msra.mxu0 %v8851_v47  ;;  %v8938_v47 = vld [vmem:[%s9479_s13 + $0x700] ss:$140 sps:$4 sm:$0xff]  }
  0xc5   : > { %2390 = vmatprep.subr.bf16.mxu0 %v8859_v49  ;;  %v8946_v49 = vld [vmem:[%s9479_s13 + $0x5ec] ss:$140 sps:$4 sm:$0xff]  }
  0xc6   : > { %2432 = vmatpush1.bf16.msra.mxu1 %v8899_v50  ;;  %v8989_v50 = vld [vmem:[%s9479_s13 + $0x708] ss:$140 sps:$4 sm:$0xff]  }
  0xc7   : > { %2433 = vmatprep.subr.bf16.mxu1 %v8907_v52  ;;  %v8952_v52 = vld [vmem:[%s9479_s13 + $0x4d4] ss:$140 sps:$4 sm:$0xff]  }
  0xc8   : > { %2391 = vmatpush1.bf16.msra.mxu0 %v8857_v51  ;;  %v8944_v51 = vld [vmem:[%s9479_s13 + $0x5e8] ss:$140 sps:$4 sm:$0xff]  }
  0xc9   : > { %2392 = vmatprep.subr.bf16.mxu0 %v8865_v53  ;;  %v8997_v53 = vld [vmem:[%s9479_s13 + $0x5f4] ss:$140 sps:$4 sm:$0xff]  }
  0xca   : > { %2434 = vmatpush1.bf16.msra.mxu1 %v8905_v54  ;;  %v8950_v54 = vld [vmem:[%s9479_s13 + $0x4d0] ss:$140 sps:$4 sm:$0xff]  }
  0xcb   : > { %2435 = vmatprep.subr.bf16.mxu1 %v8913_v56 }
  0xcc   : > { %2393 = vmatpush1.bf16.msra.mxu0 %v8863_v55  ;;  %v8995_v55 = vld [vmem:[%s9479_s13 + $0x5f0] ss:$140 sps:$4 sm:$0xff]  }
  0xcd   : > { %2394 = vmatprep.subr.bf16.mxu0 %v8871_v57  ;;  %v8958_v57 = vld [vmem:[%s9479_s13 + $0x3bc] ss:$140 sps:$4 sm:$0xff]  }
  0xce   : > { %2436 = vmatpush1.bf16.msra.mxu1 %v8911_v58  ;;  %v9003_v58 = vld [vmem:[%s9479_s13 + $0x4dc] ss:$140 sps:$4 sm:$0xff]  }
  0xcf   : > { %2437 = vmatprep.subr.bf16.mxu1 %v8919_v60  ;;  %v9001_v60 = vld [vmem:[%s9479_s13 + $0x4d8] ss:$140 sps:$4 sm:$0xff]  }
  0xd0   : > { %2395 = vmatpush1.bf16.msra.mxu0 %v8869_v59  ;;  %v8956_v59 = vld [vmem:[%s9479_s13 + $0x3b8] ss:$140 sps:$4 sm:$0xff]  }
  0xd1   : > { %2396 = vmatprep.subr.bf16.mxu0 %v8877_v61  ;;  %v8964_v61 = vld [vmem:[%s9479_s13 + $0x2a4] ss:$140 sps:$4 sm:$0xff]  }
  0xd2   : > { %2438 = vmatpush1.bf16.msra.mxu1 %v8917_v62  ;;  %v9009_v62 = vld [vmem:[%s9479_s13 + $0x3c4] ss:$140 sps:$4 sm:$0xff]  }
  0xd3   : > { %2439 = vmatprep.subr.bf16.mxu1 %v8925_v1 }
  0xd4   : > { %2397 = vmatpush1.bf16.msra.mxu0 %v8875_v63  ;;  %v9007_v63 = vld [vmem:[%s9479_s13 + $0x3c0] ss:$140 sps:$4 sm:$0xff]  }
  0xd5   : > { %2398 = vmatprep.subr.bf16.mxu0 %v8883_v2  ;;  %v8962_v2 = vld [vmem:[%s9479_s13 + $0x2a0] ss:$140 sps:$4 sm:$0xff]  }
  0xd6   : > { %2440 = vmatpush1.bf16.msra.mxu1 %v8923_v3  ;;  %v8970_v3 = vld [vmem:[%s9479_s13 + $0x18c] ss:$140 sps:$4 sm:$0xff]  }
  0xd7   : > { %2441 = vmatprep.subr.bf16.mxu1 %v8931_v5  ;;  %v9013_v5 = vld [vmem:[%s9479_s13 + $0x2a8] ss:$140 sps:$4 sm:$0xff]  }
  0xd8   : > { %2399 = vmatpush1.bf16.msra.mxu0 %v8881_v4  ;;  %v9015_v4 = vld [vmem:[%s9479_s13 + $0x2ac] ss:$140 sps:$4 sm:$0xff]  }
  0xd9   : > { %2470 = vmatprep.subr.bf16.mxu0 %v8886_v6 }
  0xda   : > { %2442 = vmatpush1.bf16.msra.mxu1 %v8929_v7  ;;  %v8968_v7 = vld [vmem:[%s9479_s13 + $0x188] ss:$140 sps:$4 sm:$0xff]  }
  0xdb   : > { %2417 = vmatmul.mubr.bf16.vlgmr.msra.gmra.mxu0 %v9670_v42  ;;  %2513 = vmatprep.subr.bf16.mxu1 %v8937_v9 }
  0xdc   : > { %2471 = vmatpush1.bf16.msra.mxu0 %v8884_v8  ;;  %2502 = vmatprep.mubr.bf16.mxu0 %v9377_v0  ;;  %v8976_v8 = vld [vmem:[%s9479_s13 + $0x74] ss:$140 sps:$4 sm:$0xff]  }
  0xdd   : > { %2472 = vmatprep.subr.bf16.mxu0 %v8892_v10  ;;  %2460 = vmatmul.mubr.bf16.vlgmr.msra.gmra.mxu1 %v9670_v42 }
  0xde   : > { %2514 = vmatpush1.bf16.msra.mxu1 %v8935_v11  ;;  %2545 = vmatprep.mubr.bf16.mxu1 %v9377_v0  ;;  %v9021_v11 = vld [vmem:[%s9479_s13 + $0x194] ss:$140 sps:$4 sm:$0xff]  }
  0xdf   : > { %2515 = vmatprep.subr.bf16.mxu1 %v8943_v13 }
  0xe0   : > { %2473 = vmatpush1.bf16.msra.mxu0 %v8890_v12  ;;  %v9019_v12 = vld [vmem:[%s9479_s13 + $0x190] ss:$140 sps:$4 sm:$0xff]  }
  0xe1   : > { %2474 = vmatprep.subr.bf16.mxu0 %v8898_v14 }
  0xe2   : > { %2516 = vmatpush1.bf16.msra.mxu1 %v8941_v15  ;;  %v8974_v15 = vld [vmem:[%s9479_s13 + $0x70] ss:$140 sps:$4 sm:$0xff]  }
  0xe3   : > { %2517 = vmatprep.subr.bf16.mxu1 %v8949_v35  ;;  %v9025_v35 = vld [vmem:[%s9479_s13 + $0x78] ss:$140 sps:$4 sm:$0xff]  }
  0xe4   : > { %2475 = vmatpush1.bf16.msra.mxu0 %v8896_v16  ;;  %v8982_v16 = vld [vmem:[%s9479_s13 + $0x82c] ss:$140 sps:$4 sm:$0xff]  }
  0xe5   : > { %2476 = vmatprep.subr.bf16.mxu0 %v8904_v17  ;;  %v9027_v17 = vld [vmem:[%s9479_s13 + $0x7c] ss:$140 sps:$4 sm:$0xff]  }
  0xe6   : > { %2518 = vmatpush1.bf16.msra.mxu1 %v8947_v18  ;;  %v8980_v18 = vld [vmem:[%s9479_s13 + $0x828] ss:$140 sps:$4 sm:$0xff]  }
  0xe7   : > { %2519 = vmatprep.subr.bf16.mxu1 %v8955_v20  ;;  %v8988_v20 = vld [vmem:[%s9479_s13 + $0x714] ss:$140 sps:$4 sm:$0xff]  }
  0xe8   : > { %2477 = vmatpush1.bf16.msra.mxu0 %v8902_v19 }
  0xe9   : > { %2478 = vmatprep.subr.bf16.mxu0 %v8910_v21  ;;  %v12611_v21 = vmov 0.0  }
  0xea   : > { %2520 = vmatpush1.bf16.msra.mxu1 %v8953_v22  ;;  %v9031_v22 = vld [vmem:[%s9479_s13 + $0x830] ss:$140 sps:$4 sm:$0xff]  }
  0xeb   : > { %2521 = vmatprep.subr.bf16.mxu1 %v8961_v24 }
  0xec   : > { %2479 = vmatpush1.bf16.msra.mxu0 %v8908_v23  ;;  %v8986_v23 = vld [vmem:[%s9479_s13 + $0x710] ss:$140 sps:$4 sm:$0xff]  }
  0xed   : > { %2480 = vmatprep.subr.bf16.mxu0 %v8916_v25  ;;  %v8994_v25 = vld [vmem:[%s9479_s13 + $0x5fc] ss:$140 sps:$4 sm:$0xff]  }
  0xee   : > { %2522 = vmatpush1.bf16.msra.mxu1 %v8959_v26  ;;  %v8992_v26 = vld [vmem:[%s9479_s13 + $0x5f8] ss:$140 sps:$4 sm:$0xff]  }
  0xef   : > { %2523 = vmatprep.subr.bf16.mxu1 %v8967_v27 }
  0xf0   : > { %2481 = vmatpush1.bf16.msra.mxu0 %v8914_v28  ;;  %v9034_v28 = vld [vmem:[%s9479_s13 + $0x718] ss:$140 sps:$4 sm:$0xff]  }
  0xf1   : > { %2482 = vmatprep.subr.bf16.mxu0 %v8922_v29 }
  0xf2   : > { %2524 = vmatpush1.bf16.msra.mxu1 %v8965_v30 }
  0xf3   : > { %2525 = vmatprep.subr.bf16.mxu1 %v8973_v32  ;;  %v9006_v32 = vld [vmem:[%s9479_s13 + $0x3cc] ss:$140 sps:$4 sm:$0xff]  }
  0xf4   : > { %2483 = vmatpush1.bf16.msra.mxu0 %v8920_v31  ;;  %v8998_v31 = vld [vmem:[%s9479_s13 + $0x4e0] ss:$140 sps:$4 sm:$0xff]  }
  0xf5   : > { %2484 = vmatprep.subr.bf16.mxu0 %v8928_v33  ;;  %v9037_v33 = vld [vmem:[%s9479_s13 + $0x600] ss:$140 sps:$4 sm:$0xff]  }
  0xf6   : > { %2526 = vmatpush1.bf16.msra.mxu1 %v8971_v34 }
  0xf7   : > { %2527 = vmatprep.subr.bf16.mxu1 %v8979_v37  ;;  %v9004_v37 = vld [vmem:[%s9479_s13 + $0x3c8] ss:$140 sps:$4 sm:$0xff]  }
  0xf8   : > { %2485 = vmatpush1.bf16.msra.mxu0 %v8926_v36 }
  0xf9   : > { %2556 = vmatprep.subr.bf16.mxu0 %v8934_v38  ;;  %v9012_v38 = vld [vmem:[%s9479_s13 + $0x2b4] ss:$140 sps:$4 sm:$0xff]  }
  0xfa   : > { %2528 = vmatpush1.bf16.msra.mxu1 %v8977_v39  ;;  %v9040_v39 = vld [vmem:[%s9479_s13 + $0x4e8] ss:$140 sps:$4 sm:$0xff]  }
  0xfb   : > { %v9743_v44 = vpop.f32.mrf.mxu0  ;;  %v9745_v45 = vpop.f32.mrf.mxu1  ;;  %2503 = vmatmul.mubr.bf16.vlgmr.msra.gmra.mxu0 %v9670_v42  ;;  %2599 = vmatprep.subr.bf16.mxu1 %v8985_v40  ;;  %v9010_v40 = vld [vmem:[%s9479_s13 + $0x2b0] ss:$140 sps:$4 sm:$0xff]  }
  0xfc   : > { %3633 = vrot.lane.b32.xlu1 %v9745_v45, %s12605_s18  ;;  %2760 = vrot.lane.b32.xlu0 %v9743_v44, %s12618_s19  ;;  %v2898_v56 = vrot.slane %v9743_v44, 1  ;;  %v3105_v9 = vrot.slane %v9743_v44, 2  ;;  %v3313_v13 = vrot.slane %v9743_v44, 3  ;;  %v2900_v27 = vrot.slane %v9745_v45, 1 }
  0xfd   : > { %2557 = vmatpush1.bf16.msra.mxu0 %v8932_v41  ;;  %2588 = vmatprep.mubr.bf16.mxu0 %v9377_v0  ;;  %v9784_v1 = vpop.f32.mrf.mxu0  ;;  %v9794_v6 = vpop.f32.mrf.mxu1  ;;  %v3107_v29 = vrot.slane %v9745_v45, 2  ;;  %v3315_v34 = vrot.slane %v9745_v45, 3  ;;  %v9018_v41 = vld [vmem:[%s9479_s13 + $0x19c] ss:$140 sps:$4 sm:$0xff]  }
  0xfe   : > { %2558 = vmatprep.subr.bf16.mxu0 %v8940_v43  ;;  %2546 = vmatmul.mubr.bf16.vlgmr.msra.gmra.mxu1 %v9670_v42  ;;  %v2899_v10 = vrot.slane %v9784_v1, 1  ;;  %v3106_v14 = vrot.slane %v9784_v1, 2  ;;  %v3314_v19 = vrot.slane %v9784_v1, 3  ;;  %v3108_v30 = vrot.slane %v9794_v6, 2  ;;  %v9043_v43 = vld [vmem:[%s9479_s13 + $0x3d0] ss:$140 sps:$4 sm:$0xff]  }
  0xff   : > { %2600 = vmatpush1.bf16.msra.mxu1 %v8983_v46  ;;  %2631 = vmatprep.mubr.bf16.mxu1 %v9377_v0  ;;  %v1992_v24 = vpop.f32.mrf.mxu0  ;;  %v3316_v36 = vrot.slane %v9794_v6, 3 }
 0x100   : > { %3843 = vrot.lane.b32.xlu1 %v9743_v44, %s9380_s20  ;;  %3629 = vrot.lane.b32.xlu0 %v9743_v44, %s12605_s18 }
 0x101   : > { %2559 = vmatpush1.bf16.msra.mxu0 %v8938_v47  ;;  %2601 = vmatprep.subr.bf16.mxu1 %v8991_v48  ;;  %v1994_v46 = vpop.f32.mrf.mxu0  ;;  %v9016_v47 = vld [vmem:[%s9479_s13 + $0x198] ss:$140 sps:$4 sm:$0xff]   ;;  %v2035_v48 = vpop.f32.mrf.mxu1 }
 0x102   : > { %2560 = vmatprep.subr.bf16.mxu0 %v8946_v49  ;;  %v9024_v49 = vld [vmem:[%s9479_s13 + $0x84] ss:$140 sps:$4 sm:$0xff]  }
 0x103   : > { %2602 = vmatpush1.bf16.msra.mxu1 %v8989_v50  ;;  %v9046_v50 = vld [vmem:[%s9479_s13 + $0x2b8] ss:$140 sps:$4 sm:$0xff]  }
 0x104   : > { %4061 = vrot.lane.b32.xlu1 %v9745_v45, %s9381_s26  ;;  %3847 = vrot.lane.b32.xlu0 %v9745_v45, %s9380_s20 }
 0x105   : > { %2561 = vmatpush1.bf16.msra.mxu0 %v8944_v51  ;;  %2603 = vmatprep.subr.bf16.mxu1 %v8997_v53  ;;  %v2037_v53 = vpop.f32.mrf.mxu1 }
 0x106   : > { %2562 = vmatprep.subr.bf16.mxu0 %v8952_v52  ;;  %v9022_v52 = vld [vmem:[%s9479_s13 + $0x80] ss:$140 sps:$4 sm:$0xff]  }
 0x107   : > { %2604 = vmatpush1.bf16.msra.mxu1 %v8995_v55  ;;  %v9049_v55 = vld [vmem:[%s9479_s13 + $0x1a0] ss:$140 sps:$4 sm:$0xff]  }
 0x108   : > { %4057 = vrot.lane.b32.xlu0 %v9743_v44, %s9381_s26  ;;  %2932 = vrot.lane.b32.xlu1 %v2898_v56, %s12613_s28 }
 0x109   : > { %2563 = vmatpush1.bf16.msra.mxu0 %v8950_v54  ;;  %2605 = vmatprep.subr.bf16.mxu1 %v9003_v58  ;;  %v9028_v54 = vld [vmem:[%s12600_s2 + $0x78] sm:$0xff]   ;;  %v9051_v58 = vld [vmem:[%s9479_s13 + $0x88] ss:$140 sps:$4 sm:$0xff]  }
 0x10a   : > { %2564 = vmatprep.subr.bf16.mxu0 %v8958_v57  ;;  %v9029_v57 = vld [vmem:[%s12600_s2 + $0x38] sm:$0xff]  }
 0x10b   : > { %2606 = vmatpush1.bf16.msra.mxu1 %v9001_v60  ;;  %v9052_v60 = vld [vmem:[%s12600_s2 + $0xf8] sm:$0xff]  }
 0x10c   : > { %2764 = vrot.lane.b32.xlu0 %v9745_v45, %s12618_s19  ;;  %3845 = vrot.lane.b32.xlu1 %v9784_v1, %s9380_s20 }
 0x10d   : > { %2565 = vmatpush1.bf16.msra.mxu0 %v8956_v59  ;;  %2607 = vmatprep.subr.bf16.mxu1 %v9009_v62  ;;  %v9030_v59 = vld [vmem:[%s12600_s2 + $0x70] sm:$0xff]  }
 0x10e   : > { %2566 = vmatprep.subr.bf16.mxu0 %v8964_v61  ;;  %v9314_v61 = vld [vmem:[%s12599_s1] sm:$0xff]   ;;  %v9032_v62 = vld [vmem:[%s12600_s2 + $0x30] sm:$0xff]  }
 0x10f   : > { %2608 = vmatpush1.bf16.msra.mxu1 %v9007_v63  ;;  %v9053_v63 = vld [vmem:[%s12600_s2 + $0xb8] sm:$0xff]  }
 0x110   : > { %2766 = vrot.lane.b32.xlu1 %v9794_v6, %s12618_s19  ;;  %2762 = vrot.lane.b32.xlu0 %v9784_v1, %s12618_s19 }
 0x111   : > { %2567 = vmatpush1.bf16.msra.mxu0 %v8962_v2  ;;  %2609 = vmatprep.subr.bf16.mxu1 %v9015_v4  ;;  %v9033_v2 = vld [vmem:[%s12600_s2 + $0x68] sm:$0xff]  }
 0x112   : > { %2568 = vmatprep.subr.bf16.mxu0 %v8970_v3  ;;  %v9054_v3 = vld [vmem:[%s12600_s2 + $0xf0] sm:$0xff]   ;;  %v9035_v4 = vld [vmem:[%s12600_s2 + $0x28] sm:$0xff]  }
 0x113   : > { %2610 = vmatpush1.bf16.msra.mxu1 %v9013_v5  ;;  %v9055_v5 = vld [vmem:[%s12600_s2 + $0xb0] sm:$0xff]  }
 0x114   : > { %3139 = vrot.lane.b32.xlu0 %v3105_v9, %s12609_s29  ;;  %2934 = vrot.lane.b32.xlu1 %v2899_v10, %s12613_s28  ;;  %v9038_v9 = vld [vmem:[%s12600_s2 + $0x20] sm:$0xff]   ;;  %v9057_v10 = vld [vmem:[%s12600_s2 + $0xa8] sm:$0xff]  }
 0x115   : > { %2569 = vmatpush1.bf16.msra.mxu0 %v8968_v7  ;;  %2611 = vmatprep.subr.bf16.mxu1 %v9021_v11  ;;  %v9036_v7 = vld [vmem:[%s12600_s2 + $0x60] sm:$0xff]   ;;  %v9039_v11 = vld [vmem:[%s12600_s2 + $0x58] sm:$0xff]  }
 0x116   : > { %2570 = vmatprep.subr.bf16.mxu0 %v8976_v8  ;;  %v9056_v8 = vld [vmem:[%s12600_s2 + $0xe8] sm:$0xff]  }
 0x117   : > { %2612 = vmatpush1.bf16.msra.mxu1 %v9019_v12  ;;  %v9058_v12 = vld [vmem:[%s12600_s2 + $0xe0] sm:$0xff]  }
 0x118   : > { %3348 = vrot.lane.b32.xlu0 %v3313_v13, %s12607_s9  ;;  %3141 = vrot.lane.b32.xlu1 %v3106_v14, %s12609_s29  ;;  %v9041_v13 = vld [vmem:[%s12600_s2 + $0x18] sm:$0xff]   ;;  %v9059_v14 = vld [vmem:[%s12600_s2 + $0xa0] sm:$0xff]  }
 0x119   : > { %2571 = vmatpush1.bf16.msra.mxu0 %v8974_v15  ;;  %2613 = vmatprep.subr.bf16.mxu1 %v9027_v17 }
 0x11a   : > { %2642 = vmatprep.subr.bf16.mxu0 %v8982_v16  ;;  %v9042_v16 = vld [vmem:[%s12600_s2 + $0x50] sm:$0xff]  }
 0x11b   : > { %2614 = vmatpush1.bf16.msra.mxu1 %v9025_v35  ;;  %v9867_v51 = vpop.f32.mrf.mxu0  ;;  %v9879_v56 = vpop.f32.mrf.mxu1  ;;  %v9060_v35 = vld [vmem:[%s12600_s2 + $0xd8] sm:$0xff]  }
 0x11c   : > { %3631 = vrot.lane.b32.xlu0 %v9784_v1, %s12605_s18  ;;  %3350 = vrot.lane.b32.xlu1 %v3314_v19, %s12607_s9  ;;  %v2902_v15 = vrot.slane %v9867_v51, 1  ;;  %v9061_v19 = vld [vmem:[%s12600_s2 + $0x98] sm:$0xff]  }
 0x11d   : > { %2589 = vmatmul.mubr.bf16.vlgmr.msra.gmra.mxu0 %v9670_v42  ;;  %8530 = vmatprep.subr.bf16.mxu1 %v12611_v21  ;;  %v9964_v17 = vpop.f32.mrf.mxu0 }
 0x11e   : > { %2643 = vmatpush1.bf16.msra.mxu0 %v8980_v18  ;;  %2674 = vmatprep.mubr.bf16.mxu0 %v9377_v0  ;;  %v2901_v0 = vrot.slane %v9794_v6, 1  ;;  %v9044_v18 = vld [vmem:[%s12600_s2 + $0x10] sm:$0xff]  }
 0x11f   : > { %2644 = vmatprep.subr.bf16.mxu0 %v8988_v20  ;;  %2632 = vmatmul.mubr.bf16.vlgmr.msra.gmra.mxu1 %v9670_v42  ;;  %v9000_v42 = vld [vmem:[%s9479_s13 + $0x4e4] ss:$140 sps:$4 sm:$0xff]   ;;  %v3109_v20 = vrot.slane %v9867_v51, 2  ;;  %s12642_s13 = smov 67  }
 0x120   : > { %4059 = vrot.lane.b32.xlu0 %v9784_v1, %s9381_s26  ;;  %4305 = vrot.lane.b32.xlu1 %v1992_v24, %s12622_s10  ;;  %v9982_v24 = vpop.f32.mrf.mxu1 }
 0x121   : > { %8531 = vmatpush3.bf16.msra.mxu1 %v9031_v22  ;;  %8546 = vmatprep.mubr.msk.bf16.mxu1 %vm9387_vm0, %v12611_v21  ;;  %v9045_v22 = vld [vmem:[%s12600_s2 + $0x48] sm:$0xff]  }
 0x122   : > { %2645 = vmatpush1.bf16.msra.mxu0 %v8986_v23  ;;  %8532 = vmatprep.subr.bf16.mxu1 %v12611_v21  ;;  %v9062_v23 = vld [vmem:[%s12600_s2 + $0xd0] sm:$0xff]  }
 0x123   : > { %2646 = vmatprep.subr.bf16.mxu0 %v8994_v25  ;;  %v3317_v25 = vrot.slane %v9867_v51, 3 }
 0x124   : > { %2936 = vrot.lane.b32.xlu0 %v2900_v27, %s12613_s28  ;;  %2938 = vrot.lane.b32.xlu1 %v2901_v0, %s12613_s28  ;;  %v9063_v27 = vld [vmem:[%s12600_s2 + $0x90] sm:$0xff]   ;;  %v2903_v0 = vrot.slane %v9964_v17, 1 }
 0x125   : > { %8533 = vmatpush3.bf16.msra.mxu1 %v9034_v28  ;;  %v9048_v28 = vld [vmem:[%s12600_s2 + $0x40] sm:$0xff]  }
 0x126   : > { %2647 = vmatpush1.bf16.msra.mxu0 %v8992_v26  ;;  %8534 = vmatprep.subr.bf16.mxu1 %v12611_v21  ;;  %v9047_v26 = vld [vmem:[%s12600_s2 + $0x8] sm:$0xff]  }
 0x127   : > { %2648 = vmatprep.subr.bf16.mxu0 %v9000_v42  ;;  %v9064_v42 = vld [vmem:[%s12600_s2 + $0xc8] sm:$0xff]  }
 0x128   : > { %3143 = vrot.lane.b32.xlu0 %v3107_v29, %s12609_s29  ;;  %3145 = vrot.lane.b32.xlu1 %v3108_v30, %s12609_s29  ;;  %v9050_v29 = vld [vmem:[%s12600_s2] sm:$0xff]   ;;  %v9065_v30 = vld [vmem:[%s12600_s2 + $0x88] sm:$0xff]  }
 0x129   : > { %8535 = vmatpush3.bf16.msra.mxu1 %v9037_v33  ;;  %v9067_v33 = vld [vmem:[%s12600_s2 + $0x178] sm:$0xff]  }
 0x12a   : > { %2649 = vmatpush1.bf16.msra.mxu0 %v8998_v31  ;;  %8536 = vmatprep.subr.bf16.mxu1 %v12611_v21  ;;  %v3110_v31 = vrot.slane %v9964_v17, 2 }
 0x12b   : > { %2650 = vmatprep.subr.bf16.mxu0 %v9006_v32  ;;  %v9066_v32 = vld [vmem:[%s12600_s2 + $0xc0] sm:$0xff]  }
 0x12c   : > { %3352 = vrot.lane.b32.xlu0 %v3315_v34, %s12607_s9  ;;  %3354 = vrot.lane.b32.xlu1 %v3316_v36, %s12607_s9  ;;  %v3318_v34 = vrot.slane %v9964_v17, 3  ;;  %v9068_v36 = vld [vmem:[%s12600_s2 + $0x80] sm:$0xff]  }
 0x12d   : > { %8537 = vmatpush3.bf16.msra.mxu1 %v9040_v39  ;;  %v2121_v39 = vpop.f32.mrf.mxu1 }
 0x12e   : > { %2651 = vmatpush1.bf16.msra.mxu0 %v9004_v37  ;;  %8538 = vmatprep.subr.bf16.mxu1 %v12611_v21  ;;  %v2078_v37 = vpop.f32.mrf.mxu0 }
 0x12f   : > { %2652 = vmatprep.subr.bf16.mxu0 %v9012_v38  ;;  %v2904_v38 = vrot.slane %v9879_v56, 1 }
 0x130   : > { %3635 = vrot.lane.b32.xlu0 %v9794_v6, %s12605_s18  ;;  %4307 = vrot.lane.b32.xlu1 %v1994_v46, %s12622_s10  ;;  %v3112_v46 = vrot.slane %v9982_v24, 2 }
 0x131   : > { %8539 = vmatpush3.bf16.msra.mxu1 %v9043_v43  ;;  %v3319_v43 = vrot.slane %v9879_v56, 3 }
 0x132   : > { %2653 = vmatpush1.bf16.msra.mxu0 %v9010_v40  ;;  %8540 = vmatprep.subr.bf16.mxu1 %v12611_v21  ;;  %v3111_v40 = vrot.slane %v9879_v56, 2 }
 0x133   : > { %2654 = vmatprep.subr.bf16.mxu0 %v9018_v41  ;;  %v2905_v41 = vrot.slane %v9982_v24, 1 }
 0x134   : > { %3849 = vrot.lane.b32.xlu0 %v9794_v6, %s9380_s20  ;;  %3637 = vrot.lane.b32.xlu1 %v9867_v51, %s12605_s18 }
 0x135   : > { %8541 = vmatpush3.bf16.msra.mxu1 %v9046_v50  ;;  %v2080_v50 = vpop.f32.mrf.mxu0 }
 0x136   : > { %2655 = vmatpush1.bf16.msra.mxu0 %v9016_v47  ;;  %8542 = vmatprep.subr.bf16.mxu1 %v12611_v21  ;;  %v3320_v47 = vrot.slane %v9982_v24, 3 }
 0x137   : > { %2656 = vmatprep.subr.bf16.mxu0 %v9024_v49 }
 0x138   : > { %4063 = vrot.lane.b32.xlu0 %v9794_v6, %s9381_s26  ;;  %3641 = vrot.lane.b32.xlu1 %v9879_v56, %s12605_s18  ;;  %s12627_s18 = smov 127  }
 0x139   : > { %8543 = vmatpush3.bf16.msra.mxu1 %v9049_v55  ;;  %v2123_v55 = vpop.f32.mrf.mxu1 }
 0x13a   : > { %2657 = vmatpush1.bf16.msra.mxu0 %v9022_v52  ;;  %8544 = vmatprep.subr.bf16.mxu1 %v12611_v21 }
 0x13b   : > { %8149 = vmatprep.subr.bf16.mxu0 %v9028_v54  ;;  %v10052_v54 = vpop.f32.mrf.mxu0 }
 0x13c   : > { %4309 = vrot.lane.b32.xlu0 %v2035_v48, %s12622_s10  ;;  %3851 = vrot.lane.b32.xlu1 %v9867_v51, %s9380_s20 }
 0x13d   : > { %2675 = vmatmul.mubr.bf16.vlgmr.msra.gmra.mxu0 %v9314_v61  ;;  %8545 = vmatpush3.bf16.msra.mxu1 %v9051_v58 }
 0x13e   : > { %8150 = vmatpush3.bf16.msra.mxu0 %v9029_v57  ;;  %8171 = vmatprep.subr.bf16.mxu1 %v9052_v60  ;;  %v9084_v60 = vld [vmem:[%s12600_s2 + $0x1f8] sm:$0xff]  }
 0x13f   : > { %8151 = vmatprep.subr.bf16.mxu0 %v9030_v59  ;;  %v10062_v59 = vpop.f32.mrf.mxu1 }
 0x140   : > { %4311 = vrot.lane.b32.xlu0 %v2037_v53, %s12622_s10  ;;  %3855 = vrot.lane.b32.xlu1 %v9879_v56, %s9380_s20 }
 0x141   : > { %8547 = vmatmul.mubr.bf16.vlgmr.msra.gmra.mxu1 %v9314_v61 }
 0x142   : > { %8152 = vmatpush3.bf16.msra.mxu0 %v9032_v62  ;;  %8172 = vmatpush3.bf16.msra.mxu1 %v9053_v63 }
 0x143   : > { %8153 = vmatprep.subr.bf16.mxu0 %v9033_v2  ;;  %8173 = vmatprep.subr.bf16.mxu1 %v9054_v3 }
 0x144   : > { %4065 = vrot.lane.b32.xlu1 %v9867_v51, %s9381_s26  ;;  %2768 = vrot.lane.b32.xlu0 %v9867_v51, %s12618_s19 }
 0x146   : > { %8154 = vmatpush3.bf16.msra.mxu0 %v9035_v4  ;;  %8174 = vmatpush3.bf16.msra.mxu1 %v9055_v5 }
 0x147   : > { %8155 = vmatprep.subr.bf16.mxu0 %v9036_v7  ;;  %8175 = vmatprep.subr.bf16.mxu1 %v9056_v8  ;;  %v2906_v8 = vrot.slane %v10052_v54, 1 }
 0x148   : > { %4069 = vrot.lane.b32.xlu1 %v9879_v56, %s9381_s26  ;;  %2772 = vrot.lane.b32.xlu0 %v9879_v56, %s12618_s19 }
 0x14a   : > { %8156 = vmatpush3.bf16.msra.mxu0 %v9038_v9  ;;  %8176 = vmatpush3.bf16.msra.mxu1 %v9057_v10 }
 0x14b   : > { %8157 = vmatprep.subr.bf16.mxu0 %v9039_v11  ;;  %8177 = vmatprep.subr.bf16.mxu1 %v9058_v12  ;;  %v10100_v11 = vpop.f32.mrf.mxu0  ;;  %v3113_v12 = vrot.slane %v10052_v54, 2 }
 0x14c   : > { %2940 = vrot.lane.b32.xlu0 %v2902_v15, %s12613_s28  ;;  %2770 = vrot.lane.b32.xlu1 %v9964_v17, %s12618_s19  ;;  %v10108_v15 = vpop.f32.mrf.mxu1 }
 0x14e   : > { %8158 = vmatpush3.bf16.msra.mxu0 %v9041_v13  ;;  %8178 = vmatpush3.bf16.msra.mxu1 %v9059_v14 }
 0x14f   : > { %8159 = vmatprep.subr.bf16.mxu0 %v9042_v16  ;;  %8179 = vmatprep.subr.bf16.mxu1 %v9060_v35  ;;  %v3321_v16 = vrot.slane %v10052_v54, 3  ;;  %v2907_v35 = vrot.slane %v10100_v11, 1 }
 0x150   : > { %3147 = vrot.lane.b32.xlu0 %v3109_v20, %s12609_s29  ;;  %2774 = vrot.lane.b32.xlu1 %v9982_v24, %s12618_s19  ;;  %v3114_v20 = vrot.slane %v10100_v11, 2 }
 0x152   : > { %8160 = vmatpush3.bf16.msra.mxu0 %v9044_v18  ;;  %8180 = vmatpush3.bf16.msra.mxu1 %v9061_v19 }
 0x153   : > { %8161 = vmatprep.subr.bf16.mxu0 %v9045_v22  ;;  %8181 = vmatprep.subr.bf16.mxu1 %v9062_v23 }
 0x154   : > { %3356 = vrot.lane.b32.xlu0 %v3317_v25, %s12626_s11  ;;  %2942 = vrot.lane.b32.xlu1 %v2903_v0, %s12613_s28 }
 0x156   : > { %8162 = vmatpush3.bf16.msra.mxu0 %v9047_v26  ;;  %8182 = vmatpush3.bf16.msra.mxu1 %v9063_v27  ;;  %v3322_v27 = vrot.slane %v10100_v11, 3 }
 0x157   : > { %8163 = vmatprep.subr.bf16.mxu0 %v9048_v28  ;;  %8183 = vmatprep.subr.bf16.mxu1 %v9064_v42 }
 0x158   : > { %3639 = vrot.lane.b32.xlu0 %v9964_v17, %s12627_s18  ;;  %3149 = vrot.lane.b32.xlu1 %v3110_v31, %s12609_s29 }
 0x15a   : > { %8164 = vmatpush3.bf16.msra.mxu0 %v9050_v29  ;;  %8184 = vmatpush3.bf16.msra.mxu1 %v9065_v30 }
 0x15b   : > { %8185 = vmatprep.subr.bf16.mxu1 %v9066_v32  ;;  %8193 = vmatprep.subr.bf16.mxu0 %v9067_v33 }
 0x15c   : > { %3853 = vrot.lane.b32.xlu0 %v9964_v17, %s9380_s20  ;;  %3358 = vrot.lane.b32.xlu1 %v3318_v34, %s12626_s11 }
 0x15e   : > { %8186 = vmatpush3.bf16.msra.mxu1 %v9068_v36 }
 0x15f   : > { %8215 = vmatprep.subr.bf16.mxu1 %v9084_v60  ;;  %v2908_v60 = vrot.slane %v10062_v59, 1 }
 0x160   : > { %4067 = vrot.lane.b32.xlu0 %v9964_v17, %s9381_s26  ;;  %4313 = vrot.lane.b32.xlu1 %v2078_v37, %s12622_s10 }
 0x164   : > { %2944 = vrot.lane.b32.xlu0 %v2904_v38, %s12613_s28  ;;  %4317 = vrot.lane.b32.xlu1 %v2121_v39, %s12622_s10 }
 0x168   : > { %3151 = vrot.lane.b32.xlu0 %v3111_v40, %s12609_s29  ;;  %2946 = vrot.lane.b32.xlu1 %v2905_v41, %s12613_s28 }
 0x16c   : > { %3360 = vrot.lane.b32.xlu0 %v3319_v43, %s12626_s11  ;;  %3153 = vrot.lane.b32.xlu1 %v3112_v46, %s12609_s29  ;;  %v2164_v46 = vpop.f32.mrf.mxu0 }
 0x16e   : > { %v10041_v48 = vpop.permute.xlu1 %3633  ;;  %v10043_v49 = vpop.permute.xlu0 %2760 }
 0x16f   : > { %v2897_v0 = vsel %vm2828_vm1, 0.0, %v10043_v49 }
 0x170   : > { %3643 = vrot.lane.b32.xlu0 %v9982_v24, %s12627_s18  ;;  %3362 = vrot.lane.b32.xlu1 %v3320_v47, %s12626_s11 }
 0x172   : > { %v10048_v52 = vpop.permute.xlu1 %3843  ;;  %v10050_v53 = vpop.permute.xlu0 %3629 }
 0x174   : > { %3857 = vrot.lane.b32.xlu0 %v9982_v24, %s9380_s20  ;;  %3645 = vrot.lane.b32.xlu1 %v10052_v54, %s12627_s18 }
 0x176   : > { %v10058_v57 = vpop.permute.xlu1 %4061  ;;  %v10060_v58 = vpop.permute.xlu0 %3847 }
 0x178   : > { %4071 = vrot.lane.b32.xlu0 %v9982_v24, %s9381_s26  ;;  %3649 = vrot.lane.b32.xlu1 %v10062_v59, %s12627_s18 }
 0x17a   : > { %v10071_v61 = vpop.permute.xlu0 %4057  ;;  %v2933_v62 = vpop.permute.xlu1 %2932 }
 0x17b   : > { %v3069_v26 = vsel %vm3000_vm2, 0.0, %v2933_v62 }
 0x17c   : > { %4315 = vrot.lane.b32.xlu0 %v2080_v50, %s12622_s10  ;;  %3859 = vrot.lane.b32.xlu1 %v10052_v54, %s9380_s20  ;;  %v3070_v33 = vadd.f32 %v3069_v26, %v2897_v0  ;;  %v3525_v50 = vrot.slane %v9784_v1, 4 }
 0x17e   : > { %v10076_v63 = vpop.permute.xlu0 %2764  ;;  %v10078_v2 = vpop.permute.xlu1 %3845 }
 0x180   : > { %4319 = vrot.lane.b32.xlu0 %v2123_v55, %s12622_s10  ;;  %3863 = vrot.lane.b32.xlu1 %v10062_v59, %s9380_s20 }
 0x182   : > { %v10083_v3 = vpop.permute.xlu1 %2766  ;;  %v10085_v4 = vpop.permute.xlu0 %2762 }
 0x183   : > { %v2829_v28 = vsel %vm2828_vm1, %v10043_v49, %v10085_v4  ;;  %v3524_v49 = vrot.slane %v9743_v44, 4 }
 0x184   : > { %4073 = vrot.lane.b32.xlu1 %v10052_v54, %s9381_s26  ;;  %2776 = vrot.lane.b32.xlu0 %v10052_v54, %s12618_s19 }
 0x186   : > { %v3140_v5 = vpop.permute.xlu0 %3139  ;;  %v10091_v7 = vpop.permute.xlu1 %2934 }
 0x187   : > { %v3001_v25 = vsel %vm3000_vm2, %v2933_v62, %v10091_v7  ;;  %v3276_v42 = vsel %vm3207_vm3, 0.0, %v3140_v5  ;;  %v3914_v62 = vsel %vm3913_vm6, %v10048_v52, %v10078_v2  ;;  %v2909_v52 = vrot.slane %v10108_v15, 1 }
 0x188   : > { %4077 = vrot.lane.b32.xlu1 %v10062_v59, %s9381_s26  ;;  %2780 = vrot.lane.b32.xlu0 %v10062_v59, %s12618_s19  ;;  %v3071_v30 = vadd.f32 %v3001_v25, %v2829_v28  ;;  %v3277_v38 = vadd.f32 %v3276_v42, %v3070_v33 }
 0x18a   : > { %v3349_v9 = vpop.permute.xlu0 %3348  ;;  %v10098_v10 = vpop.permute.xlu1 %3141 }
 0x18b   : > { %v3208_v29 = vsel %vm3207_vm3, %v3140_v5, %v10098_v10  ;;  %v3488_v36 = vsel %vm3418_vm4, 0.0, %v3349_v9 }
 0x18c   : > { %2948 = vrot.lane.b32.xlu0 %v2906_v8, %s12613_s28  ;;  %2778 = vrot.lane.b32.xlu1 %v10100_v11, %s12618_s19  ;;  %v3278_v37 = vadd.f32 %v3208_v29, %v3071_v30  ;;  %v3489_v47 = vadd.f32 %v3488_v36, %v3277_v38  ;;  %v2207_v8 = vpop.f32.mrf.mxu1 }
 0x18e   : > { %v3632_v13 = vpop.permute.xlu0 %3631  ;;  %v10106_v14 = vpop.permute.xlu1 %3350 }
 0x18f   : > { %v3419_v34 = vsel %vm3418_vm4, %v3349_v9, %v10106_v14  ;;  %v3700_v39 = vsel %vm3699_vm5, %v10050_v53, %v3632_v13  ;;  %v3701_v53 = vsel %vm3699_vm5, %v3632_v13, %v10041_v48  ;;  %v3594_v9 = vadd.f32 %v3524_v49, %v3489_v47 }
 0x190   : > { %3155 = vrot.lane.b32.xlu0 %v3113_v12, %s12609_s29  ;;  %2782 = vrot.lane.b32.xlu1 %v10108_v15, %s12618_s19  ;;  %v3490_v40 = vadd.f32 %v3419_v34, %v3278_v37  ;;  %v3738_v55 = vrot.slane %v3700_v39, 5  ;;  %v3739_v12 = vrot.slane %v3701_v53, 5  ;;  %v3115_v13 = vrot.slane %v10062_v59, 2  ;;  %v9069_v53 = vld [vmem:[%s12600_s2 + $0x138] sm:$0xff]  }
 0x192   : > { %v10115_v18 = vpop.permute.xlu0 %4059  ;;  %v10117_v19 = vpop.permute.xlu1 %4305  ;;  %v3595_v5 = vadd.f32 %v3525_v50, %v3490_v40  ;;  %v3324_v40 = vrot.slane %v10108_v15, 3 }
 0x193   : > { %v4128_v26 = vsel %vm4127_vm7, %v10071_v61, %v10115_v18  ;;  %v4129_v29 = vsel %vm4127_vm7, %v10115_v18, %v10058_v57  ;;  %v3116_v61 = vrot.slane %v10108_v15, 2 }
 0x194   : > { %3364 = vrot.lane.b32.xlu0 %v3321_v16, %s12626_s11  ;;  %2950 = vrot.lane.b32.xlu1 %v2907_v35, %s12613_s28  ;;  %v3915_v16 = vsel %vm3913_vm6, %v10078_v2, %v10060_v58  ;;  %v3952_v35 = vrot.slane %v3914_v62, 6  ;;  %v3809_v25 = vadd.f32 %v3739_v12, %v3595_v5  ;;  %v3323_v2 = vrot.slane %v10062_v59, 3  ;;  %v9071_v12 = vld [vmem:[%s12600_s2 + $0x130] sm:$0xff]  }
 0x195   : > { %v3953_v28 = vrot.slane %v3915_v16, 6  ;;  %v4165_v30 = vrot.slane %v4128_v26, 7  ;;  %v4166_v37 = vrot.slane %v4129_v29, 7  ;;  %v9072_v16 = vld [vmem:[%s12600_s2 + $0x168] sm:$0xff]  }
 0x196   : > { %v10122_v22 = vpop.permute.xlu0 %2936  ;;  %v10124_v23 = vpop.permute.xlu1 %2938 }
 0x197   : > { %v4023_v33 = vadd.f32 %v3953_v28, %v3809_v25  ;;  %v9073_v28 = vld [vmem:[%s12600_s2 + $0x128] sm:$0xff]  }
 0x198   : > { %3647 = vrot.lane.b32.xlu0 %v10100_v11, %s12627_s18  ;;  %3157 = vrot.lane.b32.xlu1 %v3114_v20, %s12609_s29  ;;  %v3808_v20 = vadd.f32 %v3738_v55, %v3594_v9  ;;  %v2166_v55 = vpop.f32.mrf.mxu0 }
 0x199   : > { %v4236_v18 = vadd.f32 %v4166_v37, %v4023_v33  ;;  %v3002_v33 = vsel %vm3000_vm2, %v10091_v7, %v10122_v22  ;;  %v9077_v37 = vld [vmem:[%s12600_s2 + $0x118] sm:$0xff]   ;;  %v2830_v7 = vsel %vm2828_vm1, %v10085_v4, %v10076_v63 }
 0x19a   : > { %v10141_v31 = vpop.permute.xlu0 %3143  ;;  %v10143_v32 = vpop.permute.xlu1 %3145  ;;  %v4022_v42 = vadd.f32 %v3952_v35, %v3808_v20 }
 0x19b   : > { %v10219_v9 = vpop.f32.mrf.mxu0 }
 0x19c   : > { %3861 = vrot.lane.b32.xlu0 %v10100_v11, %s9380_s20  ;;  %3366 = vrot.lane.b32.xlu1 %v3322_v27, %s12626_s11  ;;  %v4235_v39 = vadd.f32 %v4165_v30, %v4022_v42  ;;  %v9075_v30 = vld [vmem:[%s12600_s2 + $0x120] sm:$0xff]  }
 0x19e   : > { %v10153_v41 = vpop.permute.xlu0 %3352  ;;  %v10155_v43 = vpop.permute.xlu1 %3354 }
 0x1a0   : > { %4075 = vrot.lane.b32.xlu0 %v10100_v11, %s9381_s26  ;;  %4321 = vrot.lane.b32.xlu1 %v2164_v46, %s12622_s10 }
 0x1a2   : > { %v10168_v44 = vpop.permute.xlu0 %3635  ;;  %v4308_v1 = vpop.permute.xlu1 %4307 }
 0x1a3   : > { %v4376_v38 = vsel %vm4375_vm8, %v10117_v19, %v4308_v1 }
 0x1a4   : > { %2952 = vrot.lane.b32.xlu0 %v2908_v60, %s12613_s28  ;;  %4325 = vrot.lane.b32.xlu1 %v2207_v8, %s12622_s10  ;;  %v4445_v49 = vadd.f32 %v4376_v38, %v4235_v39  ;;  %v9070_v60 = vld [vmem:[%s12600_s2 + $0x170] sm:$0xff]   ;;  %v3003_v38 = vsel %vm3000_vm2, %v10122_v22, %v10124_v23  ;;  %v2831_v22 = vsel %vm2828_vm1, %v10076_v63, %v10083_v3 }
 0x1a5   : > { %v9078_v39 = vld [vmem:[%s12600_s2 + $0x150] sm:$0xff]   ;;  %v3073_v4 = vadd.f32 %v3003_v38, %v2831_v22 }
 0x1a6   : > { %v10180_v27 = vpop.permute.xlu0 %3849  ;;  %v10182_v0 = vpop.permute.xlu1 %3637  ;;  %v4480_v8 = vpack.c.bf16 %v4445_v49, %v4445_v49 }
 0x1a8   : > { %3159 = vrot.lane.b32.xlu0 %v3115_v13, %s12609_s29  ;;  %2954 = vrot.lane.b32.xlu1 %v2909_v52, %s12613_s28  ;;  %v2209_v13 = vpop.f32.mrf.mxu1 }
 0x1aa   : > { %v10191_v34 = vpop.permute.xlu0 %4063  ;;  %v10193_v36 = vpop.permute.xlu1 %3641 }
 0x1ab   : > { %v10235_v52 = vpop.f32.mrf.mxu1 }
 0x1ac   : > { %3368 = vrot.lane.b32.xlu0 %v3323_v2, %s12626_s11  ;;  %3161 = vrot.lane.b32.xlu1 %v3116_v61, %s12609_s29  ;;  %v9074_v2 = vld [vmem:[%s12600_s2 + $0x160] sm:$0xff]   ;;  %v9076_v61 = vld [vmem:[%s12600_s2 + $0x158] sm:$0xff]  }
 0x1ae   : > { %v10200_v46 = vpop.permute.xlu0 %4309  ;;  %v10202_v47 = vpop.permute.xlu1 %3851 }
 0x1af   : > { %v4377_v50 = vsel %vm4375_vm8, %v4308_v1, %v10200_v46 }
 0x1b0   : > { %3651 = vrot.lane.b32.xlu0 %v10108_v15, %s12627_s18  ;;  %3370 = vrot.lane.b32.xlu1 %v3324_v40, %s12626_s11  ;;  %v4446_v19 = vadd.f32 %v4377_v50, %v4236_v18  ;;  %v3209_v40 = vsel %vm3207_vm3, %v10098_v10, %v10141_v31  ;;  %v3072_v50 = vadd.f32 %v3002_v33, %v2830_v7 }
 0x1b1   : > { %v3420_v10 = vsel %vm3418_vm4, %v10106_v14, %v10153_v41  ;;  %v9079_v14 = vld [vmem:[%s12600_s2 + $0x110] sm:$0xff]  }
 0x1b2   : > { %v10215_v62 = vpop.permute.xlu0 %4311  ;;  %v10217_v5 = vpop.permute.xlu1 %3855  ;;  %v4481_v1 = vpack.c.bf16 %v4446_v19, %v4446_v19  ;;  %v3210_v19 = vsel %vm3207_vm3, %v10141_v31, %v10143_v32  ;;  %v3702_v31 = vsel %vm3699_vm5, %v10041_v48, %v10168_v44 }
 0x1b3   : > { %v3280_v63 = vadd.f32 %v3210_v19, %v3073_v4 }
 0x1b4   : > { %6736 = vmatprep.mubr.bf16.mxu0 %v4481_v1  ;;  %3865 = vrot.lane.b32.xlu0 %v10108_v15, %s9380_s20 }
 0x1b5   : > { %3653 = vrot.lane.b32.xlu1 %v10219_v9, %s12627_s18  ;;  %6737 = vmatmul.mubr.bf16.vlgmr.msra.gmra.mxu0 %v4480_v8 }
 0x1b6   : > { %v10231_v35 = vpop.permute.xlu1 %4065  ;;  %v10233_v20 = vpop.permute.xlu0 %2768  ;;  %8194 = vmatpush3.bf16.msra.mxu0 %v9069_v53  ;;  %v3279_v53 = vadd.f32 %v3209_v40, %v3072_v50 }
 0x1b7   : > { %8195 = vmatprep.subr.bf16.mxu0 %v9070_v60  ;;  %v10350_v40 = vpop.f32.mrf.mxu0 }
 0x1b8   : > { %4079 = vrot.lane.b32.xlu0 %v10108_v15, %s9381_s26  ;;  %v3491_v8 = vadd.f32 %v3420_v10, %v3279_v53  ;;  %v3117_v53 = vrot.slane %v10219_v9, 2 }
 0x1b9   : > { %3657 = vrot.lane.b32.xlu1 %v10235_v52, %s12627_s18 }
 0x1ba   : > { %v10241_v25 = vpop.permute.xlu1 %4069  ;;  %v10243_v26 = vpop.permute.xlu0 %2772  ;;  %8196 = vmatpush3.bf16.msra.mxu0 %v9071_v12  ;;  %v9080_v12 = vld [vmem:[%s12600_s2 + $0x148] sm:$0xff]  }
 0x1bb   : > { %8197 = vmatprep.subr.bf16.mxu0 %v9072_v16  ;;  %v3526_v16 = vrot.slane %v9745_v45, 4  ;;  %v2910_v45 = vrot.slane %v10219_v9, 1 }
 0x1bc   : > { %4323 = vrot.lane.b32.xlu0 %v2166_v55, %s12622_s10  ;;  %v3421_v55 = vsel %vm3418_vm4, %v10153_v41, %v10155_v43  ;;  %v3703_v41 = vsel %vm3699_vm5, %v10168_v44, %v10182_v0  ;;  %v3917_v44 = vsel %vm3913_vm6, %v10180_v27, %v10202_v47 }
 0x1bd   : > { %3867 = vrot.lane.b32.xlu1 %v10219_v9, %s9380_s20  ;;  %v3492_v48 = vadd.f32 %v3421_v55, %v3280_v63  ;;  %v3955_v7 = vrot.slane %v3917_v44, 6  ;;  %v9083_v55 = vld [vmem:[%s12600_s2 + $0x100] sm:$0xff]  }
 0x1be   : > { %v10254_v42 = vpop.permute.xlu0 %2940  ;;  %v10256_v29 = vpop.permute.xlu1 %2770  ;;  %8198 = vmatpush3.bf16.msra.mxu0 %v9073_v28  ;;  %v3740_v28 = vrot.slane %v3702_v31, 5  ;;  %v9099_v31 = vld [vmem:[%s12600_s2 + $0x278] sm:$0xff]  }
 0x1bf   : > { %8199 = vmatprep.subr.bf16.mxu0 %v9074_v2  ;;  %v3527_v2 = vrot.slane %v9794_v6, 4  ;;  %v4131_v6 = vsel %vm4127_vm7, %v10191_v34, %v10231_v35 }
 0x1c0   : > { %4327 = vrot.lane.b32.xlu0 %v2209_v13, %s12622_s10  ;;  %v3916_v13 = vsel %vm3913_vm6, %v10060_v58, %v10180_v27  ;;  %v4130_v58 = vsel %vm4127_vm7, %v10058_v57, %v10191_v34  ;;  %v9081_v27 = vld [vmem:[%s12600_s2 + $0x108] sm:$0xff]   ;;  %v9082_v57 = vld [vmem:[%s12600_s2 + $0x140] sm:$0xff]   ;;  %v4168_v4 = vrot.slane %v4131_v6, 7  ;;  %v3118_v6 = vrot.slane %v10350_v40, 2 }
 0x1c1   : > { %3871 = vrot.lane.b32.xlu1 %v10235_v52, %s9380_s20  ;;  %v3954_v38 = vrot.slane %v3916_v13, 6  ;;  %v4167_v50 = vrot.slane %v4130_v58, 7 }
 0x1c2   : > { %v10285_v18 = vpop.permute.xlu0 %3147  ;;  %v10287_v49 = vpop.permute.xlu1 %2774  ;;  %8200 = vmatpush3.bf16.msra.mxu0 %v9075_v30  ;;  %v3741_v30 = vrot.slane %v3703_v41, 5 }
 0x1c3   : > { %8201 = vmatprep.subr.bf16.mxu0 %v9076_v61  ;;  %v10369_v41 = vpop.f32.mrf.mxu1 }
 0x1c4   : > { %2784 = vrot.lane.b32.xlu0 %v10219_v9, %s12618_s19 }
 0x1c5   : > { %4081 = vrot.lane.b32.xlu1 %v10219_v9, %s9381_s26 }
 0x1c6   : > { %v10308_v60 = vpop.permute.xlu0 %3356  ;;  %v10310_v1 = vpop.permute.xlu1 %2942  ;;  %8202 = vmatpush3.bf16.msra.mxu0 %v9077_v37  ;;  %v3596_v37 = vadd.f32 %v3526_v16, %v3491_v8  ;;  %v4378_v8 = vsel %vm4375_vm8, %v10200_v46, %v10215_v62 }
 0x1c7   : > { %8203 = vmatprep.subr.bf16.mxu0 %v9078_v39  ;;  %v3597_v39 = vadd.f32 %v3527_v2, %v3492_v48  ;;  %v2911_v2 = vrot.slane %v10350_v40, 1 }
 0x1c8   : > { %2788 = vrot.lane.b32.xlu0 %v10235_v52, %s12618_s19  ;;  %v3810_v22 = vadd.f32 %v3740_v28, %v3596_v37  ;;  %v3325_v28 = vrot.slane %v10219_v9, 3  ;;  %v9085_v37 = vld [vmem:[%s12600_s2 + $0x1b8] sm:$0xff]  }
 0x1c9   : > { %4085 = vrot.lane.b32.xlu1 %v10235_v52, %s9381_s26  ;;  %v3811_v19 = vadd.f32 %v3741_v30, %v3597_v39  ;;  %v2833_v39 = vsel %vm2828_vm1, %v10233_v20, %v10256_v29 }
 0x1ca   : > { %v10336_v61 = vpop.permute.xlu0 %3639  ;;  %v10338_v33 = vpop.permute.xlu1 %3149  ;;  %8204 = vmatpush3.bf16.msra.mxu0 %v9079_v14  ;;  %v4024_v63 = vadd.f32 %v3954_v38, %v3810_v22 }
 0x1cb   : > { %8205 = vmatprep.subr.bf16.mxu0 %v9080_v12  ;;  %v4025_v14 = vadd.f32 %v3955_v7, %v3811_v19  ;;  %v3212_v7 = vsel %vm3207_vm3, %v10285_v18, %v10338_v33 }
 0x1cc   : > { %2956 = vrot.lane.b32.xlu0 %v2910_v45, %s12613_s28  ;;  %v4237_v12 = vadd.f32 %v4167_v50, %v4024_v63  ;;  %v3326_v63 = vrot.slane %v10350_v40, 3 }
 0x1cd   : > { %2786 = vrot.lane.b32.xlu1 %v10350_v40, %s12618_s19  ;;  %v4238_v48 = vadd.f32 %v4168_v4, %v4025_v14  ;;  %v9087_v4 = vld [vmem:[%s12600_s2 + $0x1b0] sm:$0xff]  }
 0x1ce   : > { %v10355_v10 = vpop.permute.xlu0 %3853  ;;  %v10357_v34 = vpop.permute.xlu1 %3358  ;;  %8206 = vmatpush3.bf16.msra.mxu0 %v9081_v27  ;;  %v4447_v44 = vadd.f32 %v4378_v8, %v4237_v12  ;;  %v3004_v8 = vsel %vm3000_vm2, %v10124_v23, %v10254_v42  ;;  %v3211_v23 = vsel %vm3207_vm3, %v10143_v32, %v10285_v18  ;;  %v3705_v32 = vsel %vm3699_vm5, %v10336_v61, %v10193_v36 }
 0x1cf   : > { %8207 = vmatprep.subr.bf16.mxu0 %v9082_v57  ;;  %v9086_v57 = vld [vmem:[%s12600_s2 + $0x1f0] sm:$0xff]  }
 0x1d0   : > { %3163 = vrot.lane.b32.xlu0 %v3117_v53, %s12609_s29  ;;  %v4482_v38 = vpack.c.bf16 %v4447_v44, %v4447_v44  ;;  %v2293_v53 = vpop.f32.mrf.mxu1  ;;  %v9089_v44 = vld [vmem:[%s12600_s2 + $0x1a8] sm:$0xff]  }
 0x1d1   : > { %2790 = vrot.lane.b32.xlu1 %v10369_v41, %s12618_s19 }
 0x1d2   : > { %v10374_v13 = vpop.permute.xlu0 %4067  ;;  %v10376_v16 = vpop.permute.xlu1 %4313  ;;  %8208 = vmatpush3.bf16.msra.mxu0 %v9083_v55  ;;  %v3423_v55 = vsel %vm3418_vm4, %v10308_v60, %v10357_v34 }
 0x1d3   : > { %v4379_v46 = vsel %vm4375_vm8, %v10215_v62, %v10376_v16  ;;  %8237 = vmatprep.subr.bf16.mxu0 %v9099_v31  ;;  %v3005_v62 = vsel %vm3000_vm2, %v10254_v42, %v10310_v1  ;;  %v9088_v31 = vld [vmem:[%s12600_s2 + $0x1e8] sm:$0xff]   ;;  %v9090_v42 = vld [vmem:[%s12600_s2 + $0x1e0] sm:$0xff]  }
 0x1d4   : > { %3372 = vrot.lane.b32.xlu0 %v3325_v28, %s12626_s11  ;;  %v4448_v30 = vadd.f32 %v4379_v46, %v4238_v48  ;;  %v3075_v22 = vadd.f32 %v3005_v62, %v2833_v39  ;;  %v2832_v46 = vsel %vm2828_vm1, %v10083_v3, %v10233_v20  ;;  %v3422_v3 = vsel %vm3418_vm4, %v10155_v43, %v10308_v60  ;;  %v9091_v43 = vld [vmem:[%s12600_s2 + $0x1a0] sm:$0xff]  }
 0x1d5   : > { %2958 = vrot.lane.b32.xlu1 %v2911_v2, %s12613_s28  ;;  %v10438_v2 = vpop.f32.mrf.mxu1  ;;  %v3704_v60 = vsel %vm3699_vm5, %v10182_v0, %v10336_v61  ;;  %v3528_v61 = vrot.slane %v9867_v51, 4  ;;  %v9094_v51 = vld [vmem:[%s12600_s2 + $0x1d0] sm:$0xff]  }
 0x1d6   : > { %v10385_v58 = vpop.permute.xlu0 %2944  ;;  %v10387_v45 = vpop.permute.xlu1 %4317  ;;  %v4483_v27 = vpack.c.bf16 %v4448_v30, %v4448_v30  ;;  %v3282_v14 = vadd.f32 %v3212_v7, %v3075_v22  ;;  %v3743_v7 = vrot.slane %v3705_v32, 5  ;;  %v3918_v22 = vsel %vm3913_vm6, %v10202_v47, %v10355_v10  ;;  %v9093_v47 = vld [vmem:[%s12600_s2 + $0x198] sm:$0xff]  }
 0x1d7   : > { %v2250_v30 = vpop.f32.mrf.mxu0  ;;  %v10456_v20 = vpop.f32.mrf.mxu1  ;;  %v3327_v32 = vrot.slane %v10235_v52, 3 }
 0x1d8   : > { %6776 = vmatprep.mubr.bf16.mxu1 %v4483_v27  ;;  %3655 = vrot.lane.b32.xlu0 %v10350_v40, %s12627_s18  ;;  %v3494_v12 = vadd.f32 %v3423_v55, %v3282_v14  ;;  %v3074_v27 = vadd.f32 %v3004_v8, %v2832_v46  ;;  %v3742_v55 = vrot.slane %v3704_v60, 5  ;;  %v3119_v8 = vrot.slane %v10235_v52, 2 }
 0x1d9   : > { %3165 = vrot.lane.b32.xlu1 %v3118_v6, %s12609_s29  ;;  %6777 = vmatmul.mubr.bf16.vlgmr.msra.gmra.mxu1 %v4482_v38  ;;  %v2912_v6 = vrot.slane %v10235_v52, 1  ;;  %v10480_v0 = vpop.f32.mrf.mxu1 }
 0x1da   : > { %v10408_v50 = vpop.permute.xlu0 %3151  ;;  %v10410_v19 = vpop.permute.xlu1 %2946  ;;  %8216 = vmatpush3.bf16.msra.mxu1 %v9085_v37  ;;  %v3529_v37 = vrot.slane %v9964_v17, 4  ;;  %v3281_v18 = vadd.f32 %v3211_v23, %v3074_v27  ;;  %12628 = vst [vmem:[#allocation5_spill] sm:$0xff] %v10480_v0  ;;  %v4133_v23 = vsel %vm4127_vm7, %v10374_v13, %v10241_v25 }
 0x1db   : > { %8217 = vmatprep.subr.bf16.mxu1 %v9086_v57  ;;  %v9092_v57 = vld [vmem:[%s12600_s2 + $0x1d8] sm:$0xff]  }
 0x1dc   : > { %3869 = vrot.lane.b32.xlu0 %v10350_v40, %s9380_s20  ;;  %v3599_v38 = vadd.f32 %v3529_v37, %v3494_v12  ;;  %v3493_v39 = vadd.f32 %v3422_v3, %v3281_v18  ;;  %v9095_v18 = vld [vmem:[%s12600_s2 + $0x190] sm:$0xff]  }
 0x1dd   : > { %3374 = vrot.lane.b32.xlu1 %v3326_v63, %s12626_s11 }
 0x1de   : > { %v10428_v48 = vpop.permute.xlu0 %3360  ;;  %v10430_v28 = vpop.permute.xlu1 %3153  ;;  %8218 = vmatpush3.bf16.msra.mxu1 %v9087_v4  ;;  %v3919_v4 = vsel %vm3913_vm6, %v10355_v10, %v10217_v5  ;;  %v3813_v63 = vadd.f32 %v3743_v7, %v3599_v38  ;;  %v4132_v10 = vsel %vm4127_vm7, %v10231_v35, %v10374_v13  ;;  %v3598_v12 = vadd.f32 %v3528_v61, %v3493_v39  ;;  %v9096_v38 = vld [vmem:[%s12600_s2 + $0x1c8] sm:$0xff]  }
 0x1df   : > { %8219 = vmatprep.subr.bf16.mxu1 %v9088_v31  ;;  %v3957_v46 = vrot.slane %v3919_v4, 6  ;;  %v4169_v27 = vrot.slane %v4132_v10, 7  ;;  %v3120_v13 = vrot.slane %v10369_v41, 2  ;;  %v9097_v4 = vld [vmem:[%s12600_s2 + $0x188] sm:$0xff]  }
 0x1e0   : > { %4083 = vrot.lane.b32.xlu0 %v10350_v40, %s9381_s26  ;;  %v3812_v35 = vadd.f32 %v3742_v55, %v3598_v12 }
 0x1e1   : > { %4329 = vrot.lane.b32.xlu1 %v2250_v30, %s12622_s10  ;;  %v4027_v30 = vadd.f32 %v3957_v46, %v3813_v63  ;;  %v3328_v63 = vrot.slane %v10369_v41, 3 }
 0x1e2   : > { %v10458_v62 = vpop.permute.xlu0 %3643  ;;  %v10460_v17 = vpop.permute.xlu1 %3362  ;;  %8220 = vmatpush3.bf16.msra.mxu1 %v9089_v44  ;;  %v3956_v44 = vrot.slane %v3918_v22, 6 }
 0x1e3   : > { %8221 = vmatprep.subr.bf16.mxu1 %v9090_v42  ;;  %v10503_v42 = vpop.f32.mrf.mxu1 }
 0x1e4   : > { %2960 = vrot.lane.b32.xlu0 %v2912_v6, %s12613_s28  ;;  %v4026_v6 = vadd.f32 %v3956_v44, %v3812_v35  ;;  %v9101_v35 = vld [vmem:[%s12600_s2 + $0x238] sm:$0xff]  }
 0x1e5   : > { %4333 = vrot.lane.b32.xlu1 %v2293_v53, %s12622_s10  ;;  %v2913_v53 = vrot.slane %v10369_v41, 1  ;;  %v10519_v60 = vpop.f32.mrf.mxu1 }
 0x1e6   : > { %v10483_v31 = vpop.permute.xlu0 %3857  ;;  %v10485_v14 = vpop.permute.xlu1 %3645  ;;  %8222 = vmatpush3.bf16.msra.mxu1 %v9091_v43  ;;  %v4170_v43 = vrot.slane %v4133_v23, 7  ;;  %v9100_v23 = vld [vmem:[%s12600_s2 + $0x180] sm:$0xff]  }
 0x1e7   : > { %8223 = vmatprep.subr.bf16.mxu1 %v9092_v57  ;;  %v4239_v57 = vadd.f32 %v4169_v27, %v4026_v6  ;;  %v9103_v6 = vld [vmem:[%s12600_s2 + $0x230] sm:$0xff]  }
 0x1e8   : > { %3167 = vrot.lane.b32.xlu0 %v3119_v8, %s12609_s29  ;;  %v4240_v39 = vadd.f32 %v4170_v43, %v4027_v30  ;;  %v9098_v8 = vld [vmem:[%s12600_s2 + $0x1c0] sm:$0xff]   ;;  %v9102_v30 = vld [vmem:[%s12600_s2 + $0x270] sm:$0xff]   ;;  %v9104_v43 = vld [vmem:[%s12600_s2 + $0x268] sm:$0xff]  }
 0x1e9   : > { %2962 = vrot.lane.b32.xlu1 %v2913_v53, %s12613_s28 }
 0x1ea   : > { %v10505_v37 = vpop.permute.xlu0 %4071  ;;  %v10507_v3 = vpop.permute.xlu1 %3649  ;;  %8224 = vmatpush3.bf16.msra.mxu1 %v9093_v47 }
 0x1eb   : > { %8225 = vmatprep.subr.bf16.mxu1 %v9094_v51  ;;  %v10534_v47 = vpop.f32.mrf.mxu1  ;;  %v2252_v51 = vpop.f32.mrf.mxu0 }
 0x1ec   : > { %3376 = vrot.lane.b32.xlu0 %v3327_v32, %s12626_s11  ;;  %v9116_v32 = vld [vmem:[%s12600_s2 + $0x2f8] sm:$0xff]  }
 0x1ed   : > { %3169 = vrot.lane.b32.xlu1 %v3120_v13, %s12609_s29  ;;  %v10552_v27 = vpop.f32.mrf.mxu1  ;;  %s12645_s29 = smov 61  }
 0x1ee   : > { %v4316_v7 = vpop.permute.xlu0 %4315  ;;  %v10521_v22 = vpop.permute.xlu1 %3859  ;;  %8226 = vmatpush3.bf16.msra.mxu1 %v9095_v18  ;;  %12629 = vst [vmem:[#allocation6_spill] sm:$0xff] %v10552_v27 }
 0x1ef   : > { %v4380_v61 = vsel %vm4375_vm8, %v10376_v16, %v4316_v7  ;;  %v4381_v55 = vsel %vm4375_vm8, %v4316_v7, %v10387_v45  ;;  %8227 = vmatprep.subr.bf16.mxu1 %v9096_v38  ;;  %v10557_v18 = vpop.f32.mrf.mxu0 }
 0x1f0   : > { %v4449_v10 = vadd.f32 %v4380_v61, %v4239_v57  ;;  %3659 = vrot.lane.b32.xlu0 %v10369_v41, %s12627_s18  ;;  %v4450_v53 = vadd.f32 %v4381_v55, %v4240_v39  ;;  %v10573_v57 = vpop.f32.mrf.mxu1  ;;  %v9106_v61 = vld [vmem:[%s12600_s2 + $0x260] sm:$0xff]  }
 0x1f1   : > { %3378 = vrot.lane.b32.xlu1 %v3328_v63, %s12626_s11 }
 0x1f2   : > { %v4484_v16 = vpack.c.bf16 %v4449_v10, %v4449_v10  ;;  %v10539_v12 = vpop.permute.xlu0 %4319  ;;  %v10541_v44 = vpop.permute.xlu1 %3863  ;;  %v4485_v46 = vpack.c.bf16 %v4450_v53, %v4450_v53  ;;  %8228 = vmatpush3.bf16.msra.mxu1 %v9097_v4  ;;  %v9105_v4 = vld [vmem:[%s12600_s2 + $0x228] sm:$0xff]   ;;  %v9107_v53 = vld [vmem:[%s12600_s2 + $0x220] sm:$0xff]  }
 0x1f3   : > { %8229 = vmatprep.subr.bf16.mxu1 %v9098_v8  ;;  %v10589_v55 = vpop.f32.mrf.mxu1 }
 0x1f4   : > { %6816 = vmatprep.mubr.bf16.mxu0 %v4485_v46  ;;  %3873 = vrot.lane.b32.xlu0 %v10369_v41, %s9380_s20  ;;  %v3007_v46 = vsel %vm3000_vm2, %v10385_v58, %v10410_v19 }
 0x1f5   : > { %3661 = vrot.lane.b32.xlu1 %v10557_v18, %s12627_s18  ;;  %6817 = vmatmul.mubr.bf16.vlgmr.msra.gmra.mxu0 %v4484_v16  ;;  %v10594_v63 = vpop.f32.mrf.mxu1  ;;  %v9108_v16 = vld [vmem:[%s12600_s2 + $0x258] sm:$0xff]  }
 0x1f6   : > { %v10563_v13 = vpop.permute.xlu1 %4073  ;;  %v10565_v38 = vpop.permute.xlu0 %2776  ;;  %8230 = vmatpush3.bf16.msra.mxu1 %v9100_v23  ;;  %8238 = vmatpush3.bf16.msra.mxu0 %v9101_v35  ;;  %v2834_v35 = vsel %vm2828_vm1, %v10256_v29, %v10243_v26  ;;  %v3214_v29 = vsel %vm3207_vm3, %v10408_v50, %v10430_v28 }
 0x1f7   : > { %8239 = vmatprep.subr.bf16.mxu0 %v9102_v30  ;;  %8259 = vmatprep.subr.bf16.mxu1 %v9116_v32  ;;  %v10616_v23 = vpop.f32.mrf.mxu1  ;;  %v2835_v32 = vsel %vm2828_vm1, %v10243_v26, %v10287_v49  ;;  %v3425_v26 = vsel %vm3418_vm4, %v10428_v48, %v10460_v17 }
 0x1f8   : > { %4087 = vrot.lane.b32.xlu0 %v10369_v41, %s9381_s26 }
 0x1f9   : > { %3665 = vrot.lane.b32.xlu1 %v10456_v20, %s12627_s18 }
 0x1fa   : > { %v10579_v39 = vpop.permute.xlu1 %4077  ;;  %v10581_v7 = vpop.permute.xlu0 %2780  ;;  %8240 = vmatpush3.bf16.msra.mxu0 %v9103_v6 }
 0x1fb   : > { %8241 = vmatprep.subr.bf16.mxu0 %v9104_v43  ;;  %v3077_v43 = vadd.f32 %v3007_v46, %v2835_v32  ;;  %v9111_v46 = vld [vmem:[%s12600_s2 + $0x210] sm:$0xff]   ;;  %v3920_v32 = vsel %vm3913_vm6, %v10217_v5, %v10483_v31  ;;  %v4134_v5 = vsel %vm4127_vm7, %v10241_v25, %v10505_v37  ;;  %v9114_v25 = vld [vmem:[%s12600_s2 + $0x240] sm:$0xff]  }
 0x1fc   : > { %4331 = vrot.lane.b32.xlu0 %v2252_v51, %s12622_s10  ;;  %v3006_v51 = vsel %vm3000_vm2, %v10310_v1, %v10385_v58  ;;  %v3213_v1 = vsel %vm3207_vm3, %v10338_v33, %v10408_v50  ;;  %v9109_v58 = vld [vmem:[%s12600_s2 + $0x218] sm:$0xff]   ;;  %v9110_v33 = vld [vmem:[%s12600_s2 + $0x250] sm:$0xff]   ;;  %v10650_v50 = vpop.f32.mrf.mxu1 }
 0x1fd   : > { %3875 = vrot.lane.b32.xlu1 %v10557_v18, %s9380_s20  ;;  %v3076_v6 = vadd.f32 %v3006_v51, %v2834_v35  ;;  %12630 = vst [vmem:[#allocation7_spill] sm:$0xff] %v10650_v50  ;;  %v3707_v35 = vsel %vm3699_vm5, %v10458_v62, %v10485_v14 }
 0x1fe   : > { %v10596_v8 = vpop.permute.xlu0 %2948  ;;  %v10598_v10 = vpop.permute.xlu1 %2778  ;;  %8242 = vmatpush3.bf16.msra.mxu0 %v9105_v4  ;;  %v3424_v4 = vsel %vm3418_vm4, %v10357_v34, %v10428_v48 }
 0x1ff   : > { %8243 = vmatprep.subr.bf16.mxu0 %v9106_v61  ;;  %v3283_v61 = vadd.f32 %v3213_v1, %v3076_v6  ;;  %v9112_v1 = vld [vmem:[%s12600_s2 + $0x248] sm:$0xff]  }
 0x200   : > { %4335 = vrot.lane.b32.xlu0 %v10438_v2, %s12622_s10 }
 0x201   : > { %3879 = vrot.lane.b32.xlu1 %v10456_v20, %s9380_s20  ;;  %v3495_v48 = vadd.f32 %v3424_v4, %v3283_v61  ;;  %v2914_v61 = vrot.slane %v10557_v18, 1 }
 0x202   : > { %v10624_v30 = vpop.permute.xlu0 %3155  ;;  %v10626_v2 = vpop.permute.xlu1 %2782  ;;  %8244 = vmatpush3.bf16.msra.mxu0 %v9107_v53  ;;  %v3284_v53 = vadd.f32 %v3214_v29, %v3077_v43  ;;  %v3745_v43 = vrot.slane %v3707_v35, 5 }
 0x203   : > { %8245 = vmatprep.subr.bf16.mxu0 %v9108_v16  ;;  %v3706_v16 = vsel %vm3699_vm5, %v10193_v36, %v10458_v62  ;;  %v3921_v62 = vsel %vm3913_vm6, %v10483_v31, %v10521_v22  ;;  %v10679_v29 = vpop.f32.mrf.mxu1  ;;  %v9113_v31 = vld [vmem:[%s12600_s2 + $0x208] sm:$0xff]  }
 0x204   : > { %2792 = vrot.lane.b32.xlu0 %v10557_v18, %s12618_s19  ;;  %v3496_v36 = vadd.f32 %v3425_v26, %v3284_v53  ;;  %v3744_v6 = vrot.slane %v3706_v16, 5  ;;  %12631 = vst [vmem:[#allocation8_spill] sm:$0xff] %v10679_v29  ;;  %v3958_v53 = vrot.slane %v3920_v32, 6  ;;  %v3959_v21 = vrot.slane %v3921_v62, 6  ;;  %v9115_v62 = vld [vmem:[%s12600_s2 + $0x200] sm:$0xff]  }
 0x205   : > { %4089 = vrot.lane.b32.xlu1 %v10557_v18, %s9381_s26  ;;  %v10699_v16 = vpop.f32.mrf.mxu1 }
 0x206   : > { %v10655_v51 = vpop.permute.xlu0 %3364  ;;  %v10657_v34 = vpop.permute.xlu1 %2950  ;;  %8246 = vmatpush3.bf16.msra.mxu0 %v9109_v58  ;;  %v3530_v58 = vrot.slane %v9879_v56, 4 }
 0x207   : > { %8247 = vmatprep.subr.bf16.mxu0 %v9110_v33  ;;  %v3531_v33 = vrot.slane %v9982_v24, 4  ;;  %v4135_v24 = vsel %vm4127_vm7, %v10505_v37, %v10563_v13  ;;  %v10706_v32 = vpop.f32.mrf.mxu1 }
 0x208   : > { %2796 = vrot.lane.b32.xlu0 %v10456_v20, %s12618_s19  ;;  %v3600_v26 = vadd.f32 %v3530_v58, %v3495_v48  ;;  %v4171_v48 = vrot.slane %v4134_v5, 7  ;;  %12632 = vst [vmem:[#allocation9_spill] sm:$0xff] %v10706_v32 }
 0x209   : > { %4093 = vrot.lane.b32.xlu1 %v10456_v20, %s9381_s26  ;;  %v3601_v35 = vadd.f32 %v3531_v33, %v3496_v36  ;;  %v3121_v36 = vrot.slane %v10557_v18, 2  ;;  %v9131_v33 = vld [vmem:[%s12600_s2 + $0x378] sm:$0xff]   ;;  %v10719_v5 = vpop.f32.mrf.mxu1 }
 0x20a   : > { %v10685_v4 = vpop.permute.xlu0 %3647  ;;  %v10687_v56 = vpop.permute.xlu1 %3157  ;;  %8248 = vmatpush3.bf16.msra.mxu0 %v9111_v46  ;;  %v3814_v29 = vadd.f32 %v3744_v6, %v3600_v26  ;;  %12633 = vst [vmem:[#allocation10_spill] sm:$0xff] %v10719_v5 }
 0x20b   : > { %8249 = vmatprep.subr.bf16.mxu0 %v9112_v1  ;;  %v10701_v46 = vpop.f32.mrf.mxu0  ;;  %v3815_v37 = vadd.f32 %v3745_v43, %v3601_v35  ;;  %v4172_v1 = vrot.slane %v4135_v24, 7  ;;  %v10727_v26 = vpop.f32.mrf.mxu1 }
 0x20c   : > { %2964 = vrot.lane.b32.xlu0 %v2914_v61, %s12613_s28  ;;  %v4028_v6 = vadd.f32 %v3958_v53, %v3814_v29  ;;  %v4382_v61 = vsel %vm4375_vm8, %v10387_v45, %v10539_v12  ;;  %12635 = vst [vmem:[#allocation11_spill] sm:$0xff] %v10727_v26  ;;  %v2915_v35 = vrot.slane %v10701_v46, 1  ;;  %v3330_v26 = vrot.slane %v10701_v46, 3 }
 0x20d   : > { %2794 = vrot.lane.b32.xlu1 %v10701_v46, %s12618_s19  ;;  %v4029_v43 = vadd.f32 %v3959_v21, %v3815_v37 }
 0x20e   : > { %v10708_v58 = vpop.permute.xlu0 %3861  ;;  %v10710_v50 = vpop.permute.xlu1 %3366  ;;  %8250 = vmatpush3.bf16.msra.mxu0 %v9113_v31  ;;  %v4241_v31 = vadd.f32 %v4171_v48, %v4028_v6 }
 0x20f   : > { %8251 = vmatprep.subr.bf16.mxu0 %v9114_v25  ;;  %v4242_v29 = vadd.f32 %v4172_v1, %v4029_v43  ;;  %v3329_v25 = vrot.slane %v10557_v18, 3  ;;  %v10738_v48 = vpop.f32.mrf.mxu1 }
 0x210   : > { %3171 = vrot.lane.b32.xlu0 %v3121_v36, %s12634_s15  ;;  %v4451_v21 = vadd.f32 %v4382_v61, %v4241_v31  ;;  %12636 = vst [vmem:[#allocation12_spill] sm:$0xff] %v10738_v48  ;;  %v3122_v61 = vrot.slane %v10701_v46, 2  ;;  %v9118_v31 = vld [vmem:[%s12600_s2 + $0x2f0] sm:$0xff]  }
 0x211   : > { %2798 = vrot.lane.b32.xlu1 %v10480_v0, %s12618_s19  ;;  %v8548_v1 = vpop.f32.mrf.mxu1 }
 0x212   : > { %v10729_v53 = vpop.permute.xlu0 %4075  ;;  %v10731_v24 = vpop.permute.xlu1 %4321  ;;  %8252 = vmatpush3.bf16.msra.mxu0 %v9115_v62  ;;  %v4486_v43 = vpack.c.bf16 %v4451_v21, %v4451_v21  ;;  %v3216_v21 = vsel %vm3207_vm3, %v10624_v30, %v10687_v56 }
 0x213   : > { %v4383_v45 = vsel %vm4375_vm8, %v10539_v12, %v10731_v24  ;;  %8281 = vmatprep.subr.bf16.mxu0 %v9131_v33  ;;  %v9117_v12 = vld [vmem:[%s12600_s2 + $0x2b8] sm:$0xff]   ;;  %v3009_v33 = vsel %vm3000_vm2, %v10596_v8, %v10657_v34 }
 0x214   : > { %3380 = vrot.lane.b32.xlu0 %v3329_v25, %s12626_s11  ;;  %v4452_v37 = vadd.f32 %v4383_v45, %v4242_v29  ;;  %v10756_v29 = vpop.f32.mrf.mxu1  ;;  %v2837_v25 = vsel %vm2828_vm1, %v10565_v38, %v10598_v10 }
 0x215   : > { %2966 = vrot.lane.b32.xlu1 %v2915_v35, %s12613_s28  ;;  %12637 = vst [vmem:[#allocation13_spill] sm:$0xff] %v10756_v29  ;;  %v3079_v35 = vadd.f32 %v3009_v33, %v2837_v25  ;;  %v3427_v29 = vsel %vm3418_vm4, %v10655_v51, %v10710_v50 }
 0x216   : > { %v10742_v36 = vpop.permute.xlu0 %2952  ;;  %v10744_v6 = vpop.permute.xlu1 %4325  ;;  %v4487_v62 = vpack.c.bf16 %v4452_v37, %v4452_v37 }
 0x217   : > { %v8549_v45 = vpop.f32.mrf.mxu1  ;;  %v3286_v33 = vadd.f32 %v3216_v21, %v3079_v35  ;;  %v2836_v21 = vsel %vm2828_vm1, %v10287_v49, %v10565_v38  ;;  %v3533_v35 = vrot.slane %v10100_v11, 4  ;;  %v3426_v49 = vsel %vm3418_vm4, %v10460_v17, %v10655_v51  ;;  %v9124_v51 = vld [vmem:[%s12600_s2 + $0x2d8] sm:$0xff]  }
 0x218   : > { %6856 = vmatprep.mubr.bf16.mxu1 %v4487_v62  ;;  %3663 = vrot.lane.b32.xlu0 %v10701_v46, %s12627_s18  ;;  %v9119_v62 = vld [vmem:[%s12600_s2 + $0x2b0] sm:$0xff]   ;;  %v2916_v11 = vrot.slane %v10456_v20, 1  ;;  %v3708_v17 = vsel %vm3699_vm5, %v10485_v14, %v10685_v4  ;;  %v3532_v14 = vrot.slane %v10052_v54, 4 }
 0x219   : > { %3173 = vrot.lane.b32.xlu1 %v3122_v61, %s12634_s15  ;;  %6857 = vmatmul.mubr.bf16.vlgmr.msra.gmra.mxu1 %v4486_v43  ;;  %v9120_v43 = vld [vmem:[%s12600_s2 + $0x2e8] sm:$0xff]   ;;  %v3498_v61 = vadd.f32 %v3427_v29, %v3286_v33  ;;  %v9123_v33 = vld [vmem:[%s12600_s2 + $0x2a0] sm:$0xff]   ;;  %v9126_v54 = vld [vmem:[%s12600_s2 + $0x2d0] sm:$0xff]  }
 0x21a   : > { %v10767_v37 = vpop.permute.xlu0 %3159  ;;  %v10769_v1 = vpop.permute.xlu1 %2954  ;;  %8260 = vmatpush3.bf16.msra.mxu1 %v9117_v12  ;;  %v3008_v12 = vsel %vm3000_vm2, %v10410_v19, %v10596_v8  ;;  %v3215_v19 = vsel %vm3207_vm3, %v10430_v28, %v10624_v30  ;;  %v9122_v8 = vld [vmem:[%s12600_s2 + $0x2e0] sm:$0xff]   ;;  %v3709_v28 = vsel %vm3699_vm5, %v10685_v4, %v10507_v3  ;;  %v3746_v4 = vrot.slane %v3708_v17, 5 }
 0x21b   : > { %8261 = vmatprep.subr.bf16.mxu1 %v9118_v31  ;;  %v9121_v31 = vld [vmem:[%s12600_s2 + $0x2a8] sm:$0xff]   ;;  %v3078_v29 = vadd.f32 %v3008_v12, %v2836_v21  ;;  %v3603_v30 = vadd.f32 %v3533_v35, %v3498_v61  ;;  %v3747_v61 = vrot.slane %v3709_v28, 5  ;;  %v3923_v21 = vsel %vm3913_vm6, %v10708_v58, %v10541_v44 }
 0x21c   : > { %3877 = vrot.lane.b32.xlu0 %v10701_v46, %s9380_s20  ;;  %v3961_v28 = vrot.slane %v3923_v21, 6  ;;  %v3331_v17 = vrot.slane %v10456_v20, 3 }
 0x21d   : > { %3382 = vrot.lane.b32.xlu1 %v3330_v26, %s12626_s11  ;;  %v2336_v26 = vpop.f32.mrf.mxu0  ;;  %v3285_v38 = vadd.f32 %v3215_v19, %v3078_v29  ;;  %v3817_v19 = vadd.f32 %v3747_v61, %v3603_v30  ;;  %v3124_v61 = vrot.slane %v10480_v0, 2 }
 0x21e   : > { %v10787_v25 = vpop.permute.xlu0 %3368  ;;  %v10789_v45 = vpop.permute.xlu1 %3161  ;;  %8262 = vmatpush3.bf16.msra.mxu1 %v9119_v62 }
 0x21f   : > { %8263 = vmatprep.subr.bf16.mxu1 %v9120_v43  ;;  %v3497_v12 = vadd.f32 %v3426_v49, %v3285_v38  ;;  %v4137_v38 = vsel %vm4127_vm7, %v10729_v53, %v10579_v39  ;;  %v4031_v30 = vadd.f32 %v3961_v28, %v3817_v19 }
 0x220   : > { %4091 = vrot.lane.b32.xlu0 %v10701_v46, %s9381_s26  ;;  %v4174_v21 = vrot.slane %v4137_v38, 7 }
 0x221   : > { %4337 = vrot.lane.b32.xlu1 %v2336_v26, %s12622_s10  ;;  %v3123_v26 = vrot.slane %v10456_v20, 2  ;;  %v3602_v35 = vadd.f32 %v3532_v14, %v3497_v12 }
 0x222   : > { %v10813_v62 = vpop.permute.xlu0 %3651  ;;  %v10815_v43 = vpop.permute.xlu1 %3370  ;;  %8264 = vmatpush3.bf16.msra.mxu1 %v9121_v31  ;;  %v3922_v31 = vsel %vm3913_vm6, %v10521_v22, %v10708_v58  ;;  %v9125_v22 = vld [vmem:[%s12600_s2 + $0x298] sm:$0xff]   ;;  %v4136_v58 = vsel %vm4127_vm7, %v10563_v13, %v10729_v53  ;;  %v9128_v53 = vld [vmem:[%s12600_s2 + $0x2c8] sm:$0xff]  }
 0x223   : > { %8265 = vmatprep.subr.bf16.mxu1 %v9122_v8  ;;  %v3960_v49 = vrot.slane %v3922_v31, 6  ;;  %v3816_v13 = vadd.f32 %v3746_v4, %v3602_v35  ;;  %v4244_v4 = vadd.f32 %v4174_v21, %v4031_v30  ;;  %v9130_v35 = vld [vmem:[%s12600_s2 + $0x2c0] sm:$0xff]  }
 0x224   : > { %2968 = vrot.lane.b32.xlu0 %v2916_v11, %s12613_s28  ;;  %v4173_v11 = vrot.slane %v4136_v58, 7 }
 0x225   : > { %4341 = vrot.lane.b32.xlu1 %v10503_v42, %s12622_s10  ;;  %v2917_v42 = vrot.slane %v10480_v0, 1  ;;  %v4030_v31 = vadd.f32 %v3960_v49, %v3816_v13 }
 0x226   : > { %v10837_v8 = vpop.permute.xlu0 %3865  ;;  %8266 = vmatpush3.bf16.msra.mxu1 %v9123_v33 }
 0x227   : > { %v10846_v29 = vpop.permute.xlu1 %3653  ;;  %8267 = vmatprep.subr.bf16.mxu1 %v9124_v51  ;;  %v9127_v51 = vld [vmem:[%s12600_s2 + $0x290] sm:$0xff]   ;;  %v4243_v14 = vadd.f32 %v4173_v11, %v4030_v31  ;;  %v9132_v11 = vld [vmem:[%s12600_s2 + $0x280] sm:$0xff]  }
 0x228   : > { %3175 = vrot.lane.b32.xlu0 %v3123_v26, %s12634_s15  ;;  %v9129_v26 = vld [vmem:[%s12600_s2 + $0x288] sm:$0xff]  }
 0x229   : > { %2970 = vrot.lane.b32.xlu1 %v2917_v42, %s12613_s28 }
 0x22a   : > { %v10857_v33 = vpop.permute.xlu0 %4079  ;;  %8268 = vmatpush3.bf16.msra.mxu1 %v9125_v22 }
 0x22b   : > { %v10863_v12 = vpop.permute.xlu1 %3657  ;;  %8269 = vmatprep.subr.bf16.mxu1 %v9126_v54  ;;  %v3332_v54 = vrot.slane %v10480_v0, 3 }
 0x22c   : > { %3384 = vrot.lane.b32.xlu0 %v3331_v17, %s12626_s11  ;;  %v9133_v17 = vld [vmem:[%s12600_s2 + $0x338] sm:$0xff]  }
 0x22d   : > { %3177 = vrot.lane.b32.xlu1 %v3124_v61, %s12634_s15  ;;  %v9134_v61 = vld [vmem:[%s12600_s2 + $0x370] sm:$0xff]  }
 0x22e   : > { %v4324_v19 = vpop.permute.xlu0 %4323  ;;  %8270 = vmatpush3.bf16.msra.mxu1 %v9127_v51 }
 0x22f   : > { %v4384_v22 = vsel %vm4375_vm8, %v10731_v24, %v4324_v19  ;;  %v4385_v58 = vsel %vm4375_vm8, %v4324_v19, %v10744_v6  ;;  %v10878_v42 = vpop.permute.xlu1 %3867  ;;  %8271 = vmatprep.subr.bf16.mxu1 %v9128_v53  ;;  %v2338_v24 = vpop.f32.mrf.mxu0  ;;  %v9148_v53 = vld [vmem:[%s12600_s2 + $0x3f8] sm:$0xff]   ;;  %v9136_v19 = vld [vmem:[%s12600_s2 + $0x368] sm:$0xff]  }
 0x230   : > { %v4453_v49 = vadd.f32 %v4384_v22, %v4243_v14  ;;  %3667 = vrot.lane.b32.xlu0 %v10480_v0, %s12627_s18  ;;  %v4454_v28 = vadd.f32 %v4385_v58, %v4244_v4  ;;  %v9135_v14 = vld [vmem:[%s12600_s2 + $0x330] sm:$0xff]   ;;  %v9137_v22 = vld [vmem:[%s12600_s2 + $0x328] sm:$0xff]  }
 0x231   : > { %3386 = vrot.lane.b32.xlu1 %v3332_v54, %s12626_s11  ;;  %v10903_v31 = vpop.f32.mrf.mxu0 }
 0x232   : > { %v4488_v38 = vpack.c.bf16 %v4453_v49, %v4453_v49  ;;  %v10887_v13 = vpop.permute.xlu0 %4327  ;;  %v4489_v30 = vpack.c.bf16 %v4454_v28, %v4454_v28  ;;  %8272 = vmatpush3.bf16.msra.mxu1 %v9129_v26  ;;  %v9139_v28 = vld [vmem:[%s12600_s2 + $0x320] sm:$0xff]  }
 0x233   : > { %v10895_v51 = vpop.permute.xlu1 %3871  ;;  %8273 = vmatprep.subr.bf16.mxu1 %v9130_v35  ;;  %v10928_v58 = vpop.f32.mrf.mxu0  ;;  %v9138_v35 = vld [vmem:[%s12600_s2 + $0x360] sm:$0xff]  }
 0x234   : > { %6896 = vmatprep.mubr.bf16.mxu0 %v4489_v30  ;;  %3881 = vrot.lane.b32.xlu0 %v10480_v0, %s9380_s20 }
 0x235   : > { %3669 = vrot.lane.b32.xlu1 %v10903_v31, %s12627_s18  ;;  %6897 = vmatmul.mubr.bf16.vlgmr.msra.gmra.mxu0 %v4488_v38  ;;  %v10943_v38 = vpop.f32.mrf.mxu0 }
 0x236   : > { %v10909_v21 = vpop.permute.xlu0 %2784  ;;  %8274 = vmatpush3.bf16.msra.mxu1 %v9132_v11  ;;  %8282 = vmatpush3.bf16.msra.mxu0 %v9133_v17  ;;  %v9140_v11 = vld [vmem:[%s12600_s2 + $0x358] sm:$0xff]   ;;  %v3011_v17 = vsel %vm3000_vm2, %v10742_v36, %v10769_v1 }
 0x237   : > { %v10914_v4 = vpop.permute.xlu1 %4081  ;;  %8283 = vmatprep.subr.bf16.mxu0 %v9134_v61  ;;  %8303 = vmatprep.subr.bf16.mxu1 %v9148_v53  ;;  %v9141_v53 = vld [vmem:[%s12600_s2 + $0x318] sm:$0xff]  }
 0x238   : > { %4095 = vrot.lane.b32.xlu0 %v10480_v0, %s9381_s26  ;;  %v4139_v32 = vsel %vm4127_vm7, %v10857_v33, %v10914_v4 }
 0x239   : > { %3673 = vrot.lane.b32.xlu1 %v10534_v47, %s12627_s18 }
 0x23a   : > { %v10923_v26 = vpop.permute.xlu0 %2788  ;;  %8284 = vmatpush3.bf16.msra.mxu0 %v9135_v14  ;;  %v10971_v14 = vpop.f32.mrf.mxu0 }
 0x23b   : > { %v10930_v54 = vpop.permute.xlu1 %4085  ;;  %8285 = vmatprep.subr.bf16.mxu0 %v9136_v19 }
 0x23c   : > { %4339 = vrot.lane.b32.xlu0 %v2338_v24, %s12622_s10  ;;  %v3010_v24 = vsel %vm3000_vm2, %v10657_v34, %v10742_v36  ;;  %v3217_v34 = vsel %vm3207_vm3, %v10687_v56, %v10767_v37  ;;  %v9142_v36 = vld [vmem:[%s12600_s2 + $0x350] sm:$0xff]  }
 0x23d   : > { %3883 = vrot.lane.b32.xlu1 %v10903_v31, %s9380_s20 }
 0x23e   : > { %v10938_v49 = vpop.permute.xlu0 %2956  ;;  %8286 = vmatpush3.bf16.msra.mxu0 %v9137_v22  ;;  %v2839_v22 = vsel %vm2828_vm1, %v10581_v7, %v10626_v2 }
 0x23f   : > { %v10945_v30 = vpop.permute.xlu1 %2786  ;;  %8287 = vmatprep.subr.bf16.mxu0 %v9138_v35  ;;  %v3081_v56 = vadd.f32 %v3011_v17, %v2839_v22 }
 0x240   : > { %4343 = vrot.lane.b32.xlu0 %v10519_v60, %s12622_s10  ;;  %v2838_v60 = vsel %vm2828_vm1, %v10598_v10, %v10581_v7  ;;  %v3218_v10 = vsel %vm3207_vm3, %v10767_v37, %v10789_v45  ;;  %v3429_v7 = vsel %vm3418_vm4, %v10787_v25, %v10815_v43  ;;  %v9143_v37 = vld [vmem:[%s12600_s2 + $0x310] sm:$0xff]  }
 0x241   : > { %3887 = vrot.lane.b32.xlu1 %v10534_v47, %s9380_s20  ;;  %v3080_v35 = vadd.f32 %v3010_v24, %v2838_v60  ;;  %v3288_v17 = vadd.f32 %v3218_v10, %v3081_v56  ;;  %v2918_v56 = vrot.slane %v10903_v31, 1 }
 0x242   : > { %v10960_v61 = vpop.permute.xlu0 %3163  ;;  %8288 = vmatpush3.bf16.msra.mxu0 %v9139_v28  ;;  %v3428_v28 = vsel %vm3418_vm4, %v10710_v50, %v10787_v25  ;;  %v3710_v50 = vsel %vm3699_vm5, %v10507_v3, %v10813_v62  ;;  %v3924_v3 = vsel %vm3913_vm6, %v10541_v44, %v10837_v8  ;;  %v9145_v44 = vld [vmem:[%s12600_s2 + $0x308] sm:$0xff]  }
 0x243   : > { %v10973_v19 = vpop.permute.xlu1 %2790  ;;  %8289 = vmatprep.subr.bf16.mxu0 %v9140_v11  ;;  %v10991_v11 = vpop.f32.mrf.mxu0  ;;  %v3287_v48 = vadd.f32 %v3217_v34, %v3080_v35  ;;  %v9144_v34 = vld [vmem:[%s12600_s2 + $0x348] sm:$0xff]   ;;  %v3500_v22 = vadd.f32 %v3429_v7, %v3288_v17  ;;  %v3534_v35 = vrot.slane %v10062_v59, 4  ;;  %v4138_v59 = vsel %vm4127_vm7, %v10579_v39, %v10857_v33  ;;  %v9147_v33 = vld [vmem:[%s12600_s2 + $0x300] sm:$0xff]  }
 0x244   : > { %2800 = vrot.lane.b32.xlu0 %v10903_v31, %s12618_s19  ;;  %12638 = vst [vmem:[#allocation14_spill] sm:$0xff] %v10991_v11  ;;  %v4175_v5 = vrot.slane %v4138_v59, 7  ;;  %v3333_v59 = vrot.slane %v10903_v31, 3 }
 0x245   : > { %4097 = vrot.lane.b32.xlu1 %v10903_v31, %s9381_s26  ;;  %v3499_v25 = vadd.f32 %v3428_v28, %v3287_v48  ;;  %v3748_v48 = vrot.slane %v3710_v50, 5  ;;  %v3535_v28 = vrot.slane %v10108_v15, 4 }
 0x246   : > { %v10996_v24 = vpop.permute.xlu0 %3372  ;;  %8290 = vmatpush3.bf16.msra.mxu0 %v9141_v53  ;;  %v3711_v53 = vsel %vm3699_vm5, %v10813_v62, %v10846_v29  ;;  %v3925_v62 = vsel %vm3913_vm6, %v10837_v8, %v10878_v42  ;;  %v9146_v8 = vld [vmem:[%s12600_s2 + $0x340] sm:$0xff]  }
 0x247   : > { %v11004_v60 = vpop.permute.xlu1 %2958  ;;  %8291 = vmatprep.subr.bf16.mxu0 %v9142_v36  ;;  %v11019_v36 = vpop.f32.mrf.mxu0  ;;  %v3749_v7 = vrot.slane %v3711_v53, 5  ;;  %v3604_v50 = vadd.f32 %v3534_v35, %v3499_v25  ;;  %v3605_v15 = vadd.f32 %v3535_v28, %v3500_v22  ;;  %v3963_v53 = vrot.slane %v3925_v62, 6  ;;  %v9163_v62 = vld [vmem:[%s12600_s2 + $0x478] sm:$0xff]  }
 0x248   : > { %2804 = vrot.lane.b32.xlu0 %v10534_v47, %s12618_s19  ;;  %v3125_v25 = vrot.slane %v10903_v31, 2  ;;  %v4176_v35 = vrot.slane %v4139_v32, 7 }
 0x249   : > { %4101 = vrot.lane.b32.xlu1 %v10534_v47, %s9381_s26  ;;  %v11046_v39 = vpop.f32.mrf.mxu0 }
 0x24a   : > { %v11025_v10 = vpop.permute.xlu0 %3655  ;;  %8292 = vmatpush3.bf16.msra.mxu0 %v9143_v37  ;;  %v3962_v37 = vrot.slane %v3924_v3, 6  ;;  %v3819_v3 = vadd.f32 %v3749_v7, %v3605_v15 }
 0x24b   : > { %v11035_v17 = vpop.permute.xlu1 %3165  ;;  %8293 = vmatprep.subr.bf16.mxu0 %v9144_v34  ;;  %v3818_v34 = vadd.f32 %v3748_v48, %v3604_v50  ;;  %v11065_v28 = vpop.f32.mrf.mxu0 }
 0x24c   : > { %2972 = vrot.lane.b32.xlu0 %v2918_v56, %s12639_s16  ;;  %v4033_v56 = vadd.f32 %v3963_v53, %v3819_v3 }
 0x24d   : > { %2802 = vrot.lane.b32.xlu1 %v10928_v58, %s12618_s19  ;;  %v4032_v48 = vadd.f32 %v3962_v37, %v3818_v34  ;;  %v2919_v37 = vrot.slane %v10928_v58, 1  ;;  %v11078_v53 = vpop.f32.mrf.mxu0 }
 0x24e   : > { %v11048_v0 = vpop.permute.xlu0 %3869  ;;  %8294 = vmatpush3.bf16.msra.mxu0 %v9145_v44  ;;  %v4386_v44 = vsel %vm4375_vm8, %v10744_v6, %v10887_v13 }
 0x24f   : > { %v11054_v22 = vpop.permute.xlu1 %3374  ;;  %8295 = vmatprep.subr.bf16.mxu0 %v9146_v8  ;;  %v4245_v32 = vadd.f32 %v4175_v5, %v4032_v48  ;;  %v4246_v8 = vadd.f32 %v4176_v35, %v4033_v56  ;;  %v3126_v35 = vrot.slane %v10928_v58, 2  ;;  %v9150_v48 = vld [vmem:[%s12600_s2 + $0x3f0] sm:$0xff]   ;;  %v2841_v56 = vsel %vm2828_vm1, %v10909_v21, %v10945_v30 }
 0x250   : > { %3179 = vrot.lane.b32.xlu0 %v3125_v25, %s12634_s15  ;;  %v3013_v25 = vsel %vm3000_vm2, %v10938_v49, %v11004_v60 }
 0x251   : > { %2806 = vrot.lane.b32.xlu1 %v10552_v27, %s12618_s19  ;;  %v4455_v15 = vadd.f32 %v4386_v44, %v4245_v32  ;;  %v3220_v44 = vsel %vm3207_vm3, %v10960_v61, %v11035_v17  ;;  %v11103_v32 = vpop.f32.mrf.mxu0 }
 0x252   : > { %v11067_v7 = vpop.permute.xlu0 %4083  ;;  %8296 = vmatpush3.bf16.msra.mxu0 %v9147_v33 }
 0x253   : > { %v11070_v50 = vpop.permute.xlu1 %4329  ;;  %8325 = vmatprep.subr.bf16.mxu0 %v9163_v62  ;;  %v4490_v62 = vpack.c.bf16 %v4455_v15, %v4455_v15 }
 0x254   : > { %v4387_v6 = vsel %vm4375_vm8, %v10887_v13, %v11070_v50  ;;  %3388 = vrot.lane.b32.xlu0 %v3333_v59, %s12626_s11  ;;  %v9149_v13 = vld [vmem:[%s12600_s2 + $0x3b8] sm:$0xff]   ;;  %v3083_v59 = vadd.f32 %v3013_v25, %v2841_v56  ;;  %v9152_v25 = vld [vmem:[%s12600_s2 + $0x3e8] sm:$0xff]  }
 0x255   : > { %2974 = vrot.lane.b32.xlu1 %v2919_v37, %s12639_s16  ;;  %v4456_v5 = vadd.f32 %v4387_v6, %v4246_v8  ;;  %v3431_v37 = vsel %vm3418_vm4, %v10996_v24, %v11054_v22  ;;  %v3334_v6 = vrot.slane %v10928_v58, 3 }
 0x256   : > { %v11080_v34 = vpop.permute.xlu0 %2960 }
 0x257   : > { %v11085_v33 = vpop.permute.xlu1 %4333  ;;  %v4491_v3 = vpack.c.bf16 %v4456_v5, %v4456_v5  ;;  %v9151_v5 = vld [vmem:[%s12600_s2 + $0x3b0] sm:$0xff]  }
 0x258   : > { %3671 = vrot.lane.b32.xlu0 %v10928_v58, %s12627_s18 }
 0x259   : > { %6936 = vmatprep.mubr.bf16.mxu1 %v4491_v3  ;;  %3181 = vrot.lane.b32.xlu1 %v3126_v35, %s12634_s15  ;;  %v3290_v3 = vadd.f32 %v3220_v44, %v3083_v59  ;;  %v3012_v35 = vsel %vm3000_vm2, %v10769_v1, %v10938_v49  ;;  %v2840_v44 = vsel %vm2828_vm1, %v10626_v2, %v10909_v21  ;;  %v9153_v1 = vld [vmem:[%s12600_s2 + $0x3a8] sm:$0xff]   ;;  %v9154_v2 = vld [vmem:[%s12600_s2 + $0x3e0] sm:$0xff]  }
 0x25a   : > { %6937 = vmatmul.mubr.bf16.vlgmr.msra.gmra.mxu1 %v4490_v62  ;;  %v11105_v8 = vpop.permute.xlu0 %3167  ;;  %v3082_v49 = vadd.f32 %v3012_v35, %v2840_v44  ;;  %v3713_v21 = vsel %vm3699_vm5, %v11025_v10, %v10863_v12 }
 0x25b   : > { %v11110_v15 = vpop.permute.xlu1 %2962  ;;  %8304 = vmatpush3.bf16.msra.mxu1 %v9149_v13  ;;  %v11125_v13 = vpop.f32.mrf.mxu0  ;;  %v3502_v62 = vadd.f32 %v3431_v37, %v3290_v3  ;;  %v3537_v37 = vrot.slane %v10350_v40, 4  ;;  %v2920_v3 = vrot.slane %v10534_v47, 1  ;;  %v3751_v35 = vrot.slane %v3713_v21, 5 }
 0x25c   : > { %3885 = vrot.lane.b32.xlu0 %v10928_v58, %s9380_s20  ;;  %8305 = vmatprep.subr.bf16.mxu1 %v9150_v48  ;;  %v3219_v48 = vsel %vm3207_vm3, %v10789_v45, %v10960_v61  ;;  %v3430_v45 = vsel %vm3418_vm4, %v10815_v43, %v10996_v24  ;;  %v9155_v24 = vld [vmem:[%s12600_s2 + $0x3a0] sm:$0xff]  }
 0x25d   : > { %3390 = vrot.lane.b32.xlu1 %v3334_v6, %s12626_s11  ;;  %v11154_v40 = vpop.f32.mrf.mxu0  ;;  %v3289_v61 = vadd.f32 %v3219_v48, %v3082_v49  ;;  %v3607_v6 = vadd.f32 %v3537_v37, %v3502_v62  ;;  %v9156_v62 = vld [vmem:[%s12600_s2 + $0x3d8] sm:$0xff]   ;;  %v3536_v48 = vrot.slane %v10219_v9, 4 }
 0x25e   : > { %v11127_v56 = vpop.permute.xlu0 %3376 }
 0x25f   : > { %v11135_v59 = vpop.permute.xlu1 %3169  ;;  %8306 = vmatpush3.bf16.msra.mxu1 %v9151_v5  ;;  %v11179_v44 = vpop.f32.mrf.mxu0  ;;  %v3821_v49 = vadd.f32 %v3751_v35, %v3607_v6  ;;  %v9158_v6 = vld [vmem:[%s12600_s2 + $0x3d0] sm:$0xff]  }
 0x260   : > { %4099 = vrot.lane.b32.xlu0 %v10928_v58, %s9381_s26  ;;  %8307 = vmatprep.subr.bf16.mxu1 %v9152_v25  ;;  %v3712_v25 = vsel %vm3699_vm5, %v10846_v29, %v11025_v10  ;;  %v3926_v29 = vsel %vm3913_vm6, %v10878_v42, %v11048_v0  ;;  %v3927_v10 = vsel %vm3913_vm6, %v11048_v0, %v10895_v51  ;;  %v2921_v0 = vrot.slane %v10552_v27, 1 }
 0x261   : > { %4345 = vrot.lane.b32.xlu1 %v10943_v38, %s12622_s10  ;;  %v3501_v38 = vadd.f32 %v3430_v45, %v3289_v61  ;;  %v4140_v42 = vsel %vm4127_vm7, %v10914_v4, %v11067_v7  ;;  %v3964_v21 = vrot.slane %v3926_v29, 6  ;;  %v3965_v61 = vrot.slane %v3927_v10, 6 }
 0x262   : > { %v11156_v5 = vpop.permute.xlu0 %3659  ;;  %v4141_v4 = vsel %vm4127_vm7, %v11067_v7, %v10930_v54  ;;  %v3335_v29 = vrot.slane %v10534_v47, 3  ;;  %v3128_v10 = vrot.slane %v10552_v27, 2  ;;  %v9159_v7 = vld [vmem:[%s12600_s2 + $0x390] sm:$0xff]  }
 0x263   : > { %v11162_v43 = vpop.permute.xlu1 %3378  ;;  %8308 = vmatpush3.bf16.msra.mxu1 %v9153_v1  ;;  %v3750_v1 = vrot.slane %v3712_v25, 5  ;;  %v3606_v9 = vadd.f32 %v3536_v48, %v3501_v38  ;;  %v4177_v38 = vrot.slane %v4140_v42, 7 }
 0x264   : > { %2976 = vrot.lane.b32.xlu0 %v2920_v3, %s12639_s16  ;;  %8309 = vmatprep.subr.bf16.mxu1 %v9154_v2  ;;  %v3127_v2 = vrot.slane %v10534_v47, 2  ;;  %v11202_v3 = vpop.f32.mrf.mxu0 }
 0x265   : > { %4349 = vrot.lane.b32.xlu1 %v10573_v57, %s12622_s10  ;;  %v9157_v57 = vld [vmem:[%s12600_s2 + $0x398] sm:$0xff]   ;;  %v3820_v25 = vadd.f32 %v3750_v1, %v3606_v9  ;;  %v9160_v1 = vld [vmem:[%s12600_s2 + $0x3c8] sm:$0xff]  }
 0x266   : > { %v11182_v37 = vpop.permute.xlu0 %3873 }
 0x267   : > { %v11188_v45 = vpop.permute.xlu1 %3661  ;;  %8310 = vmatpush3.bf16.msra.mxu1 %v9155_v24  ;;  %v4035_v24 = vadd.f32 %v3965_v61, %v3821_v49  ;;  %v4034_v48 = vadd.f32 %v3964_v21, %v3820_v25  ;;  %v11218_v49 = vpop.f32.mrf.mxu0 }
 0x268   : > { %3183 = vrot.lane.b32.xlu0 %v3127_v2, %s12634_s15  ;;  %8311 = vmatprep.subr.bf16.mxu1 %v9156_v62  ;;  %v4178_v2 = vrot.slane %v4141_v4, 7  ;;  %12640 = vst [vmem:[#allocation15_spill] sm:$0xff] %v11218_v49  ;;  %v9161_v4 = vld [vmem:[%s12600_s2 + $0x388] sm:$0xff]  }
 0x269   : > { %2978 = vrot.lane.b32.xlu1 %v2921_v0, %s12639_s16  ;;  %v4247_v42 = vadd.f32 %v4177_v38, %v4034_v48  ;;  %v9165_v48 = vld [vmem:[%s12600_s2 + $0x438] sm:$0xff]  }
 0x26a   : > { %v11204_v35 = vpop.permute.xlu0 %4087  ;;  %v4248_v0 = vadd.f32 %v4178_v2, %v4035_v24 }
 0x26b   : > { %v11207_v62 = vpop.permute.xlu1 %3665  ;;  %8312 = vmatpush3.bf16.msra.mxu1 %v9157_v57 }
 0x26c   : > { %3392 = vrot.lane.b32.xlu0 %v3335_v29, %s12626_s11  ;;  %8313 = vmatprep.subr.bf16.mxu1 %v9158_v6  ;;  %v3336_v6 = vrot.slane %v10552_v27, 3 }
 0x26d   : > { %3185 = vrot.lane.b32.xlu1 %v3128_v10, %s12634_s15 }
 0x26e   : > { %v4332_v57 = vpop.permute.xlu0 %4331 }
 0x26f   : > { %v4388_v9 = vsel %vm4375_vm8, %v11070_v50, %v4332_v57  ;;  %v4389_v21 = vsel %vm4375_vm8, %v4332_v57, %v11085_v33  ;;  %v11224_v61 = vpop.permute.xlu1 %3875  ;;  %8314 = vmatpush3.bf16.msra.mxu1 %v9159_v7  ;;  %v11233_v50 = vpop.f32.mrf.mxu0  ;;  %v9162_v7 = vld [vmem:[%s12600_s2 + $0x3c0] sm:$0xff]  }
 0x270   : > { %v4457_v25 = vadd.f32 %v4388_v9, %v4247_v42  ;;  %3675 = vrot.lane.b32.xlu0 %v10552_v27, %s12627_s18  ;;  %v4458_v24 = vadd.f32 %v4389_v21, %v4248_v0  ;;  %8315 = vmatprep.subr.bf16.mxu1 %v9160_v1  ;;  %12641 = vst [vmem:[#allocation16_spill] sm:$0xff] %v11233_v50  ;;  %v9164_v1 = vld [vmem:[%s12600_s2 + $0x380] sm:$0xff]   ;;  %v9166_v42 = vld [vmem:[%s12600_s2 + $0x470] sm:$0xff]   ;;  %v9180_v0 = vld [vmem:[%s12600_s2 + $0x4f8] sm:$0xff]  }
 0x271   : > { %3394 = vrot.lane.b32.xlu1 %v3336_v6, %s12626_s11  ;;  %v9167_v21 = vld [vmem:[%s12600_s2 + $0x430] sm:$0xff]  }
 0x272   : > { %v4492_v38 = vpack.c.bf16 %v4457_v25, %v4457_v25  ;;  %v11235_v29 = vpop.permute.xlu0 %4335  ;;  %v4493_v10 = vpack.c.bf16 %v4458_v24, %v4458_v24  ;;  %v9168_v25 = vld [vmem:[%s12600_s2 + $0x468] sm:$0xff]  }
 0x273   : > { %v11243_v2 = vpop.permute.xlu1 %3879  ;;  %8316 = vmatpush3.bf16.msra.mxu1 %v9161_v4 }
 0x274   : > { %6976 = vmatprep.mubr.bf16.mxu0 %v4493_v10  ;;  %3889 = vrot.lane.b32.xlu0 %v10552_v27, %s9380_s20 }
 0x275   : > { %3677 = vrot.lane.b32.xlu1 %v10991_v11, %s12627_s18  ;;  %v8165_v57 = vpop.f32.mrf.mxu0  ;;  %6977 = vmatmul.mubr.bf16.vlgmr.msra.gmra.mxu0 %v4492_v38 }
 0x276   : > { %v11258_v9 = vpop.permute.xlu0 %2792  ;;  %8317 = vmatprep.subr.bf16.mxu1 %v9162_v7  ;;  %8326 = vmatpush3.bf16.msra.mxu0 %v9165_v48  ;;  %v9169_v7 = vld [vmem:[%s12600_s2 + $0x428] sm:$0xff]  }
 0x277   : > { %v11263_v6 = vpop.permute.xlu1 %4089  ;;  %v8166_v4 = vpop.f32.mrf.mxu0  ;;  %8318 = vmatpush3.bf16.msra.mxu1 %v9164_v1  ;;  %8327 = vmatprep.subr.bf16.mxu0 %v9166_v42  ;;  %v9170_v42 = vld [vmem:[%s12600_s2 + $0x460] sm:$0xff]  }
 0x278   : > { %v11268_v24 = vadd.f32 %v8166_v4, %v8165_v57  ;;  %4103 = vrot.lane.b32.xlu0 %v10552_v27, %s9381_s26  ;;  %8347 = vmatprep.subr.bf16.mxu1 %v9180_v0  ;;  %v9171_v57 = vld [vmem:[%s12600_s2 + $0x420] sm:$0xff]   ;;  %v9172_v4 = vld [vmem:[%s12600_s2 + $0x458] sm:$0xff]   ;;  %v3129_v27 = vrot.slane %v10991_v11, 2 }
 0x279   : > { %3681 = vrot.lane.b32.xlu1 %v10594_v63, %s12627_s18  ;;  %v8168_v38 = vpop.f32.mrf.mxu0 }
 0x27a   : > { %v11274_v10 = vpop.permute.xlu0 %2796  ;;  %8328 = vmatpush3.bf16.msra.mxu0 %v9167_v21 }
 0x27b   : > { %v11279_v48 = vpop.permute.xlu1 %4093  ;;  %v8169_v1 = vpop.f32.mrf.mxu0  ;;  %8329 = vmatprep.subr.bf16.mxu0 %v9168_v25  ;;  %v3015_v25 = vsel %vm3000_vm2, %v11080_v34, %v11110_v15 }
 0x27c   : > { %4347 = vrot.lane.b32.xlu0 %v10971_v14, %s12622_s10  ;;  %v3014_v14 = vsel %vm3000_vm2, %v11004_v60, %v11080_v34  ;;  %v3221_v60 = vsel %vm3207_vm3, %v11035_v17, %v11105_v8  ;;  %v9174_v34 = vld [vmem:[%s12600_s2 + $0x450] sm:$0xff]  }
 0x27d   : > { %3891 = vrot.lane.b32.xlu1 %v10991_v11, %s9380_s20 }
 0x27e   : > { %v11288_v0 = vpop.permute.xlu0 %2964  ;;  %8330 = vmatpush3.bf16.msra.mxu0 %v9169_v7  ;;  %v9173_v7 = vld [vmem:[%s12600_s2 + $0x418] sm:$0xff]  }
 0x27f   : > { %v11293_v21 = vpop.permute.xlu1 %2794  ;;  %8331 = vmatprep.subr.bf16.mxu0 %v9170_v42  ;;  %v2843_v42 = vsel %vm2828_vm1, %v10923_v26, %v10973_v19 }
 0x280   : > { %4351 = vrot.lane.b32.xlu0 %v10589_v55, %s12622_s10  ;;  %v2842_v55 = vsel %vm2828_vm1, %v10945_v30, %v10923_v26  ;;  %v3222_v30 = vsel %vm3207_vm3, %v11105_v8, %v11135_v59  ;;  %v3085_v17 = vadd.f32 %v3015_v25, %v2843_v42  ;;  %v3433_v26 = vsel %vm3418_vm4, %v11127_v56, %v11162_v43  ;;  %v9175_v8 = vld [vmem:[%s12600_s2 + $0x410] sm:$0xff]  }
 0x281   : > { %3895 = vrot.lane.b32.xlu1 %v10594_v63, %s9380_s20 }
 0x282   : > { %v11308_v38 = vpop.permute.xlu0 %3171  ;;  %8332 = vmatpush3.bf16.msra.mxu0 %v9171_v57  ;;  %v3084_v57 = vadd.f32 %v3014_v14, %v2842_v55  ;;  %v3292_v25 = vadd.f32 %v3222_v30, %v3085_v17  ;;  %v9177_v17 = vld [vmem:[%s12600_s2 + $0x408] sm:$0xff]  }
 0x283   : > { %v11319_v1 = vpop.permute.xlu1 %2798  ;;  %8333 = vmatprep.subr.bf16.mxu0 %v9172_v4  ;;  %v3432_v4 = vsel %vm3418_vm4, %v11054_v22, %v11127_v56  ;;  %v3714_v22 = vsel %vm3699_vm5, %v10863_v12, %v11156_v5  ;;  %v3928_v12 = vsel %vm3913_vm6, %v10895_v51, %v11182_v37  ;;  %v3539_v51 = vrot.slane %v10369_v41, 4 }
 0x284   : > { %2808 = vrot.lane.b32.xlu0 %v10991_v11, %s12642_s13  ;;  %v3291_v50 = vadd.f32 %v3221_v60, %v3084_v57  ;;  %v9176_v60 = vld [vmem:[%s12600_s2 + $0x448] sm:$0xff]   ;;  %v3504_v42 = vadd.f32 %v3433_v26, %v3292_v25  ;;  %v3752_v57 = vrot.slane %v3714_v22, 5  ;;  %v4143_v22 = vsel %vm4127_vm7, %v11204_v35, %v11263_v6 }
 0x285   : > { %4105 = vrot.lane.b32.xlu1 %v10991_v11, %s9381_s26 }
 0x286   : > { %v11340_v14 = vpop.permute.xlu0 %3380  ;;  %8334 = vmatpush3.bf16.msra.mxu0 %v9173_v7  ;;  %v3503_v56 = vadd.f32 %v3432_v4, %v3291_v50  ;;  %v3715_v7 = vsel %vm3699_vm5, %v11156_v5, %v11188_v45  ;;  %v3929_v50 = vsel %vm3913_vm6, %v11182_v37, %v11224_v61  ;;  %v2922_v5 = vrot.slane %v10991_v11, 1  ;;  %v9178_v37 = vld [vmem:[%s12600_s2 + $0x440] sm:$0xff]  }
 0x287   : > { %v11348_v55 = vpop.permute.xlu1 %2966  ;;  %8335 = vmatprep.subr.bf16.mxu0 %v9174_v34  ;;  %v3538_v34 = vrot.slane %v10235_v52, 4  ;;  %v3753_v4 = vrot.slane %v3715_v7, 5  ;;  %v4142_v52 = vsel %vm4127_vm7, %v10930_v54, %v11204_v35  ;;  %v3609_v41 = vadd.f32 %v3539_v51, %v3504_v42  ;;  %v9195_v42 = vld [vmem:[%s12600_s2 + $0x578] sm:$0xff]  }
 0x288   : > { %2812 = vrot.lane.b32.xlu0 %v10594_v63, %s12642_s13  ;;  %v3967_v7 = vrot.slane %v3929_v50, 6  ;;  %v4179_v49 = vrot.slane %v4142_v52, 7  ;;  %v4180_v35 = vrot.slane %v4143_v22, 7  ;;  %v3017_v22 = vsel %vm3000_vm2, %v11288_v0, %v11348_v55 }
 0x289   : > { %4109 = vrot.lane.b32.xlu1 %v10594_v63, %s9381_s26  ;;  %v3608_v25 = vadd.f32 %v3538_v34, %v3503_v56  ;;  %v9179_v56 = vld [vmem:[%s12600_s2 + $0x400] sm:$0xff]  }
 0x28a   : > { %v11367_v30 = vpop.permute.xlu0 %3663  ;;  %8336 = vmatpush3.bf16.msra.mxu0 %v9175_v8  ;;  %v3966_v8 = vrot.slane %v3928_v12, 6  ;;  %v3823_v12 = vadd.f32 %v3753_v4, %v3609_v41  ;;  %v3337_v4 = vrot.slane %v10991_v11, 3 }
 0x28b   : > { %v11377_v26 = vpop.permute.xlu1 %3173  ;;  %8337 = vmatprep.subr.bf16.mxu0 %v9176_v60  ;;  %v3822_v54 = vadd.f32 %v3752_v57, %v3608_v25  ;;  %v2923_v25 = vrot.slane %v11019_v36, 1 }
 0x28c   : > { %2980 = vrot.lane.b32.xlu0 %v2922_v5, %s12639_s16  ;;  %v4037_v50 = vadd.f32 %v3967_v7, %v3823_v12  ;;  %v4390_v5 = vsel %vm4375_vm8, %v11085_v33, %v11235_v29  ;;  %v9182_v12 = vld [vmem:[%s12600_s2 + $0x4f0] sm:$0xff]  }
 0x28d   : > { %2810 = vrot.lane.b32.xlu1 %v11019_v36, %s12642_s13  ;;  %v4036_v57 = vadd.f32 %v3966_v8, %v3822_v54  ;;  %v3130_v54 = vrot.slane %v11019_v36, 2 }
 0x28e   : > { %v11388_v60 = vpop.permute.xlu0 %3877  ;;  %8338 = vmatpush3.bf16.msra.mxu0 %v9177_v17  ;;  %v4250_v52 = vadd.f32 %v4180_v35, %v4037_v50  ;;  %v5060_v35 = vld [vmem:[%s12601_s3] sm:$0x1] }
 0x28f   : > { %v11394_v34 = vpop.permute.xlu1 %3382  ;;  %8339 = vmatprep.subr.bf16.mxu0 %v9178_v37  ;;  %v4249_v17 = vadd.f32 %v4179_v49, %v4036_v57  ;;  %v3224_v57 = vsel %vm3207_vm3, %v11308_v38, %v11377_v26 }
 0x290   : > { %3187 = vrot.lane.b32.xlu0 %v3129_v27, %s12634_s15 }
 0x291   : > { %2814 = vrot.lane.b32.xlu1 %v10616_v23, %s12642_s13  ;;  %v4459_v27 = vadd.f32 %v4390_v5, %v4249_v17 }
 0x292   : > { %v11405_v51 = vpop.permute.xlu0 %4091  ;;  %8340 = vmatpush3.bf16.msra.mxu0 %v9179_v56 }
 0x293   : > { %v11408_v37 = vpop.permute.xlu1 %4337  ;;  %8369 = vmatprep.subr.bf16.mxu0 %v9195_v42  ;;  %v4494_v56 = vpack.c.bf16 %v4459_v27, %v4459_v27  ;;  %v2845_v42 = vsel %vm2828_vm1, %v11258_v9, %v11293_v21  ;;  %v3338_v27 = vrot.slane %v11019_v36, 3 }
 0x294   : > { %v4391_v33 = vsel %vm4375_vm8, %v11235_v29, %v11408_v37  ;;  %3396 = vrot.lane.b32.xlu0 %v3337_v4, %s12626_s11  ;;  %v9181_v29 = vld [vmem:[%s12600_s2 + $0x4b8] sm:$0xff]   ;;  %v3087_v5 = vadd.f32 %v3017_v22, %v2845_v42  ;;  %v3435_v4 = vsel %vm3418_vm4, %v11340_v14, %v11394_v34 }
 0x295   : > { %2982 = vrot.lane.b32.xlu1 %v2923_v25, %s12639_s16  ;;  %v4460_v49 = vadd.f32 %v4391_v33, %v4250_v52  ;;  %v9183_v33 = vld [vmem:[%s12600_s2 + $0x4b0] sm:$0xff]  }
 0x296   : > { %v11416_v8 = vpop.permute.xlu0 %2968  ;;  %v3294_v22 = vadd.f32 %v3224_v57, %v3087_v5  ;;  %v3541_v5 = vrot.slane %v10701_v46, 4 }
 0x297   : > { %v11421_v41 = vpop.permute.xlu1 %4341  ;;  %v4495_v7 = vpack.c.bf16 %v4460_v49, %v4460_v49  ;;  %v6739_v49 = vadd.f32 %v11268_v24, %v5060_v35  ;;  %v3223_v35 = vsel %vm3207_vm3, %v11135_v59, %v11308_v38  ;;  %v3434_v59 = vsel %vm3418_vm4, %v11162_v43, %v11340_v14  ;;  %v9187_v43 = vld [vmem:[%s12600_s2 + $0x4a0] sm:$0xff]  }
 0x298   : > { %3679 = vrot.lane.b32.xlu0 %v11019_v36, %s12627_s18  ;;  %v3506_v42 = vadd.f32 %v3435_v4, %v3294_v22  ;;  %v12643_v22 = vld [vmem:[#allocation7_spill] sm:$0xff] }
 0x299   : > { %7016 = vmatprep.mubr.bf16.mxu1 %v4495_v7  ;;  %3189 = vrot.lane.b32.xlu1 %v3130_v54, %s12634_s15  ;;  %v8187_v50 = vpop.f32.mrf.mxu1  ;;  %v9184_v54 = vld [vmem:[%s12600_s2 + $0x4e8] sm:$0xff]  }
 0x29a   : > { %7017 = vmatmul.mubr.bf16.vlgmr.msra.gmra.mxu1 %v4494_v56  ;;  %v11442_v17 = vpop.permute.xlu0 %3175  ;;  %v3611_v38 = vadd.f32 %v3541_v5, %v3506_v42  ;;  %v3131_v42 = vrot.slane %v10594_v63, 2 }
 0x29b   : > { %v11447_v52 = vpop.permute.xlu1 %2970  ;;  %v8188_v25 = vpop.f32.mrf.mxu1  ;;  %8348 = vmatpush3.bf16.msra.mxu1 %v9181_v29  ;;  %v3016_v29 = vsel %vm3000_vm2, %v11110_v15, %v11288_v0  ;;  %v9185_v15 = vld [vmem:[%s12600_s2 + $0x4a8] sm:$0xff]  }
 0x29c   : > { %v8189_v7 = vadd.f32 %v8188_v25, %v8187_v50  ;;  %3893 = vrot.lane.b32.xlu0 %v11019_v36, %s9380_s20  ;;  %8349 = vmatprep.subr.bf16.mxu1 %v9182_v12  ;;  %v2844_v12 = vsel %vm2828_vm1, %v10973_v19, %v11258_v9  ;;  %v9186_v19 = vld [vmem:[%s12600_s2 + $0x4e0] sm:$0xff]   ;;  %v3717_v9 = vsel %vm3699_vm5, %v11367_v30, %v11207_v62  ;;  %v2924_v25 = vrot.slane %v10594_v63, 1 }
 0x29d   : > { %3398 = vrot.lane.b32.xlu1 %v3338_v27, %s12626_s11  ;;  %v8190_v56 = vpop.f32.mrf.mxu1  ;;  %v3086_v0 = vadd.f32 %v3016_v29, %v2844_v12  ;;  %v3716_v27 = vsel %vm3699_vm5, %v11188_v45, %v11367_v30  ;;  %v3930_v45 = vsel %vm3913_vm6, %v11224_v61, %v11388_v60  ;;  %v3931_v30 = vsel %vm3913_vm6, %v11388_v60, %v11243_v2  ;;  %v9189_v60 = vld [vmem:[%s12600_s2 + $0x498] sm:$0xff]  }
 0x29e   : > { %v11463_v11 = vadd.f32 %v8189_v7, %v6739_v49  ;;  %v11465_v24 = vpop.permute.xlu0 %3384  ;;  %v3755_v49 = vrot.slane %v3717_v9, 5  ;;  %v3540_v7 = vrot.slane %v10557_v18, 4  ;;  %v4144_v12 = vsel %vm4127_vm7, %v11263_v6, %v11405_v51 }
 0x29f   : > { %v11473_v57 = vpop.permute.xlu1 %3177  ;;  %v8191_v50 = vpop.f32.mrf.mxu1  ;;  %8350 = vmatpush3.bf16.msra.mxu1 %v9183_v33  ;;  %v3293_v46 = vadd.f32 %v3223_v35, %v3086_v0  ;;  %v2925_v35 = vrot.slane %v10616_v23, 1  ;;  %v9190_v0 = vld [vmem:[%s12600_s2 + $0x4d0] sm:$0xff]   ;;  %v4145_v6 = vsel %vm4127_vm7, %v11405_v51, %v11279_v48  ;;  %v9192_v51 = vld [vmem:[%s12600_s2 + $0x4c8] sm:$0xff]  }
 0x2a0   : > { %4107 = vrot.lane.b32.xlu0 %v11019_v36, %s9381_s26  ;;  %8351 = vmatprep.subr.bf16.mxu1 %v9184_v54  ;;  %v3754_v54 = vrot.slane %v3716_v27, 5  ;;  %v3825_v29 = vadd.f32 %v3755_v49, %v3611_v38  ;;  %v3968_v50 = vrot.slane %v3930_v45, 6  ;;  %v3132_v38 = vrot.slane %v10616_v23, 2 }
 0x2a1   : > { %4353 = vrot.lane.b32.xlu1 %v11046_v39, %s12622_s10  ;;  %v3505_v14 = vadd.f32 %v3434_v59, %v3293_v46  ;;  %v9188_v39 = vld [vmem:[%s12600_s2 + $0x4d8] sm:$0xff]   ;;  %v4181_v59 = vrot.slane %v4144_v12, 7  ;;  %v3339_v45 = vrot.slane %v10594_v63, 3 }
 0x2a2   : > { %v11492_v4 = vpop.permute.xlu0 %3667 }
 0x2a3   : > { %v11498_v33 = vpop.permute.xlu1 %3386  ;;  %8352 = vmatpush3.bf16.msra.mxu1 %v9185_v15  ;;  %v3610_v18 = vadd.f32 %v3540_v7, %v3505_v14  ;;  %v3969_v15 = vrot.slane %v3931_v30, 6 }
 0x2a4   : > { %2984 = vrot.lane.b32.xlu0 %v2924_v25, %s12639_s16  ;;  %8353 = vmatprep.subr.bf16.mxu1 %v9186_v19  ;;  %v9191_v25 = vld [vmem:[%s12600_s2 + $0x490] sm:$0xff]  }
 0x2a5   : > { %4357 = vrot.lane.b32.xlu1 %v12643_v22, %s12622_s10  ;;  %v3824_v5 = vadd.f32 %v3754_v54, %v3610_v18  ;;  %v4039_v19 = vadd.f32 %v3969_v15, %v3825_v29  ;;  %v9193_v54 = vld [vmem:[%s12600_s2 + $0x488] sm:$0xff]   ;;  %v9197_v18 = vld [vmem:[%s12600_s2 + $0x538] sm:$0xff]   ;;  %v9196_v15 = vld [vmem:[%s12600_s2 + $0x480] sm:$0xff]  }
 0x2a6   : > { %v11516_v56 = vpop.permute.xlu0 %3881 }
 0x2a7   : > { %v11522_v61 = vpop.permute.xlu1 %3669  ;;  %8354 = vmatpush3.bf16.msra.mxu1 %v9187_v43  ;;  %v4038_v27 = vadd.f32 %v3968_v50, %v3824_v5  ;;  %v4182_v43 = vrot.slane %v4145_v6, 7  ;;  %v9212_v6 = vld [vmem:[%s12600_s2 + $0x5f8] sm:$0xff]  }
 0x2a8   : > { %3191 = vrot.lane.b32.xlu0 %v3131_v42, %s12634_s15  ;;  %8355 = vmatprep.subr.bf16.mxu1 %v9188_v39 }
 0x2a9   : > { %2986 = vrot.lane.b32.xlu1 %v2925_v35, %s12639_s16  ;;  %v4251_v14 = vadd.f32 %v4181_v59, %v4038_v27  ;;  %v4252_v49 = vadd.f32 %v4182_v43, %v4039_v19  ;;  %v9199_v59 = vld [vmem:[%s12600_s2 + $0x530] sm:$0xff]   ;;  %v9200_v27 = vld [vmem:[%s12600_s2 + $0x568] sm:$0xff]  }
 0x2aa   : > { %v11536_v9 = vpop.permute.xlu0 %4095 }
 0x2ab   : > { %v11538_v46 = vpop.permute.xlu1 %3673  ;;  %8356 = vmatpush3.bf16.msra.mxu1 %v9189_v60  ;;  %v9194_v60 = vld [vmem:[%s12600_s2 + $0x4c0] sm:$0xff]  }
 0x2ac   : > { %4355 = vrot.lane.b32.xlu0 %v11065_v28, %s12622_s10  ;;  %8357 = vmatprep.subr.bf16.mxu1 %v9190_v0  ;;  %v3340_v28 = vrot.slane %v10616_v23, 3  ;;  %v9198_v0 = vld [vmem:[%s12600_s2 + $0x570] sm:$0xff]  }
 0x2ad   : > { %3193 = vrot.lane.b32.xlu1 %v3132_v38, %s12634_s15 }
 0x2ae   : > { %v4340_v39 = vpop.permute.xlu0 %4339 }
 0x2af   : > { %v4392_v30 = vsel %vm4375_vm8, %v11408_v37, %v4340_v39  ;;  %v4393_v22 = vsel %vm4375_vm8, %v4340_v39, %v11421_v41  ;;  %v11555_v7 = vpop.permute.xlu1 %3883  ;;  %8358 = vmatpush3.bf16.msra.mxu1 %v9191_v25  ;;  %v2926_v39 = vrot.slane %v11078_v53, 1 }
 0x2b0   : > { %v4461_v29 = vadd.f32 %v4392_v30, %v4251_v14  ;;  %3400 = vrot.lane.b32.xlu0 %v3339_v45, %s12626_s11  ;;  %v4462_v42 = vadd.f32 %v4393_v22, %v4252_v49  ;;  %8359 = vmatprep.subr.bf16.mxu1 %v9192_v51  ;;  %v9201_v45 = vld [vmem:[%s12600_s2 + $0x528] sm:$0xff]  }
 0x2b1   : > { %3402 = vrot.lane.b32.xlu1 %v3340_v28, %s12626_s11  ;;  %v9202_v28 = vld [vmem:[%s12600_s2 + $0x560] sm:$0xff]  }
 0x2b2   : > { %v4496_v37 = vpack.c.bf16 %v4461_v29, %v4461_v29  ;;  %v11563_v12 = vpop.permute.xlu0 %4343  ;;  %v4497_v35 = vpack.c.bf16 %v4462_v42, %v4462_v42  ;;  %v9203_v29 = vld [vmem:[%s12600_s2 + $0x520] sm:$0xff]  }
 0x2b3   : > { %v11571_v50 = vpop.permute.xlu1 %3887  ;;  %8360 = vmatpush3.bf16.msra.mxu1 %v9193_v54  ;;  %v3133_v54 = vrot.slane %v11078_v53, 2 }
 0x2b4   : > { %7056 = vmatprep.mubr.bf16.mxu0 %v4497_v35  ;;  %3683 = vrot.lane.b32.xlu0 %v10616_v23, %s12627_s18  ;;  %v9204_v35 = vld [vmem:[%s12600_s2 + $0x558] sm:$0xff]  }
 0x2b5   : > { %3685 = vrot.lane.b32.xlu1 %v11078_v53, %s12627_s18  ;;  %v8209_v5 = vpop.f32.mrf.mxu0  ;;  %7057 = vmatmul.mubr.bf16.vlgmr.msra.gmra.mxu0 %v4496_v37  ;;  %v2927_v37 = vrot.slane %v11103_v32, 1 }
 0x2b6   : > { %v11586_v19 = vpop.permute.xlu0 %2800  ;;  %8361 = vmatprep.subr.bf16.mxu1 %v9194_v60  ;;  %8370 = vmatpush3.bf16.msra.mxu0 %v9197_v18  ;;  %v3018_v60 = vsel %vm3000_vm2, %v11348_v55, %v11416_v8  ;;  %v3019_v18 = vsel %vm3000_vm2, %v11416_v8, %v11447_v52  ;;  %v3225_v55 = vsel %vm3207_vm3, %v11377_v26, %v11442_v17  ;;  %v3134_v8 = vrot.slane %v11103_v32, 2 }
 0x2b7   : > { %v11591_v38 = vpop.permute.xlu1 %4097  ;;  %v8210_v25 = vpop.f32.mrf.mxu0  ;;  %8362 = vmatpush3.bf16.msra.mxu1 %v9196_v15  ;;  %8371 = vmatprep.subr.bf16.mxu0 %v9198_v0  ;;  %v3341_v0 = vrot.slane %v11078_v53, 3 }
 0x2b8   : > { %v8211_v43 = vadd.f32 %v8210_v25, %v8209_v5  ;;  %2816 = vrot.lane.b32.xlu0 %v11078_v53, %s12642_s13  ;;  %8391 = vmatprep.subr.bf16.mxu1 %v9212_v6  ;;  %v9205_v6 = vld [vmem:[%s12600_s2 + $0x518] sm:$0xff]   ;;  %v2846_v5 = vsel %vm2828_vm1, %v11293_v21, %v11274_v10  ;;  %v9206_v25 = vld [vmem:[%s12600_s2 + $0x550] sm:$0xff]   ;;  %v3226_v21 = vsel %vm3207_vm3, %v11442_v17, %v11473_v57 }
 0x2b9   : > { %3689 = vrot.lane.b32.xlu1 %v10699_v16, %s12627_s18  ;;  %v8212_v51 = vpop.f32.mrf.mxu0  ;;  %v9207_v17 = vld [vmem:[%s12600_s2 + $0x510] sm:$0xff]  }
 0x2ba   : > { %v11601_v14 = vadd.f32 %v8211_v43, %v11463_v11  ;;  %v11603_v49 = vpop.permute.xlu0 %2804  ;;  %8372 = vmatpush3.bf16.msra.mxu0 %v9199_v59  ;;  %v3088_v43 = vadd.f32 %v3018_v60, %v2846_v5  ;;  %v3436_v51 = vsel %vm3418_vm4, %v11394_v34, %v11465_v24  ;;  %v3542_v60 = vrot.slane %v10456_v20, 4  ;;  %v12644_v5 = vld [vmem:[#allocation5_spill] sm:$0xff] }
 0x2bb   : > { %v11609_v30 = vpop.permute.xlu1 %4101  ;;  %v8213_v22 = vpop.f32.mrf.mxu0  ;;  %8373 = vmatprep.subr.bf16.mxu0 %v9200_v27  ;;  %v2847_v27 = vsel %vm2828_vm1, %v11274_v10, %v11319_v1 }
 0x2bc   : > { %2988 = vrot.lane.b32.xlu0 %v2926_v39, %s12639_s16  ;;  %v3089_v26 = vadd.f32 %v3019_v18, %v2847_v27  ;;  %v3295_v39 = vadd.f32 %v3225_v55, %v3088_v43  ;;  %v3543_v55 = vrot.slane %v12644_v5, 4  ;;  %v4147_v43 = vsel %vm4127_vm7, %v11536_v9, %v11591_v38 }
 0x2bd   : > { %2818 = vrot.lane.b32.xlu1 %v11103_v32, %s12642_s13 }
 0x2be   : > { %v11617_v11 = vpop.permute.xlu0 %2972  ;;  %8374 = vmatpush3.bf16.msra.mxu0 %v9201_v45  ;;  %v3437_v45 = vsel %vm3418_vm4, %v11465_v24, %v11498_v33  ;;  %v3296_v22 = vadd.f32 %v3226_v21, %v3089_v26  ;;  %v9208_v24 = vld [vmem:[%s12600_s2 + $0x548] sm:$0xff]  }
 0x2bf   : > { %v11623_v42 = vpop.permute.xlu1 %2802  ;;  %8375 = vmatprep.subr.bf16.mxu0 %v9202_v28  ;;  %v3718_v28 = vsel %vm3699_vm5, %v11207_v62, %v11492_v4  ;;  %v3932_v62 = vsel %vm3913_vm6, %v11243_v2, %v11516_v56  ;;  %v4146_v2 = vsel %vm4127_vm7, %v11279_v48, %v11536_v9 }
 0x2c0   : > { %3195 = vrot.lane.b32.xlu0 %v3133_v54, %s12634_s15  ;;  %v3342_v54 = vrot.slane %v11103_v32, 3  ;;  %v3756_v18 = vrot.slane %v3718_v28, 5  ;;  %v3970_v27 = vrot.slane %v3932_v62, 6  ;;  %v9219_v28 = vld [vmem:[%s12600_s2 + $0x678] sm:$0xff]  }
 0x2c1   : > { %2990 = vrot.lane.b32.xlu1 %v2927_v37, %s12639_s16  ;;  %v3719_v37 = vsel %vm3699_vm5, %v11492_v4, %v11522_v61  ;;  %v9209_v4 = vld [vmem:[%s12600_s2 + $0x508] sm:$0xff]  }
 0x2c2   : > { %v11637_v15 = vpop.permute.xlu0 %3179  ;;  %8376 = vmatpush3.bf16.msra.mxu0 %v9203_v29  ;;  %v3507_v29 = vadd.f32 %v3436_v51, %v3295_v39  ;;  %v4183_v51 = vrot.slane %v4146_v2, 7 }
 0x2c3   : > { %v11649_v59 = vpop.permute.xlu1 %2806  ;;  %8377 = vmatprep.subr.bf16.mxu0 %v9204_v35  ;;  %v3508_v35 = vadd.f32 %v3437_v45, %v3296_v22  ;;  %v9211_v45 = vld [vmem:[%s12600_s2 + $0x500] sm:$0xff]   ;;  %v4184_v22 = vrot.slane %v4147_v43, 7 }
 0x2c4   : > { %3404 = vrot.lane.b32.xlu0 %v3341_v0, %s12626_s11  ;;  %v3933_v0 = vsel %vm3913_vm6, %v11516_v56, %v11555_v7  ;;  %v9210_v56 = vld [vmem:[%s12600_s2 + $0x540] sm:$0xff]  }
 0x2c5   : > { %3197 = vrot.lane.b32.xlu1 %v3134_v8, %s12634_s15  ;;  %v3757_v8 = vrot.slane %v3719_v37, 5  ;;  %v3613_v21 = vadd.f32 %v3543_v55, %v3508_v35  ;;  %v3971_v26 = vrot.slane %v3933_v0, 6 }
 0x2c6   : > { %v11669_v10 = vpop.permute.xlu0 %3388  ;;  %8378 = vmatpush3.bf16.msra.mxu0 %v9205_v6 }
 0x2c7   : > { %v11677_v34 = vpop.permute.xlu1 %2974  ;;  %8379 = vmatprep.subr.bf16.mxu0 %v9206_v25  ;;  %v3612_v25 = vadd.f32 %v3542_v60, %v3507_v29  ;;  %v4394_v29 = vsel %vm4375_vm8, %v11421_v41, %v11563_v12 }
 0x2c8   : > { %3687 = vrot.lane.b32.xlu0 %v11103_v32, %s12627_s18  ;;  %v3021_v5 = vsel %vm3000_vm2, %v11617_v11, %v11677_v34 }
 0x2c9   : > { %3406 = vrot.lane.b32.xlu1 %v3342_v54, %s12626_s11  ;;  %v3826_v48 = vadd.f32 %v3756_v18, %v3612_v25  ;;  %v2849_v25 = vsel %vm2828_vm1, %v11586_v19, %v11623_v42 }
 0x2ca   : > { %v11696_v6 = vpop.permute.xlu0 %3671  ;;  %8380 = vmatpush3.bf16.msra.mxu0 %v9207_v17  ;;  %v3827_v17 = vadd.f32 %v3757_v8, %v3613_v21  ;;  %v3091_v21 = vadd.f32 %v3021_v5, %v2849_v25  ;;  %v3227_v5 = vsel %vm3207_vm3, %v11473_v57, %v11637_v15  ;;  %v3438_v57 = vsel %vm3418_vm4, %v11498_v33, %v11669_v10  ;;  %v9220_v33 = vld [vmem:[%s12600_s2 + $0x5a0] sm:$0xff]  }
 0x2cb   : > { %v11705_v20 = vpop.permute.xlu1 %3181  ;;  %8381 = vmatprep.subr.bf16.mxu0 %v9208_v24  ;;  %v4040_v54 = vadd.f32 %v3970_v27, %v3826_v48 }
 0x2cc   : > { %3897 = vrot.lane.b32.xlu0 %v10616_v23, %s9380_s20  ;;  %v4041_v24 = vadd.f32 %v3971_v26, %v3827_v17  ;;  %v3228_v27 = vsel %vm3207_vm3, %v11637_v15, %v11705_v20  ;;  %v9215_v17 = vld [vmem:[%s12600_s2 + $0x5b0] sm:$0xff]  }
 0x2cd   : > { %3899 = vrot.lane.b32.xlu1 %v11078_v53, %s9380_s20  ;;  %v4253_v37 = vadd.f32 %v4183_v51, %v4040_v54  ;;  %v12646_v54 = vld [vmem:[#allocation8_spill] sm:$0xff]  ;;  %v12647_v15 = vld [vmem:[#allocation10_spill] sm:$0xff] }
 0x2ce   : > { %v11717_v39 = vpop.permute.xlu0 %3885  ;;  %8382 = vmatpush3.bf16.msra.mxu0 %v9209_v4  ;;  %v4254_v62 = vadd.f32 %v4184_v22, %v4041_v24  ;;  %v3298_v22 = vadd.f32 %v3228_v27, %v3091_v21  ;;  %v9216_v24 = vld [vmem:[%s12600_s2 + $0x5e8] sm:$0xff]   ;;  %v9222_v27 = vld [vmem:[%s12600_s2 + $0x5d8] sm:$0xff]   ;;  %v3544_v21 = vrot.slane %v10903_v31, 4 }
 0x2cf   : > { %v11722_v9 = vpop.permute.xlu1 %3390  ;;  %8383 = vmatprep.subr.bf16.mxu0 %v9210_v56  ;;  %v4463_v18 = vadd.f32 %v4394_v29, %v4253_v37  ;;  %v9214_v56 = vld [vmem:[%s12600_s2 + $0x5f0] sm:$0xff]   ;;  %v3020_v29 = vsel %vm3000_vm2, %v11447_v52, %v11617_v11  ;;  %v3545_v11 = vrot.slane %v10928_v58, 4 }
 0x2d0   : > { %3901 = vrot.lane.b32.xlu0 %v11103_v32, %s9380_s20  ;;  %v3439_v48 = vsel %vm3418_vm4, %v11669_v10, %v11722_v9 }
 0x2d1   : > { %3903 = vrot.lane.b32.xlu1 %v10699_v16, %s9380_s20  ;;  %v4498_v2 = vpack.c.bf16 %v4463_v18, %v4463_v18 }
 0x2d2   : > { %v11734_v35 = vpop.permute.xlu0 %4099  ;;  %8384 = vmatpush3.bf16.msra.mxu0 %v9211_v45 }
 0x2d3   : > { %v11736_v60 = vpop.permute.xlu1 %4345  ;;  %8413 = vmatprep.subr.bf16.mxu0 %v9219_v28 }
 0x2d4   : > { %v4395_v0 = vsel %vm4375_vm8, %v11563_v12, %v11736_v60  ;;  %4111 = vrot.lane.b32.xlu0 %v10616_v23, %s9381_s26  ;;  %v9213_v12 = vld [vmem:[%s12600_s2 + $0x5b8] sm:$0xff]  }
 0x2d5   : > { %v4464_v41 = vadd.f32 %v4395_v0, %v4254_v62  ;;  %4113 = vrot.lane.b32.xlu1 %v11078_v53, %s9381_s26  ;;  %v3510_v62 = vadd.f32 %v3439_v48, %v3298_v22  ;;  %v2928_v22 = vrot.slane %v10699_v16, 1 }
 0x2d6   : > { %v11745_v4 = vpop.permute.xlu0 %2976 }
 0x2d7   : > { %v4499_v55 = vpack.c.bf16 %v4464_v41, %v4464_v41  ;;  %v11750_v8 = vpop.permute.xlu1 %4349  ;;  %v2848_v41 = vsel %vm2828_vm1, %v11319_v1, %v11586_v19  ;;  %v9218_v1 = vld [vmem:[%s12600_s2 + $0x5e0] sm:$0xff]   ;;  %v3721_v19 = vsel %vm3699_vm5, %v11696_v6, %v11538_v46 }
 0x2d8   : > { %4115 = vrot.lane.b32.xlu0 %v11103_v32, %s9381_s26  ;;  %v3759_v25 = vrot.slane %v3721_v19, 5 }
 0x2d9   : > { %7096 = vmatprep.mubr.bf16.mxu1 %v4499_v55  ;;  %4117 = vrot.lane.b32.xlu1 %v10699_v16, %s9381_s26  ;;  %v8231_v43 = vpop.f32.mrf.mxu1 }
 0x2da   : > { %7097 = vmatmul.mubr.bf16.vlgmr.msra.gmra.mxu1 %v4498_v2  ;;  %v11768_v26 = vpop.permute.xlu0 %3183 }
 0x2db   : > { %v11773_v51 = vpop.permute.xlu1 %2978  ;;  %v8232_v45 = vpop.f32.mrf.mxu1  ;;  %8392 = vmatpush3.bf16.msra.mxu1 %v9213_v12  ;;  %v3615_v12 = vadd.f32 %v3545_v11, %v3510_v62 }
 0x2dc   : > { %v8233_v28 = vadd.f32 %v8232_v45, %v8231_v43  ;;  %4359 = vrot.lane.b32.xlu0 %v12646_v54, %s12645_s29  ;;  %8393 = vmatprep.subr.bf16.mxu1 %v9214_v56  ;;  %v12648_v43 = vld [vmem:[#allocation9_spill] sm:$0xff] }
 0x2dd   : > { %4361 = vrot.lane.b32.xlu1 %v11125_v13, %s12645_s29  ;;  %v8234_v37 = vpop.f32.mrf.mxu1  ;;  %v9217_v13 = vld [vmem:[%s12600_s2 + $0x5a8] sm:$0xff]   ;;  %v3829_v45 = vadd.f32 %v3759_v25, %v3615_v12  ;;  %v2929_v54 = vrot.slane %v12648_v43, 1 }
 0x2de   : > { %v11789_v18 = vadd.f32 %v8233_v28, %v11601_v14  ;;  %v11791_v0 = vpop.permute.xlu0 %3392  ;;  %v3090_v14 = vadd.f32 %v3020_v29, %v2848_v41  ;;  %v4148_v28 = vsel %vm4127_vm7, %v11591_v38, %v11734_v35  ;;  %v9226_v37 = vld [vmem:[%s12600_s2 + $0x5d0] sm:$0xff]   ;;  %v4149_v38 = vsel %vm4127_vm7, %v11734_v35, %v11609_v30  ;;  %v9230_v35 = vld [vmem:[%s12600_s2 + $0x5c8] sm:$0xff]  }
 0x2df   : > { %v11799_v55 = vpop.permute.xlu1 %3185  ;;  %v8235_v52 = vpop.f32.mrf.mxu1  ;;  %8394 = vmatpush3.bf16.msra.mxu1 %v9215_v17  ;;  %v4185_v41 = vrot.slane %v4148_v28, 7  ;;  %v9232_v25 = vld [vmem:[%s12600_s2 + $0x588] sm:$0xff]  }
 0x2e0   : > { %4363 = vrot.lane.b32.xlu0 %v11154_v40, %s12645_s29  ;;  %8395 = vmatprep.subr.bf16.mxu1 %v9216_v24  ;;  %v3297_v58 = vadd.f32 %v3227_v5, %v3090_v14  ;;  %v3720_v40 = vsel %vm3699_vm5, %v11522_v61, %v11696_v6  ;;  %v3934_v61 = vsel %vm3913_vm6, %v11555_v7, %v11717_v39  ;;  %v9228_v14 = vld [vmem:[%s12600_s2 + $0x590] sm:$0xff]  }
 0x2e1   : > { %4365 = vrot.lane.b32.xlu1 %v12647_v15, %s12645_s29  ;;  %v3935_v6 = vsel %vm3913_vm6, %v11717_v39, %v11571_v50  ;;  %v3758_v48 = vrot.slane %v3720_v40, 5  ;;  %v9224_v39 = vld [vmem:[%s12600_s2 + $0x598] sm:$0xff]   ;;  %v3972_v24 = vrot.slane %v3934_v61, 6 }
 0x2e2   : > { %v11818_v2 = vpop.permute.xlu0 %3675  ;;  %v3509_v10 = vadd.f32 %v3438_v57, %v3297_v58  ;;  %v3973_v29 = vrot.slane %v3935_v6, 6  ;;  %v2930_v58 = vrot.slane %v11179_v44, 1 }
 0x2e3   : > { %v11823_v56 = vpop.permute.xlu1 %3394  ;;  %8396 = vmatpush3.bf16.msra.mxu1 %v9217_v13 }
 0x2e4   : > { %2820 = vrot.lane.b32.xlu0 %v10699_v16, %s12642_s13  ;;  %8397 = vmatprep.subr.bf16.mxu1 %v9218_v1  ;;  %v3614_v31 = vadd.f32 %v3544_v21, %v3509_v10  ;;  %v4043_v52 = vadd.f32 %v3973_v29, %v3829_v45  ;;  %v4186_v1 = vrot.slane %v4149_v38, 7  ;;  %v2931_v10 = vrot.slane %v11202_v3, 1  ;;  %v9221_v45 = vld [vmem:[%s12600_s2 + $0x638] sm:$0xff]  }
 0x2e5   : > { %2822 = vrot.lane.b32.xlu1 %v12648_v43, %s12642_s13  ;;  %v3137_v38 = vrot.slane %v11179_v44, 2 }
 0x2e6   : > { %v11842_v17 = vpop.permute.xlu0 %3889  ;;  %v3828_v62 = vadd.f32 %v3758_v48, %v3614_v31  ;;  %v4256_v19 = vadd.f32 %v4186_v1, %v4043_v52  ;;  %v3135_v48 = vrot.slane %v10699_v16, 2  ;;  %v9236_v31 = vld [vmem:[%s12600_s2 + $0x580] sm:$0xff]  }
 0x2e7   : > { %v11848_v7 = vpop.permute.xlu1 %3677  ;;  %8398 = vmatpush3.bf16.msra.mxu1 %v9220_v33 }
 0x2e8   : > { %2992 = vrot.lane.b32.xlu0 %v2928_v22, %s12639_s16  ;;  %8399 = vmatprep.subr.bf16.mxu1 %v9222_v27  ;;  %v4042_v11 = vadd.f32 %v3972_v24, %v3828_v62  ;;  %v9234_v22 = vld [vmem:[%s12600_s2 + $0x5c0] sm:$0xff]   ;;  %v9244_v24 = vld [vmem:[%s12600_s2 + $0x6f8] sm:$0xff]   ;;  %v9225_v62 = vld [vmem:[%s12600_s2 + $0x630] sm:$0xff]  }
 0x2e9   : > { %2994 = vrot.lane.b32.xlu1 %v2929_v54, %s12639_s16  ;;  %v3136_v54 = vrot.slane %v12648_v43, 2 }
 0x2ea   : > { %v11862_v5 = vpop.permute.xlu0 %4103  ;;  %v4255_v57 = vadd.f32 %v4185_v41, %v4042_v11  ;;  %v9227_v11 = vld [vmem:[%s12600_s2 + $0x668] sm:$0xff]  }
 0x2eb   : > { %v11864_v13 = vpop.permute.xlu1 %3681  ;;  %8400 = vmatpush3.bf16.msra.mxu1 %v9224_v39  ;;  %v9223_v39 = vld [vmem:[%s12600_s2 + $0x670] sm:$0xff]  }
 0x2ec   : > { %2824 = vrot.lane.b32.xlu0 %v11179_v44, %s12642_s13  ;;  %8401 = vmatprep.subr.bf16.mxu1 %v9226_v37 }
 0x2ed   : > { %2826 = vrot.lane.b32.xlu1 %v11202_v3, %s12642_s13  ;;  %s8137_s13 = sshll.u32 %s9445_s25, 4  ;;  %s9388_s25 = smov [#allocation2]  }
 0x2ee   : > { %v4348_v15 = vpop.permute.xlu0 %4347 }
 0x2ef   : > { %v4396_v12 = vsel %vm4375_vm8, %v11736_v60, %v4348_v15  ;;  %v4397_v40 = vsel %vm4375_vm8, %v4348_v15, %v11750_v8  ;;  %v11881_v33 = vpop.permute.xlu1 %3891  ;;  %8402 = vmatpush3.bf16.msra.mxu1 %v9228_v14  ;;  %v3138_v14 = vrot.slane %v11202_v3, 2  ;;  %v3343_v15 = vrot.slane %v10699_v16, 3 }
 0x2f0   : > { %v4465_v27 = vadd.f32 %v4396_v12, %v4255_v57  ;;  %v4466_v61 = vadd.f32 %v4397_v40, %v4256_v19  ;;  %2996 = vrot.lane.b32.xlu0 %v2930_v58, %s12639_s16  ;;  %8403 = vmatprep.subr.bf16.mxu1 %v9230_v35  ;;  %v9229_v58 = vld [vmem:[%s12600_s2 + $0x628] sm:$0xff]  }
 0x2f1   : > { %2998 = vrot.lane.b32.xlu1 %v2931_v10, %s12639_s16  ;;  %v3344_v10 = vrot.slane %v12648_v43, 3  ;;  %s9319_s16 = sshll.u32 %s9388_s25, 4  ;;  %s9320_s16 = int_to_ptr.vmem [resolvable:$false] %s9319_s16 }
 0x2f2   : > { %v4500_v60 = vpack.c.bf16 %v4465_v27, %v4465_v27  ;;  %v4501_v6 = vpack.c.bf16 %v4466_v61, %v4466_v61  ;;  %v11889_v21 = vpop.permute.xlu0 %4351  ;;  %v3345_v27 = vrot.slane %v11179_v44, 3  ;;  %v9233_v61 = vld [vmem:[%s12600_s2 + $0x620] sm:$0xff]   ;;  %s9321_s9 = scalar_lea.vmem %s9320_s16, 32 }
 0x2f3   : > { %v11898_v28 = vpop.permute.xlu1 %3895  ;;  %8404 = vmatpush3.bf16.msra.mxu1 %v9232_v25 }
 0x2f4   : > { %7136 = vmatprep.mubr.bf16.mxu0 %v4501_v6  ;;  %3199 = vrot.lane.b32.xlu0 %v3135_v48, %s12634_s15  ;;  %v3346_v6 = vrot.slane %v11202_v3, 3  ;;  %v9235_v48 = vld [vmem:[%s12600_s2 + $0x658] sm:$0xff]  }
 0x2f5   : > { %3201 = vrot.lane.b32.xlu1 %v3136_v54, %s12634_s15  ;;  %v8253_v29 = vpop.f32.mrf.mxu0  ;;  %7137 = vmatmul.mubr.bf16.vlgmr.msra.gmra.mxu0 %v4500_v60 }
 0x2f6   : > { %v11912_v37 = vpop.permute.xlu0 %2808  ;;  %8414 = vmatpush3.bf16.msra.mxu0 %v9221_v45  ;;  %8405 = vmatprep.subr.bf16.mxu1 %v9234_v22  ;;  %v3022_v45 = vsel %vm3000_vm2, %v11677_v34, %v11745_v4  ;;  %v3023_v22 = vsel %vm3000_vm2, %v11745_v4, %v11773_v51  ;;  %v2851_v34 = vsel %vm2828_vm1, %v11603_v49, %v11649_v59 }
 0x2f7   : > { %v11918_v41 = vpop.permute.xlu1 %4105  ;;  %v8254_v52 = vpop.f32.mrf.mxu0  ;;  %8415 = vmatprep.subr.bf16.mxu0 %v9223_v39  ;;  %8406 = vmatpush3.bf16.msra.mxu1 %v9236_v31  ;;  %v2850_v39 = vsel %vm2828_vm1, %v11623_v42, %v11603_v49  ;;  %v3229_v4 = vsel %vm3207_vm3, %v11705_v20, %v11768_v26  ;;  %v3230_v31 = vsel %vm3207_vm3, %v11768_v26, %v11799_v55  ;;  %v9238_v49 = vld [vmem:[%s12600_s2 + $0x650] sm:$0xff]  }
 0x2f8   : > { %v8255_v1 = vadd.f32 %v8254_v52, %v8253_v29  ;;  %3203 = vrot.lane.b32.xlu0 %v3137_v38, %s12634_s15  ;;  %8435 = vmatprep.subr.bf16.mxu1 %v9244_v24  ;;  %v9237_v29 = vld [vmem:[%s12600_s2 + $0x618] sm:$0xff]   ;;  %v3092_v38 = vadd.f32 %v3022_v45, %v2850_v39  ;;  %v3093_v42 = vadd.f32 %v3023_v22, %v2851_v34 }
 0x2f9   : > { %3205 = vrot.lane.b32.xlu1 %v3138_v14, %s12634_s15  ;;  %v8256_v35 = vpop.f32.mrf.mxu0  ;;  %v3440_v20 = vsel %vm3418_vm4, %v11722_v9, %v11791_v0  ;;  %v3441_v26 = vsel %vm3418_vm4, %v11791_v0, %v11823_v56  ;;  %v3722_v9 = vsel %vm3699_vm5, %v11538_v46, %v11818_v2  ;;  %v3546_v46 = vrot.slane %v10534_v47, 4  ;;  %v9241_v47 = vld [vmem:[%s12600_s2 + $0x608] sm:$0xff]  }
 0x2fa   : > { %v11927_v57 = vadd.f32 %v8255_v1, %v11789_v18  ;;  %v11929_v19 = vpop.permute.xlu0 %2812  ;;  %8416 = vmatpush3.bf16.msra.mxu0 %v9225_v62  ;;  %v9231_v18 = vld [vmem:[%s12600_s2 + $0x660] sm:$0xff]   ;;  %v3299_v52 = vadd.f32 %v3229_v4, %v3092_v38  ;;  %v3300_v14 = vadd.f32 %v3230_v31, %v3093_v42  ;;  %v9239_v1 = vld [vmem:[%s12600_s2 + $0x610] sm:$0xff]   ;;  %v4151_v38 = vsel %vm4127_vm7, %v11862_v5, %v11918_v41 }
 0x2fb   : > { %v11935_v12 = vpop.permute.xlu1 %4109  ;;  %v8257_v40 = vpop.f32.mrf.mxu0  ;;  %8417 = vmatprep.subr.bf16.mxu0 %v9227_v11  ;;  %v9242_v31 = vld [vmem:[%s12600_s2 + $0x640] sm:$0xff]  }
 0x2fc   : > { %3408 = vrot.lane.b32.xlu0 %v3343_v15, %s12626_s11  ;;  %v3511_v35 = vadd.f32 %v3440_v20, %v3299_v52  ;;  %v3512_v0 = vadd.f32 %v3441_v26, %v3300_v14  ;;  %v3723_v15 = vsel %vm3699_vm5, %v11818_v2, %v11848_v7  ;;  %v9240_v40 = vld [vmem:[%s12600_s2 + $0x648] sm:$0xff]   ;;  %v3937_v2 = vsel %vm3913_vm6, %v11842_v17, %v11881_v33 }
 0x2fd   : > { %3410 = vrot.lane.b32.xlu1 %v3344_v10, %s12626_s11  ;;  %v3936_v10 = vsel %vm3913_vm6, %v11571_v50, %v11842_v17  ;;  %v4150_v17 = vsel %vm4127_vm7, %v11609_v30, %v11862_v5 }
 0x2fe   : > { %v11943_v25 = vpop.permute.xlu0 %2980  ;;  %8418 = vmatpush3.bf16.msra.mxu0 %v9229_v58  ;;  %v3616_v22 = vadd.f32 %v3546_v46, %v3511_v35  ;;  %v3974_v34 = vrot.slane %v3936_v10, 6  ;;  %v4187_v5 = vrot.slane %v4150_v17, 7  ;;  %v4188_v35 = vrot.slane %v4151_v38, 7 }
 0x2ff   : > { %v2811_v60 = vpop.permute.xlu1 %2810  ;;  %8419 = vmatprep.subr.bf16.mxu0 %v9231_v18  ;;  %v12649_v18 = vld [vmem:[#allocation6_spill] sm:$0xff]  ;;  %v3024_v30 = vsel %vm3000_vm2, %v11773_v51, %v11943_v25  ;;  %v2852_v51 = vsel %vm2828_vm1, %v11649_v59, %v11912_v37  ;;  %v4398_v59 = vsel %vm4375_vm8, %v11750_v8, %v11889_v21 }
 0x300   : > { %v11961_v54 = vsel %vm2828_vm1, %v2811_v60, %v11929_v19  ;;  %3412 = vrot.lane.b32.xlu0 %v3345_v27, %s12626_s11  ;;  %v3547_v27 = vrot.slane %v12649_v18, 4  ;;  %v2853_v42 = vsel %vm2828_vm1, %v11912_v37, %v2811_v60  ;;  %v3549_v60 = vrot.slane %v11019_v36, 4  ;;  %v9247_v36 = vld [vmem:[%s12600_s2 + $0x778] sm:$0xff]  }
 0x301   : > { %3414 = vrot.lane.b32.xlu1 %v3346_v6, %s12626_s11  ;;  %v3760_v6 = vrot.slane %v3722_v9, 5  ;;  %v3094_v10 = vadd.f32 %v3024_v30, %v2852_v51 }
 0x302   : > { %v3188_v24 = vpop.permute.xlu0 %3187  ;;  %8420 = vmatpush3.bf16.msra.mxu0 %v9233_v61  ;;  %v12650_v61 = vld [vmem:[#allocation12_spill] sm:$0xff]  ;;  %v3617_v39 = vadd.f32 %v3547_v27, %v3512_v0 }
 0x303   : > { %v11980_v62 = vpop.permute.xlu1 %2814  ;;  %8421 = vmatprep.subr.bf16.mxu0 %v9235_v48  ;;  %v3761_v48 = vrot.slane %v3723_v15, 5  ;;  %v3830_v26 = vadd.f32 %v3760_v6, %v3616_v22 }
 0x304   : > { %3691 = vrot.lane.b32.xlu0 %v12648_v43, %s12627_s18 }
 0x305   : > { %3693 = vrot.lane.b32.xlu1 %v11179_v44, %s12627_s18  ;;  %v3831_v52 = vadd.f32 %v3761_v48, %v3617_v39  ;;  %v4044_v15 = vadd.f32 %v3974_v34, %v3830_v26 }
 0x306   : > { %v3397_v11 = vpop.permute.xlu0 %3396  ;;  %8422 = vmatpush3.bf16.msra.mxu0 %v9237_v29  ;;  %v3975_v29 = vrot.slane %v3937_v2, 6 }
 0x307   : > { %v12004_v58 = vpop.permute.xlu1 %2982  ;;  %8423 = vmatprep.subr.bf16.mxu0 %v9238_v49  ;;  %v4257_v18 = vadd.f32 %v4187_v5, %v4044_v15  ;;  %v9246_v5 = vld [vmem:[%s12600_s2 + $0x6f0] sm:$0xff]  }
 0x308   : > { %3695 = vrot.lane.b32.xlu0 %v11202_v3, %s12627_s18  ;;  %v3025_v50 = vsel %vm3000_vm2, %v11943_v25, %v12004_v58  ;;  %v3231_v25 = vsel %vm3207_vm3, %v11799_v55, %v3188_v24  ;;  %v3442_v55 = vsel %vm3418_vm4, %v11823_v56, %v3397_v11 }
 0x309   : > { %3697 = vrot.lane.b32.xlu1 %v12650_v61, %s12627_s18  ;;  %v3095_v20 = vadd.f32 %v3025_v50, %v2853_v42  ;;  %v3301_v27 = vadd.f32 %v3231_v25, %v3094_v10  ;;  %v12652_v10 = vld [vmem:[#allocation11_spill] sm:$0xff] }
 0x30a   : > { %v3680_v45 = vpop.permute.xlu0 %3679  ;;  %8424 = vmatpush3.bf16.msra.mxu0 %v9239_v1  ;;  %v9243_v1 = vld [vmem:[%s12600_s2 + $0x600] sm:$0xff]  }
 0x30b   : > { %v12030_v4 = vpop.permute.xlu1 %3189  ;;  %8425 = vmatprep.subr.bf16.mxu0 %v9240_v40  ;;  %v4045_v40 = vadd.f32 %v3975_v29, %v3831_v52  ;;  %v3725_v37 = vsel %vm3699_vm5, %v3680_v45, %v11864_v13  ;;  %v3724_v48 = vsel %vm3699_vm5, %v11848_v7, %v3680_v45  ;;  %v3513_v56 = vadd.f32 %v3442_v55, %v3301_v27  ;;  %v12651_v7 = vld [vmem:[#allocation14_spill] sm:$0xff] }
 0x30c   : > { %v3232_v49 = vsel %vm3207_vm3, %v3188_v24, %v12030_v4  ;;  %3905 = vrot.lane.b32.xlu0 %v12648_v43, %s9380_s20  ;;  %v3548_v45 = vrot.slane %v12651_v7, 4 }
 0x30d   : > { %3907 = vrot.lane.b32.xlu1 %v11179_v44, %s9380_s20  ;;  %v3302_v9 = vadd.f32 %v3232_v49, %v3095_v20  ;;  %v4258_v6 = vadd.f32 %v4188_v35, %v4045_v40 }
 0x30e   : > { %v3894_v14 = vpop.permute.xlu0 %3893  ;;  %8426 = vmatpush3.bf16.msra.mxu0 %v9241_v47  ;;  %v4467_v47 = vadd.f32 %v4398_v59, %v4257_v18  ;;  %v3618_v20 = vadd.f32 %v3548_v45, %v3513_v56 }
 0x30f   : > { %v12058_v0 = vpop.permute.xlu1 %3398  ;;  %8427 = vmatprep.subr.bf16.mxu0 %v9242_v31  ;;  %v3938_v39 = vsel %vm3913_vm6, %v11881_v33, %v3894_v14  ;;  %v3939_v34 = vsel %vm3913_vm6, %v3894_v14, %v11898_v28  ;;  %v3762_v31 = vrot.slane %v3724_v48, 5  ;;  %v9245_v33 = vld [vmem:[%s12600_s2 + $0x6b8] sm:$0xff]  }
 0x310   : > { %v3443_v46 = vsel %vm3418_vm4, %v3397_v11, %v12058_v0  ;;  %3909 = vrot.lane.b32.xlu0 %v11202_v3, %s9380_s20  ;;  %v3763_v11 = vrot.slane %v3725_v37, 5  ;;  %v4502_v30 = vpack.c.bf16 %v4467_v47, %v4467_v47  ;;  %v3976_v26 = vrot.slane %v3938_v39, 6  ;;  %v12653_v37 = vld [vmem:[#allocation15_spill] sm:$0xff] }
 0x311   : > { %v3514_v24 = vadd.f32 %v3443_v46, %v3302_v9  ;;  %3911 = vrot.lane.b32.xlu1 %v12650_v61, %s9380_s20  ;;  %v3977_v52 = vrot.slane %v3939_v34, 6  ;;  %v3832_v14 = vadd.f32 %v3762_v31, %v3618_v20  ;;  %v9248_v9 = vld [vmem:[%s12600_s2 + $0x6b0] sm:$0xff]   ;;  %v9250_v46 = vld [vmem:[%s12600_s2 + $0x6e8] sm:$0xff]  }
 0x312   : > { %v4108_v2 = vpop.permute.xlu0 %4107  ;;  %8428 = vmatpush3.bf16.msra.mxu0 %v9243_v1  ;;  %v12655_v20 = vld [vmem:[#allocation13_spill] sm:$0xff] }
 0x313   : > { %v3619_v50 = vadd.f32 %v3549_v60, %v3514_v24  ;;  %v4354_v8 = vpop.permute.xlu1 %4353  ;;  %8457 = vmatprep.subr.bf16.mxu0 %v9247_v36  ;;  %v4046_v36 = vadd.f32 %v3976_v26, %v3832_v14  ;;  %v9258_v26 = vld [vmem:[%s12600_s2 + $0x6d8] sm:$0xff]  }
 0x314   : > { %v4399_v22 = vsel %vm4375_vm8, %v11889_v21, %v4354_v8  ;;  %4119 = vrot.lane.b32.xlu0 %v12648_v43, %s9381_s26  ;;  %v4152_v21 = vsel %vm4127_vm7, %v11918_v41, %v4108_v2  ;;  %v4153_v41 = vsel %vm4127_vm7, %v4108_v2, %v11935_v12 }
 0x315   : > { %v4468_v17 = vadd.f32 %v4399_v22, %v4258_v6  ;;  %4121 = vrot.lane.b32.xlu1 %v11179_v44, %s9381_s26  ;;  %v3833_v29 = vadd.f32 %v3763_v11, %v3619_v50  ;;  %v4189_v1 = vrot.slane %v4152_v21, 7  ;;  %v4190_v15 = vrot.slane %v4153_v41, 7  ;;  %v9252_v11 = vld [vmem:[%s12600_s2 + $0x6a8] sm:$0xff]  }
 0x316   : > { %v12089_v38 = vpop.permute.xlu0 %2984  ;;  %v3347_v6 = vrot.slane %v12650_v61, 3 }
 0x317   : > { %v4503_v42 = vpack.c.bf16 %v4468_v17, %v4468_v17  ;;  %v12093_v49 = vpop.permute.xlu1 %4357  ;;  %v4047_v60 = vadd.f32 %v3977_v52, %v3833_v29  ;;  %v3026_v59 = vsel %vm3000_vm2, %v12004_v58, %v12089_v38  ;;  %v4259_v24 = vadd.f32 %v4189_v1, %v4046_v36 }
 0x318   : > { %4123 = vrot.lane.b32.xlu0 %v11202_v3, %s9381_s26  ;;  %v3096_v22 = vadd.f32 %v3026_v59, %v11961_v54  ;;  %v9249_v54 = vld [vmem:[%s12600_s2 + $0x738] sm:$0xff]   ;;  %v9266_v59 = vld [vmem:[%s12600_s2 + $0x6c8] sm:$0xff]  }
 0x319   : > { %7176 = vmatprep.mubr.bf16.mxu1 %v4503_v42  ;;  %4125 = vrot.lane.b32.xlu1 %v12650_v61, %s9381_s26  ;;  %v4260_v18 = vadd.f32 %v4190_v15, %v4047_v60  ;;  %v9251_v42 = vld [vmem:[%s12600_s2 + $0x770] sm:$0xff]   ;;  %v9255_v60 = vld [vmem:[%s12600_s2 + $0x768] sm:$0xff]  }
 0x31a   : > { %v8275_v35 = vpop.f32.mrf.mxu1  ;;  %7177 = vmatmul.mubr.bf16.vlgmr.msra.gmra.mxu1 %v4502_v30  ;;  %v12107_v51 = vpop.permute.xlu0 %3191  ;;  %v9257_v15 = vld [vmem:[%s12600_s2 + $0x728] sm:$0xff]  }
 0x31b   : > { %v12109_v25 = vpop.permute.xlu1 %2986  ;;  %8436 = vmatpush3.bf16.msra.mxu1 %v9245_v33  ;;  %v3233_v48 = vsel %vm3207_vm3, %v12030_v4, %v12107_v51  ;;  %v9256_v33 = vld [vmem:[%s12600_s2 + $0x6a0] sm:$0xff]  }
 0x31c   : > { %v8276_v40 = vpop.f32.mrf.mxu1  ;;  %4367 = vrot.lane.b32.xlu0 %v12652_v10, %s12645_s29  ;;  %8437 = vmatprep.subr.bf16.mxu1 %v9246_v5  ;;  %v3303_v17 = vadd.f32 %v3233_v48, %v3096_v22  ;;  %v9253_v5 = vld [vmem:[%s12600_s2 + $0x730] sm:$0xff]   ;;  %v9259_v10 = vld [vmem:[%s12600_s2 + $0x760] sm:$0xff]   ;;  %v9265_v48 = vld [vmem:[%s12600_s2 + $0x718] sm:$0xff]  }
 0x31d   : > { %v8277_v55 = vadd.f32 %v8276_v40, %v8275_v35  ;;  %4369 = vrot.lane.b32.xlu1 %v12653_v37, %s12645_s29  ;;  %v9261_v37 = vld [vmem:[%s12600_s2 + $0x720] sm:$0xff]   ;;  %v9276_v22 = vld [vmem:[%s12600_s2 + $0x7f8] sm:$0xff]  }
 0x31e   : > { %v8278_v27 = vpop.f32.mrf.mxu1  ;;  %v4356_v2 = vpop.permute.xlu0 %4355 }
 0x31f   : > { %v12129_v50 = vadd.f32 %v8277_v55, %v11927_v57  ;;  %v12131_v47 = vpop.permute.xlu1 %3193  ;;  %v4400_v58 = vsel %vm4375_vm8, %v4354_v8, %v4356_v2  ;;  %v4401_v56 = vsel %vm4375_vm8, %v4356_v2, %v12093_v49  ;;  %8438 = vmatpush3.bf16.msra.mxu1 %v9248_v9  ;;  %v12654_v57 = vld [vmem:[#allocation16_spill] sm:$0xff]  ;;  %v9262_v9 = vld [vmem:[%s12600_s2 + $0x6d0] sm:$0xff]   ;;  %v9268_v27 = vld [vmem:[%s12600_s2 + $0x688] sm:$0xff]  }
 0x320   : > { %v4469_v39 = vadd.f32 %v4400_v58, %v4259_v24  ;;  %v4470_v34 = vadd.f32 %v4401_v56, %v4260_v18  ;;  %v8279_v4 = vpop.f32.mrf.mxu1  ;;  %3416 = vrot.lane.b32.xlu0 %v3347_v6, %s12626_s11  ;;  %8439 = vmatprep.subr.bf16.mxu1 %v9250_v46  ;;  %v9254_v8 = vld [vmem:[%s12600_s2 + $0x6e0] sm:$0xff]   ;;  %v9264_v46 = vld [vmem:[%s12600_s2 + $0x690] sm:$0xff]   ;;  %v9263_v18 = vld [vmem:[%s12600_s2 + $0x758] sm:$0xff]   ;;  %s242_s11 = sand.u32 1, %s9367_s22  }
 0x321   : > { %4371 = vrot.lane.b32.xlu1 %v12654_v57, %s12645_s29  ;;  %v9270_v2 = vld [vmem:[%s12600_s2 + $0x6c0] sm:$0xff]   ;;  %v9267_v56 = vld [vmem:[%s12600_s2 + $0x750] sm:$0xff]   ;;  %s243_s10 = scalar_lea.vmem [#allocation2], %s242_s11  ;;  %s7505_s17 = scalar_lea.sflag [#allocation3], %s242_s11 }
 0x322   : > { %v4504_v7 = vpack.c.bf16 %v4469_v39, %v4469_v39  ;;  %v4505_v45 = vpack.c.bf16 %v4470_v34, %v4470_v34  ;;  %v12146_v31 = vpop.permute.xlu0 %3400  ;;  %v9269_v4 = vld [vmem:[%s12600_s2 + $0x710] sm:$0xff]   ;;  %s7517_s14 = sshll.u32 %s243_s10, 4  ;;  %s12559_s14 = int_to_ptr.vmem [resolvable:$true] %s7517_s14 }
 0x323   : > { %v12151_v29 = vpop.permute.xlu1 %3402  ;;  %v3444_v21 = vsel %vm3418_vm4, %v12058_v0, %v12146_v31  ;;  %8440 = vmatpush3.bf16.msra.mxu1 %v9252_v11  ;;  %v3550_v0 = vrot.slane %v10594_v63, 4  ;;  %v9260_v63 = vld [vmem:[%s12600_s2 + $0x698] sm:$0xff]   ;;  %v9272_v11 = vld [vmem:[%s12600_s2 + $0x680] sm:$0xff]   ;;  %s9315_s28 = scalar_lea.vmem %s12559_s14, 16  ;;  %p9322_p0 = scmp.lt.s32.totalorder %s12559_s14, %s9320_s16 }
 0x324   : > { %v3515_v30 = vadd.f32 %v3444_v21, %v3303_v17  ;;  %7216 = vmatprep.mubr.bf16.mxu0 %v4505_v45  ;;  %4373 = vrot.lane.b32.xlu0 %v12655_v20, %s12645_s29  ;;  %v9271_v17 = vld [vmem:[%s12600_s2 + $0x748] sm:$0xff]   ;;  %v9274_v20 = vld [vmem:[%s12600_s2 + $0x740] sm:$0xff]   ;;  %s12557_s29 = scalar_lea.hbm %s12604_s6, %s8137_s13  ;;  %p9316_p11 = scmp.ne.s32.totalorder %s12559_s14, %s9315_s28 }
 0x325   : > { %7217 = vmatmul.mubr.bf16.vlgmr.msra.gmra.mxu0 %v4504_v7  ;;  %8441 = vmatprep.subr.bf16.mxu1 %v9254_v8  ;;  %p9323_p1 = scmp.lt.s32.totalorder %s9321_s9, %s9315_s28 }
 0x326   : > { %v12168_v52 = vpop.permute.xlu0 %3683  ;;  %8458 = vmatpush3.bf16.msra.mxu0 %v9249_v54  ;;  %v3620_v1 = vadd.f32 %v3550_v0, %v3515_v30  ;;  %v9275_v0 = vld [vmem:[%s12600_s2 + $0x700] sm:$0xff]   ;;  %p9317_p12 = pnand %p9316_p11, %p9462_p5 }
 0x327   : > { %v3726_v41 = vsel %vm3699_vm5, %v11864_v13, %v12168_v52  ;;  %v12176_v14 = vpop.permute.xlu1 %3685  ;;  %8459 = vmatprep.subr.bf16.mxu0 %v9251_v42  ;;  %8442 = vmatpush3.bf16.msra.mxu1 %v9256_v33  ;;  %v9273_v42 = vld [vmem:[%s12600_s2 + $0x708] sm:$0xff]   ;;  %p9324_p2 = por %p9323_p1, %p9322_p0 }
 0x328   : > { %v3764_v35 = vrot.slane %v3726_v41, 5  ;;  %8443 = vmatprep.subr.bf16.mxu1 %v9258_v26  ;;  %v3027_v26 = vsel %vm3000_vm2, %v12089_v38, %v12109_v25  ;;  %v9282_v41 = vld [vmem:[%s12600_s2 + $0x878] sm:$0xff]   ;;  %v3234_v38 = vsel %vm3207_vm3, %v12107_v51, %v12131_v47  ;;  %p9318_p13 = pneg %p9317_p12 }
 0x32a   : > { %v12187_v13 = vadd.f32 %v3764_v35, %v3620_v1  ;;  %v12189_v36 = vpop.permute.xlu0 %2816  ;;  %8460 = vmatpush3.bf16.msra.mxu0 %v9253_v5  ;;  %p9325_p3 = pnand %p9324_p2, %p9318_p13 }
 0x32b   : > { %v12194_v40 = vpop.permute.xlu1 %3689  ;;  %8461 = vmatprep.subr.bf16.mxu0 %v9255_v60  ;;  %8444 = vmatpush3.bf16.msra.mxu1 %v9260_v63  ;;  %v2855_v60 = vsel %vm2828_vm1, %v11929_v19, %v11980_v62 }
 0x32c   : > { %8445 = vmatprep.subr.bf16.mxu1 %v9262_v9  ;;  %v3097_v1 = vadd.f32 %v3027_v26, %v2855_v60  ;;  %v3445_v9 = vsel %vm3418_vm4, %v12146_v31, %v12151_v29  ;;  %v3727_v31 = vsel %vm3699_vm5, %v12168_v52, %v12176_v14 }
 0x32e   : > { %v2989_v55 = vpop.permute.xlu0 %2988  ;;  %8462 = vmatpush3.bf16.msra.mxu0 %v9257_v15  ;;  %v3304_v51 = vadd.f32 %v3234_v38, %v3097_v1 }
 0x32f   : > { %v12208_v24 = vpop.permute.xlu1 %2818  ;;  %8463 = vmatprep.subr.bf16.mxu0 %v9259_v10  ;;  %8446 = vmatpush3.bf16.msra.mxu1 %v9264_v46  ;;  %v3028_v35 = vsel %vm3000_vm2, %v12109_v25, %v2989_v55  ;;  %v2856_v46 = vsel %vm2828_vm1, %v11980_v62, %v12189_v36 }
 0x330   : > { %8447 = vmatprep.subr.bf16.mxu1 %v9266_v59  ;;  %v2857_v15 = vsel %vm2828_vm1, %v12189_v36, %v12208_v24  ;;  %v3551_v36 = vrot.slane %v10616_v23, 4 }
 0x332   : > { %v3196_v6 = vpop.permute.xlu0 %3195  ;;  %8464 = vmatpush3.bf16.msra.mxu0 %v9261_v37  ;;  %v3098_v37 = vadd.f32 %v3028_v35, %v2856_v46 }
 0x333   : > { %v12222_v58 = vpop.permute.xlu1 %2990  ;;  %8465 = vmatprep.subr.bf16.mxu0 %v9263_v18  ;;  %8448 = vmatpush3.bf16.msra.mxu1 %v9268_v27  ;;  %v3235_v25 = vsel %vm3207_vm3, %v12131_v47, %v3196_v6  ;;  %v3516_v27 = vadd.f32 %v3445_v9, %v3304_v51 }
 0x334   : > { %8449 = vmatprep.subr.bf16.mxu1 %v9270_v2  ;;  %v3029_v63 = vsel %vm3000_vm2, %v2989_v55, %v12222_v58 }
 0x335   : > { %v8297_v39 = vpop.f32.mrf.mxu0  ;;  %v3099_v59 = vadd.f32 %v3029_v63, %v2857_v15  ;;  %v3621_v23 = vadd.f32 %v3551_v36, %v3516_v27 }
 0x336   : > { %v3405_v34 = vpop.permute.xlu0 %3404  ;;  %8466 = vmatpush3.bf16.msra.mxu0 %v9265_v48 }
 0x337   : > { %v12236_v57 = vpop.permute.xlu1 %3197  ;;  %v8298_v8 = vpop.f32.mrf.mxu0  ;;  %8467 = vmatprep.subr.bf16.mxu0 %v9267_v56  ;;  %8450 = vmatpush3.bf16.msra.mxu1 %v9272_v11  ;;  %v3446_v2 = vsel %vm3418_vm4, %v12151_v29, %v3405_v34  ;;  %v3765_v11 = vrot.slane %v3727_v31, 5  ;;  %v3552_v29 = vrot.slane %v11078_v53, 4 }
 0x338   : > { %v8299_v7 = vadd.f32 %v8298_v8, %v8297_v39  ;;  %8479 = vmatprep.subr.bf16.mxu1 %v9276_v22  ;;  %v3236_v19 = vsel %vm3207_vm3, %v3196_v6, %v12236_v57  ;;  %v3305_v6 = vadd.f32 %v3235_v25, %v3098_v37 }
 0x339   : > { %v8300_v45 = vpop.f32.mrf.mxu0  ;;  %v3306_v62 = vadd.f32 %v3236_v19, %v3099_v59  ;;  %v3835_v53 = vadd.f32 %v3765_v11, %v3621_v23  ;;  %v9283_v23 = vld [vmem:[%s12600_s2 + $0x838] sm:$0xff]  }
 0x33a   : > { %v12242_v54 = vadd.f32 %v8299_v7, %v12129_v50  ;;  %v3688_v21 = vpop.permute.xlu0 %3687  ;;  %8468 = vmatpush3.bf16.msra.mxu0 %v9269_v4 }
 0x33b   : > { %v12247_v33 = vpop.permute.xlu1 %3406  ;;  %v8301_v30 = vpop.f32.mrf.mxu0  ;;  %8469 = vmatprep.subr.bf16.mxu0 %v9271_v17  ;;  %v3728_v52 = vsel %vm3699_vm5, %v12176_v14, %v3688_v21  ;;  %v3553_v17 = vrot.slane %v11103_v32, 4  ;;  %v3729_v14 = vsel %vm3699_vm5, %v3688_v21, %v12194_v40 }
 0x33c   : > { %v3447_v18 = vsel %vm3418_vm4, %v3405_v34, %v12247_v33  ;;  %v3517_v34 = vadd.f32 %v3446_v2, %v3305_v6  ;;  %v3767_v38 = vrot.slane %v3729_v14, 5 }
 0x33d   : > { %v3518_v22 = vadd.f32 %v3447_v18, %v3306_v62 }
 0x33e   : > { %v3898_v50 = vpop.permute.xlu0 %3897  ;;  %8470 = vmatpush3.bf16.msra.mxu0 %v9273_v42  ;;  %v3766_v42 = vrot.slane %v3728_v52, 5  ;;  %v3622_v32 = vadd.f32 %v3552_v29, %v3517_v34 }
 0x33f   : > { %v3900_v5 = vpop.permute.xlu1 %3899  ;;  %8471 = vmatprep.subr.bf16.mxu0 %v9274_v20  ;;  %v3940_v47 = vsel %vm3913_vm6, %v11898_v28, %v3898_v50  ;;  %v3623_v26 = vadd.f32 %v3553_v17, %v3518_v22  ;;  %v9278_v22 = vld [vmem:[%s12600_s2 + $0x7f0] sm:$0xff]   ;;  %v9280_v17 = vld [vmem:[%s12600_s2 + $0x7e8] sm:$0xff]  }
 0x340   : > { %v3941_v48 = vsel %vm3913_vm6, %v3898_v50, %v3900_v5  ;;  %v3978_v8 = vrot.slane %v3940_v47, 6  ;;  %v3836_v35 = vadd.f32 %v3766_v42, %v3622_v32 }
 0x341   : > { %v3979_v7 = vrot.slane %v3941_v48, 6 }
 0x342   : > { %v3902_v10 = vpop.permute.xlu0 %3901  ;;  %8472 = vmatpush3.bf16.msra.mxu0 %v9275_v0  ;;  %v4048_v60 = vadd.f32 %v3978_v8, %v12187_v13 }
 0x343   : > { %v12284_v55 = vpop.permute.xlu1 %3903  ;;  %8501 = vmatprep.subr.bf16.mxu0 %v9282_v41  ;;  %v3942_v45 = vsel %vm3913_vm6, %v3900_v5, %v3902_v10  ;;  %v4049_v63 = vadd.f32 %v3979_v7, %v3835_v53  ;;  %v9286_v7 = vld [vmem:[%s12600_s2 + $0x870] sm:$0xff]  }
 0x344   : > { %v3980_v5 = vrot.slane %v3942_v45, 6  ;;  %v9287_v53 = vld [vmem:[%s12600_s2 + $0x830] sm:$0xff]  }
 0x346   : > { %v4112_v56 = vpop.permute.xlu0 %4111  ;;  %v4050_v31 = vadd.f32 %v3980_v5, %v3836_v35  ;;  %v9288_v35 = vld [vmem:[%s12600_s2 + $0x7d8] sm:$0xff]  }
 0x347   : > { %v4154_v39 = vsel %vm4127_vm7, %v11935_v12, %v4112_v56  ;;  %v4114_v4 = vpop.permute.xlu1 %4113  ;;  %v3943_v12 = vsel %vm3913_vm6, %v3902_v10, %v12284_v55  ;;  %v3837_v10 = vadd.f32 %v3767_v38, %v3623_v26  ;;  %v9285_v38 = vld [vmem:[%s12600_s2 + $0x7a0] sm:$0xff]  }
 0x348   : > { %v4155_v28 = vsel %vm4127_vm7, %v4112_v56, %v4114_v4  ;;  %v4191_v30 = vrot.slane %v4154_v39, 7  ;;  %v3981_v1 = vrot.slane %v3943_v12, 6 }
 0x349   : > { %v4192_v50 = vrot.slane %v4155_v28, 7  ;;  %v9279_v28 = vld [vmem:[%s12600_s2 + $0x7b0] sm:$0xff]  }
 0x34a   : > { %v4116_v20 = vpop.permute.xlu0 %4115  ;;  %v4261_v9 = vadd.f32 %v4191_v30, %v4048_v60  ;;  %v4051_v18 = vadd.f32 %v3981_v1, %v3837_v10  ;;  %v9295_v10 = vld [vmem:[%s12600_s2 + $0x820] sm:$0xff]  }
 0x34b   : > { %v4156_v0 = vsel %vm4127_vm7, %v4114_v4, %v4116_v20  ;;  %v12310_v41 = vpop.permute.xlu1 %4117  ;;  %v4262_v51 = vadd.f32 %v4192_v50, %v4049_v63  ;;  %v9291_v63 = vld [vmem:[%s12600_s2 + $0x828] sm:$0xff]  }
 0x34c   : > { %v4157_v21 = vsel %vm4127_vm7, %v4116_v20, %v12310_v41  ;;  %v4193_v15 = vrot.slane %v4156_v0, 7  ;;  %v9281_v20 = vld [vmem:[%s12600_s2 + $0x7a8] sm:$0xff]  }
 0x34d   : > { %v4194_v46 = vrot.slane %v4157_v21, 7 }
 0x34e   : > { %v4360_v19 = vpop.permute.xlu0 %4359  ;;  %v4263_v2 = vadd.f32 %v4193_v15, %v4050_v31 }
 0x34f   : > { %v4402_v25 = vsel %vm4375_vm8, %v12093_v49, %v4360_v19  ;;  %v4362_v59 = vpop.permute.xlu1 %4361  ;;  %v4264_v36 = vadd.f32 %v4194_v46, %v4051_v18  ;;  %v9277_v49 = vld [vmem:[%s12600_s2 + $0x7b8] sm:$0xff]  }
 0x350   : > { %v4471_v13 = vadd.f32 %v4402_v25, %v4261_v9  ;;  %v4403_v37 = vsel %vm4375_vm8, %v4360_v19, %v4362_v59  ;;  %v9289_v19 = vld [vmem:[%s12600_s2 + $0x798] sm:$0xff]  }
 0x351   : > { %v4472_v27 = vadd.f32 %v4403_v37, %v4262_v51  ;;  %v9292_v51 = vld [vmem:[%s12600_s2 + $0x7d0] sm:$0xff]   ;;  %v9298_v46 = vld [vmem:[%s12600_s2 + $0x858] sm:$0xff]  }
 0x352   : > { %v4506_v62 = vpack.c.bf16 %v4471_v13, %v4471_v13  ;;  %v4364_v47 = vpop.permute.xlu0 %4363  ;;  %v9293_v13 = vld [vmem:[%s12600_s2 + $0x790] sm:$0xff]   ;;  %v9299_v37 = vld [vmem:[%s12600_s2 + $0x818] sm:$0xff]  }
 0x353   : > { %v4507_v6 = vpack.c.bf16 %v4472_v27, %v4472_v27  ;;  %v12318_v48 = vpop.permute.xlu1 %4365  ;;  %v4404_v56 = vsel %vm4375_vm8, %v4362_v59, %v4364_v47  ;;  %v9296_v27 = vld [vmem:[%s12600_s2 + $0x7c8] sm:$0xff]  }
 0x354   : > { %v4405_v11 = vsel %vm4375_vm8, %v4364_v47, %v12318_v48  ;;  %v4473_v52 = vadd.f32 %v4404_v56, %v4263_v2  ;;  %v9297_v47 = vld [vmem:[%s12600_s2 + $0x788] sm:$0xff]  }
 0x355   : > { %v4474_v39 = vadd.f32 %v4405_v11, %v4264_v36  ;;  %7256 = vmatprep.mubr.bf16.mxu1 %v4507_v6  ;;  %v9303_v36 = vld [vmem:[%s12600_s2 + $0x810] sm:$0xff]   ;;  %v9300_v6 = vld [vmem:[%s12600_s2 + $0x7c0] sm:$0xff]   ;;  %v9304_v56 = vld [vmem:[%s12600_s2 + $0x848] sm:$0xff]  }
 0x356   : > { %v4508_v4 = vpack.c.bf16 %v4473_v52, %v4473_v52  ;;  %7257 = vmatmul.mubr.bf16.vlgmr.msra.gmra.mxu1 %v4506_v62  ;;  %v12329_v29 = vpop.permute.xlu0 %2820 }
 0x357   : > { %v4509_v34 = vpack.c.bf16 %v4474_v39, %v4474_v39  ;;  %v12331_v8 = vpop.permute.xlu1 %2822  ;;  %8480 = vmatpush3.bf16.msra.mxu1 %v9277_v49  ;;  %v2858_v42 = vsel %vm2828_vm1, %v12208_v24, %v12329_v29  ;;  %v9284_v24 = vld [vmem:[%s12600_s2 + $0x7e0] sm:$0xff]   ;;  %v9305_v39 = vld [vmem:[%s12600_s2 + $0x808] sm:$0xff]  }
 0x358   : > { %8481 = vmatprep.subr.bf16.mxu1 %v9278_v22  ;;  %v9301_v22 = vld [vmem:[%s12600_s2 + $0x780] sm:$0xff]  }
 0x359   : > { %7296 = vmatprep.mubr.bf16.mxu0 %v4509_v34  ;;  %v9306_v34 = vld [vmem:[%s12600_s2 + $0x840] sm:$0xff]  }
 0x35a   : > { %v8319_v45 = vpop.f32.mrf.mxu1  ;;  %7297 = vmatmul.mubr.bf16.vlgmr.msra.gmra.mxu0 %v4508_v4  ;;  %v12345_v14 = vpop.permute.xlu0 %2992 }
 0x35b   : > { %v12350_v12 = vpop.permute.xlu1 %2994  ;;  %v3030_v30 = vsel %vm3000_vm2, %v12222_v58, %v12345_v14  ;;  %8482 = vmatpush3.bf16.msra.mxu1 %v9279_v28  ;;  %8502 = vmatpush3.bf16.msra.mxu0 %v9283_v23  ;;  %v9290_v58 = vld [vmem:[%s12600_s2 + $0x868] sm:$0xff]   ;;  %v9307_v23 = vld [vmem:[%s12600_s2 + $0x800] sm:$0xff]  }
 0x35c   : > { %v3100_v26 = vadd.f32 %v3030_v30, %v2858_v42  ;;  %v8320_v50 = vpop.f32.mrf.mxu1  ;;  %8483 = vmatprep.subr.bf16.mxu1 %v9280_v17  ;;  %8503 = vmatprep.subr.bf16.mxu0 %v9286_v7  ;;  %v12656_v17 = vmov 0.0  }
 0x35d   : > { %v8321_v0 = vadd.f32 %v8320_v50, %v8319_v45 }
 0x35e   : > { %v8322_v32 = vpop.f32.mrf.mxu1  ;;  %v12367_v60 = vpop.permute.xlu0 %2824 }
 0x35f   : > { %v12370_v5 = vadd.f32 %v8321_v0, %v12242_v54  ;;  %v12372_v21 = vpop.permute.xlu1 %2826  ;;  %8484 = vmatpush3.bf16.msra.mxu1 %v9281_v20  ;;  %8504 = vmatpush3.bf16.msra.mxu0 %v9287_v53  ;;  %v9294_v54 = vld [vmem:[%s12600_s2 + $0x860] sm:$0xff]   ;;  %v3554_v32 = vrot.slane %v10699_v16, 4 }
 0x360   : > { %v8323_v1 = vpop.f32.mrf.mxu1  ;;  %8485 = vmatprep.subr.bf16.mxu1 %v9284_v24  ;;  %8505 = vmatprep.subr.bf16.mxu0 %v9290_v58 }
 0x362   : > { %v12386_v9 = vpop.permute.xlu0 %2996 }
 0x363   : > { %v12388_v15 = vpop.permute.xlu1 %2998  ;;  %8486 = vmatpush3.bf16.msra.mxu1 %v9285_v38  ;;  %8506 = vmatpush3.bf16.msra.mxu0 %v9291_v63  ;;  %v3031_v63 = vsel %vm3000_vm2, %v12345_v14, %v12350_v12 }
 0x364   : > { %8487 = vmatprep.subr.bf16.mxu1 %v9288_v35  ;;  %8507 = vmatprep.subr.bf16.mxu0 %v9294_v54 }
 0x366   : > { %v3200_v25 = vpop.permute.xlu0 %3199 }
 0x367   : > { %v3237_v59 = vsel %vm3207_vm3, %v12236_v57, %v3200_v25  ;;  %v12404_v31 = vpop.permute.xlu1 %3201  ;;  %8488 = vmatpush3.bf16.msra.mxu1 %v9289_v19  ;;  %8508 = vmatpush3.bf16.msra.mxu0 %v9295_v10  ;;  %v9302_v57 = vld [vmem:[%s12600_s2 + $0x850] sm:$0xff]  }
 0x368   : > { %v3307_v18 = vadd.f32 %v3237_v59, %v3100_v26  ;;  %8489 = vmatprep.subr.bf16.mxu1 %v9292_v51  ;;  %8509 = vmatprep.subr.bf16.mxu0 %v9298_v46  ;;  %v3238_v19 = vsel %vm3207_vm3, %v3200_v25, %v12404_v31  ;;  %v3033_v25 = vsel %vm3000_vm2, %v12386_v9, %v12388_v15 }
 0x36a   : > { %v12418_v2 = vpop.permute.xlu0 %3203 }
 0x36b   : > { %v12420_v62 = vpop.permute.xlu1 %3205  ;;  %8490 = vmatpush3.bf16.msra.mxu1 %v9293_v13  ;;  %8510 = vmatpush3.bf16.msra.mxu0 %v9299_v37  ;;  %v3032_v13 = vsel %vm3000_vm2, %v12350_v12, %v12386_v9  ;;  %v2861_v12 = vsel %vm2828_vm1, %v12367_v60, %v12372_v21 }
 0x36c   : > { %8491 = vmatprep.subr.bf16.mxu1 %v9296_v27  ;;  %8511 = vmatprep.subr.bf16.mxu0 %v9302_v57  ;;  %v3239_v27 = vsel %vm3207_vm3, %v12404_v31, %v12418_v2 }
 0x36e   : > { %v3409_v49 = vpop.permute.xlu0 %3408 }
 0x36f   : > { %v3448_v11 = vsel %vm3418_vm4, %v12247_v33, %v3409_v49  ;;  %v3411_v52 = vpop.permute.xlu1 %3410  ;;  %8492 = vmatpush3.bf16.msra.mxu1 %v9297_v47  ;;  %8512 = vmatpush3.bf16.msra.mxu0 %v9303_v36  ;;  %v3555_v36 = vrot.slane %v12648_v43, 4 }
 0x370   : > { %v3519_v4 = vadd.f32 %v3448_v11, %v3307_v18  ;;  %8493 = vmatprep.subr.bf16.mxu1 %v9300_v6  ;;  %8513 = vmatprep.subr.bf16.mxu0 %v9304_v56  ;;  %v3449_v46 = vsel %vm3418_vm4, %v3409_v49, %v3411_v52 }
 0x372   : > { %v3413_v28 = vpop.permute.xlu0 %3412  ;;  %v3624_v1 = vadd.f32 %v3554_v32, %v3519_v4  ;;  %v3557_v32 = vrot.slane %v11202_v3, 4 }
 0x373   : > { %v12445_v33 = vpop.permute.xlu1 %3414  ;;  %8494 = vmatpush3.bf16.msra.mxu1 %v9301_v22  ;;  %8514 = vmatpush3.bf16.msra.mxu0 %v9305_v39  ;;  %v3450_v9 = vsel %vm3418_vm4, %v3411_v52, %v3413_v28  ;;  %v3103_v22 = vadd.f32 %v3033_v25, %v2861_v12 }
 0x374   : > { %8515 = vmatprep.subr.bf16.mxu0 %v9306_v34  ;;  %8550 = vmatprep.subr.bf16.mxu1 %v12656_v17  ;;  %v3556_v34 = vrot.slane %v11179_v44, 4 }
 0x375   : > { %v8341_v7 = vpop.f32.mrf.mxu0 }
 0x376   : > { %v3692_v45 = vpop.permute.xlu0 %3691 }
 0x377   : > { %v3694_v42 = vpop.permute.xlu1 %3693  ;;  %v8342_v30 = vpop.f32.mrf.mxu0  ;;  %8516 = vmatpush3.bf16.msra.mxu0 %v9307_v23  ;;  %v3730_v53 = vsel %vm3699_vm5, %v12194_v40, %v3692_v45 }
 0x378   : > { %v8343_v20 = vadd.f32 %v8342_v30, %v8341_v7  ;;  %v3768_v38 = vrot.slane %v3730_v53, 5  ;;  %v3731_v18 = vsel %vm3699_vm5, %v3692_v45, %v3694_v42 }
 0x379   : > { %v8344_v26 = vpop.f32.mrf.mxu0  ;;  %v3769_v49 = vrot.slane %v3731_v18, 5 }
 0x37a   : > { %v12454_v50 = vadd.f32 %v8343_v20, %v12370_v5  ;;  %v3696_v24 = vpop.permute.xlu0 %3695  ;;  %v2859_v5 = vsel %vm2828_vm1, %v12329_v29, %v12331_v8  ;;  %v3838_v10 = vadd.f32 %v3768_v38, %v3624_v1  ;;  %v2860_v29 = vsel %vm2828_vm1, %v12331_v8, %v12367_v60 }
 0x37b   : > { %v12456_v58 = vpop.permute.xlu1 %3697  ;;  %v8345_v0 = vpop.f32.mrf.mxu0  ;;  %v3101_v51 = vadd.f32 %v3031_v63, %v2859_v5  ;;  %v3102_v47 = vadd.f32 %v3032_v13, %v2860_v29  ;;  %v3240_v8 = vsel %vm3207_vm3, %v12418_v2, %v12420_v62  ;;  %v3451_v2 = vsel %vm3418_vm4, %v3413_v28, %v12445_v33 }
 0x37c   : > { %v3310_v7 = vadd.f32 %v3240_v8, %v3103_v22  ;;  %v3733_v44 = vsel %vm3699_vm5, %v3696_v24, %v12456_v58  ;;  %v3986_v22 = vrot.slane %v12656_v17, 6 }
 0x37d   : > { %v3309_v39 = vadd.f32 %v3239_v27, %v3102_v47  ;;  %v3771_v3 = vrot.slane %v3733_v44, 5 }
 0x37e   : > { %v3906_v35 = vpop.permute.xlu0 %3905  ;;  %v3522_v38 = vadd.f32 %v3451_v2, %v3310_v7 }
 0x37f   : > { %v3944_v40 = vsel %vm3913_vm6, %v12284_v55, %v3906_v35  ;;  %v3908_v54 = vpop.permute.xlu1 %3907  ;;  %v3308_v55 = vadd.f32 %v3238_v19, %v3101_v51  ;;  %v3521_v45 = vadd.f32 %v3450_v9, %v3309_v39 }
 0x380   : > { %v3982_v16 = vrot.slane %v3944_v40, 6  ;;  %v3945_v6 = vsel %vm3913_vm6, %v3906_v35, %v3908_v54  ;;  %v3627_v13 = vadd.f32 %v3557_v32, %v3522_v38 }
 0x381   : > { %v3520_v57 = vadd.f32 %v3449_v46, %v3308_v55  ;;  %v3983_v23 = vrot.slane %v3945_v6, 6  ;;  %v3626_v35 = vadd.f32 %v3556_v34, %v3521_v45 }
 0x382   : > { %v4052_v59 = vadd.f32 %v3982_v16, %v3838_v10  ;;  %v3910_v14 = vpop.permute.xlu0 %3909 }
 0x383   : > { %v3912_v37 = vpop.permute.xlu1 %3911  ;;  %v3625_v43 = vadd.f32 %v3555_v36, %v3520_v57  ;;  %v3946_v28 = vsel %vm3913_vm6, %v3908_v54, %v3910_v14  ;;  %v3841_v57 = vadd.f32 %v3771_v3, %v3627_v13 }
 0x384   : > { %v3947_v53 = vsel %vm3913_vm6, %v3910_v14, %v3912_v37  ;;  %v3984_v46 = vrot.slane %v3946_v28, 6 }
 0x385   : > { %v3839_v20 = vadd.f32 %v3769_v49, %v3625_v43  ;;  %v3949_v5 = vsel %vm2828_vm1, %v3947_v53, 0.0 }
 0x386   : > { %v4120_v56 = vpop.permute.xlu0 %4119  ;;  %v3985_v55 = vrot.slane %v3949_v5, 6  ;;  %v9309_v5 = vld [vmem:[%s12602_s4 + $0x18] sm:$0xff]  }
 0x387   : > { %v4158_v31 = vsel %vm4127_vm7, %v12310_v41, %v4120_v56  ;;  %v4122_v11 = vpop.permute.xlu1 %4121  ;;  %v3732_v41 = vsel %vm3699_vm5, %v3694_v42, %v3696_v24  ;;  %v4053_v63 = vadd.f32 %v3983_v23, %v3839_v20  ;;  %v3104_v42 = vadd.f32 %v12388_v15, %v12372_v21  ;;  %v9308_v21 = vld [vmem:[%s12600_s2 + $0x880] ss:$0 sps:$4 sm:$0x33]  }
 0x388   : > { %v4195_v60 = vrot.slane %v4158_v31, 7  ;;  %v4159_v4 = vsel %vm4127_vm7, %v4120_v56, %v4122_v11  ;;  %v3770_v40 = vrot.slane %v3732_v41, 5  ;;  %v6702_v9 = vsel %vm6700_vm10, %v9308_v21, 0 }
 0x389   : > { %v4196_v26 = vrot.slane %v4159_v4, 7  ;;  %v3311_v15 = vadd.f32 %v12420_v62, %v3104_v42  ;;  %v3558_v62 = vrot.slane %v12650_v61, 4  ;;  %v4055_v49 = vadd.f32 %v3985_v55, %v3841_v57 }
 0x38a   : > { %v4265_v52 = vadd.f32 %v4195_v60, %v4052_v59  ;;  %v4124_v30 = vpop.permute.xlu0 %4123  ;;  %v3840_v18 = vadd.f32 %v3770_v40, %v3626_v35  ;;  %v4199_v61 = vrot.slane %v12656_v17, 7 }
 0x38b   : > { %v4126_v0 = vpop.permute.xlu1 %4125  ;;  %v4266_v10 = vadd.f32 %v4196_v26, %v4053_v63  ;;  %v4160_v16 = vsel %vm4127_vm7, %v4122_v11, %v4124_v30 }
 0x38c   : > { %v4161_v1 = vsel %vm4127_vm7, %v4124_v30, %v4126_v0  ;;  %v4197_v29 = vrot.slane %v4160_v16, 7  ;;  %v4054_v56 = vadd.f32 %v3984_v46, %v3840_v18  ;;  %v9310_v16 = vld [vmem:[%s12602_s4 + $0x10] sm:$0xff]  }
 0x38d   : > { %v4163_v54 = vsel %vm3000_vm2, %v4161_v1, 0.0 }
 0x38e   : > { %v4368_v19 = vpop.permute.xlu0 %4367  ;;  %v4198_v12 = vrot.slane %v4163_v54, 7  ;;  %v4267_v11 = vadd.f32 %v4197_v29, %v4054_v56 }
 0x38f   : > { %v4406_v24 = vsel %vm4375_vm8, %v12318_v48, %v4368_v19  ;;  %v4370_v51 = vpop.permute.xlu1 %4369  ;;  %v3736_v48 = vsel %vm3735_vm9, %v12456_v58, 0.0 }
 0x390   : > { %v4475_v59 = vadd.f32 %v4406_v24, %v4265_v52  ;;  %v4407_v14 = vsel %vm4375_vm8, %v4368_v19, %v4370_v51  ;;  %v3772_v58 = vrot.slane %v3736_v48, 5  ;;  %v4268_v4 = vadd.f32 %v4198_v12, %v4055_v49 }
 0x391   : > { %v4476_v37 = vadd.f32 %v4407_v14, %v4266_v10 }
 0x392   : > { %v4510_v25 = vpack.c.bf16 %v4475_v59, %v4475_v59  ;;  %v3417_v27 = vpop.permute.xlu0 %3416  ;;  %v9312_v59 = vld [vmem:[%s12602_s4] sm:$0xff]  }
 0x393   : > { %v4511_v47 = vpack.c.bf16 %v4476_v37, %v4476_v37  ;;  %v3452_v36 = vsel %vm3418_vm4, %v12445_v33, %v3417_v27  ;;  %v4372_v6 = vpop.permute.xlu1 %4371 }
 0x394   : > { %v3523_v8 = vadd.f32 %v3452_v36, %v3311_v15  ;;  %v4408_v31 = vsel %vm4375_vm8, %v4370_v51, %v4372_v6  ;;  %v9311_v51 = vld [vmem:[%s12602_s4 + $0x8] sm:$0xff]  }
 0x395   : > { %7336 = vmatprep.mubr.bf16.mxu1 %v4511_v47  ;;  %v4477_v34 = vadd.f32 %v4408_v31, %v4267_v11 }
 0x396   : > { %v3628_v39 = vadd.f32 %v3558_v62, %v3523_v8  ;;  %7337 = vmatmul.mubr.bf16.vlgmr.msra.gmra.mxu1 %v4510_v25  ;;  %v4374_v60 = vpop.permute.xlu0 %4373 }
 0x397   : > { %v4409_v33 = vsel %vm4375_vm8, %v4372_v6, %v4374_v60  ;;  %8551 = vmatpush3.bf16.msra.mxu1 %v6702_v9  ;;  %8552 = vmatprep.mubr.msk.bf16.mxu1 %vm9387_vm0, %v12656_v17  ;;  %v4512_v20 = vpack.c.bf16 %v4477_v34, %v4477_v34 }
 0x398   : > { %v3842_v43 = vadd.f32 %v3772_v58, %v3628_v39  ;;  %v4444_v23 = vsel %vm3207_vm3, %v4409_v33, 0.0  ;;  %8556 = vmatprep.subr.bf16.mxu1 %v12656_v17 }
 0x399   : > { %v4478_v7 = vadd.f32 %v4444_v23, %v4268_v4 }
 0x39a   : > { %v4056_v45 = vadd.f32 %v3986_v22, %v3842_v43  ;;  %v8363_v2 = vpop.f32.mrf.mxu1 }
 0x39b   : > { %v4513_v52 = vpack.c.bf16 %v4478_v7, %v4478_v7 }
 0x39c   : > { %v4269_v30 = vadd.f32 %v4199_v61, %v4056_v45  ;;  %v8364_v41 = vpop.f32.mrf.mxu1  ;;  %v7434_v45 = vld [vmem:[%s12603_s5] sm:$0x1] }
 0x39d   : > { %v8365_v53 = vadd.f32 %v8364_v41, %v8363_v2  ;;  %7376 = vmatprep.mubr.bf16.mxu0 %v4513_v52 }
 0x39e   : > { %v4514_v26 = vpack.c.bf16 %v4269_v30, %v4269_v30  ;;  %v8366_v0 = vpop.f32.mrf.mxu1  ;;  %7377 = vmatmul.mubr.bf16.vlgmr.msra.gmra.mxu0 %v4512_v20 }
 0x39f   : > { %v7099_v32 = vadd.f32 %v8365_v53, %v12454_v50 }
 0x3a0   : > { %v8367_v44 = vpop.f32.mrf.mxu1  ;;  %8553 = vmatmul.mubr.msk.bf16.vlgmr.msra.gmra.mxu1 %vm6696_vm11, %v4514_v26 }
 0x3a1   : > { %8564 = vmatprep.mubr.msk.bf16.mxu1 %vm9387_vm0, %v12656_v17  ;;  %8557 = vmatpush3.bf16.msra.mxu1 %v9309_v5 }
 0x3a2   : > { %8558 = vmatprep.subr.bf16.mxu1 %v12656_v17 }
 0x3a5   : > { %8559 = vmatpush3.bf16.msra.mxu1 %v9310_v16 }
 0x3a6   : > { %8560 = vmatprep.subr.bf16.mxu1 %v12656_v17 }
 0x3a9   : > { %8561 = vmatpush3.bf16.msra.mxu1 %v9311_v51 }
 0x3aa   : > { %8562 = vmatprep.subr.bf16.mxu1 %v12656_v17 }
 0x3ad   : > { %8563 = vmatpush3.bf16.msra.mxu1 %v9312_v59 }
 0x3b5   : > { %v8385_v38 = vpop.f32.mrf.mxu0 }
 0x3b7   : > { %v8386_v63 = vpop.f32.mrf.mxu0 }
 0x3b8   : > { %v8387_v28 = vadd.f32 %v8386_v63, %v8385_v38 }
 0x3b9   : > { %v8388_v1 = vpop.f32.mrf.mxu0 }
 0x3ba   : > { %v7139_v42 = vadd.f32 %v8387_v28, %v7099_v32 }
 0x3bb   : > { %v8389_v35 = vpop.f32.mrf.mxu0 }
 0x3da   : > { %v8407_v40 = vpop.f32.mrf.mxu1 }
 0x3dc   : > { %v8408_v19 = vpop.f32.mrf.mxu1 }
 0x3dd   : > { %v8409_v3 = vadd.f32 %v8408_v19, %v8407_v40 }
 0x3de   : > { %v8410_v50 = vpop.f32.mrf.mxu1 }
 0x3df   : > { %v7179_v10 = vadd.f32 %v8409_v3, %v7139_v42 }
 0x3e0   : > { %v8411_v24 = vpop.f32.mrf.mxu1 }
 0x3e5   : > { %v8429_v46 = vpop.f32.mrf.mxu0 }
 0x3e7   : > { %v8430_v54 = vpop.f32.mrf.mxu0 }
 0x3e8   : > { %v8431_v14 = vadd.f32 %v8430_v54, %v8429_v46 }
 0x3e9   : > { %v8432_v21 = vpop.f32.mrf.mxu0 }
 0x3ea   : > { %v7219_v15 = vadd.f32 %v8431_v14, %v7179_v10 }
 0x3eb   : > { %v8433_v13 = vpop.f32.mrf.mxu0 }
 0x416   : > { %v8451_v55 = vpop.f32.mrf.mxu1 }
 0x418   : > { %v8452_v37 = vpop.f32.mrf.mxu1 }
 0x419   : > { %v8453_v18 = vadd.f32 %v8452_v37, %v8451_v55 }
 0x41a   : > { %v8454_v48 = vpop.f32.mrf.mxu1  ;;  %v8473_v29 = vpop.f32.mrf.mxu0 }
 0x41b   : > { %v7259_v25 = vadd.f32 %v8453_v18, %v7219_v15 }
 0x41c   : > { %v8455_v27 = vpop.f32.mrf.mxu1  ;;  %v8474_v57 = vpop.f32.mrf.mxu0 }
 0x41d   : > { %v8475_v12 = vadd.f32 %v8474_v57, %v8473_v29 }
 0x41e   : > { %v8476_v17 = vpop.f32.mrf.mxu0 }
 0x41f   : > { %v7299_v47 = vadd.f32 %v8475_v12, %v7259_v25 }
 0x420   : > { %v8477_v36 = vpop.f32.mrf.mxu0 }
 0x456   : > { %v8495_v6 = vpop.f32.mrf.mxu1 }
 0x458   : > { %v8496_v56 = vpop.f32.mrf.mxu1 }
 0x459   : > { %v8497_v9 = vadd.f32 %v8496_v56, %v8495_v6 }
 0x45a   : > { %v8498_v62 = vpop.f32.mrf.mxu1 }
 0x45b   : > { %v7339_v11 = vadd.f32 %v8497_v9, %v7299_v47 }
 0x45c   : > { %v8499_v8 = vpop.f32.mrf.mxu1 }
 0x45e   : > { %v8517_v49 = vpop.f32.mrf.mxu0 }
 0x460   : > { %v8518_v31 = vpop.f32.mrf.mxu0  ;;  %v7418_v58 = vpop.f32.mrf.mxu1 }
 0x461   : > { %v8519_v22 = vadd.f32 %v8518_v31, %v8517_v49 }
 0x462   : > { %v8520_v39 = vpop.f32.mrf.mxu0  ;;  %v8554_v60 = vpop.f32.mrf.mxu1 }
 0x463   : > { %v7379_v4 = vadd.f32 %v8519_v22, %v7339_v11 }
 0x464   : > { %v8521_v33 = vpop.f32.mrf.mxu0  ;;  %v7421_v61 = vpop.f32.mrf.mxu1 }
 0x465   : > { %v7419_v43 = vadd.f32 %v7418_v58, %v7379_v4 }
 0x466   : > { %v8555_v34 = vpop.f32.mrf.mxu1 }
 0x467   : > { %v7424_v23 = vmax.f32 %v7419_v43, 0.0 }
 0x469   : > { %v7425_v7 = vpack.c.bf16 %v7424_v23, %v7424_v23 }
 0x46b   : > { %8565 = vmatmul.mubr.msk.bf16.vlgmr.msra.gmra.mxu1 %vm7459_vm12, %v7425_v7 }
 0x52b   : > { %v7497_v2 = vpop.f32.mrf.mxu1 }
 0x52c   : > { %v7498_v52 = vadd.f32 %v7497_v2, %v7434_v45 }
 0x52d   : > { %v8566_v30 = vpop.f32.mrf.mxu1 }
 0x52e   : > { %7503 = vst [vmem:[%s243_s10] sm:$0x1] %v7498_v52 }
 0x52f   : > { %v7500_v20 = vpop.f32.mrf.mxu1 }
 0x530   : > { %9328 = shalt.err (!%p9325_p3)
}
 0x531   : > { %s9329_s15 = scalar_lea.hbm %s12557_s29, 16  ;;  %s9333_s12 = scalar_lea.hbm %s12604_s6, 32 }
 0x532   : > { %p9330_p4 = scmp.ne.s32.totalorder %s12557_s29, %s9329_s15  ;;  %p9334_p9 = scmp.lt.s32.totalorder %s12557_s29, %s12604_s6 }
 0x533   : > { %p9335_p10 = scmp.lt.s32.totalorder %s9333_s12, %s9329_s15 }
 0x534   : > { %p9331_p7 = pnand %p9330_p4, %p9462_p5 }
 0x535   : > { %p9336_p11 = por %p9335_p10, %p9334_p9 }
 0x536   : > { %p9332_p8 = pneg %p9331_p7 }
 0x538   : > { %p9337_p12 = pnand %p9336_p11, %p9332_p8 }
 0x53a   : > { %9340 = shalt.err (!%p9337_p12)
}
 0x53b   : > { %8569 = dma.vmem_to_hbm [thread:$0]  (%p9462_p5), %s12559_s14, 16, %s12557_s29, %s7505_s17   ;;  %v8567_v41 = vpop.f32.mrf.mxu1 }
 0x53c PF: > { %p8575_p13 = scmp.ge.s32.totalorder %s9375_s24, 2  ;;  %s7529_s10 = sand.u32 1, %s9363_s21  }
 0x53d   : > { %s7530_s26 = scalar_lea.sflag [#allocation3], %s7529_s10 }
 0x53e   : > { %p8572_p0 = pnand %p8575_p13, %p9466_p6 }
 0x540   : > { %p8573_p1 = pneg %p8572_p0 }
 0x542   : > { %9358 = dma.done.wait (%p8573_p1), %s7530_s26, 16  }
 0x543   : > { %9360 = vsyncadd (%p8573_p1), %s7530_s26, 4294967280  ;;  %p16_p2 = scmp.ge.s32.totalorder %s9449_s27, 4   ;;  %s12657_s21 = smov %s9367_s22 }
 0x544   : > { %s12658_s22 = smov %s9371_s23  ;;  %s12659_s23 = smov %s9460_s30 }
 0x545   : > { %s12660_s24 = smov %s9449_s27  ;;  %18 = sbr.rel (!%p16_p2) target bundleno = 3 (0x3), region = 79 }
 0x54a   :  { %7534 = vsyncpa [#allocation3], 1 }
 0x54b   :  { %7536 = vsyncpa [#allocation3 + $0x1], 1 }

</bundles_post_ra>
